<compile_context>
chip_gen: v5e
topology: v5e:2x2
jax: 0.10.0
libtpu: 0.0.40
codegen_flags: <defaults>
</compile_context>

<pallas_src>
import functools

import numpy as np
import jax
import jax.numpy as jnp
from jax import lax
from jax.experimental import pallas as pl
from jax.experimental.pallas import tpu as pltpu


# --------------------------------------------------------------------------- #
# Pallas kernel
# --------------------------------------------------------------------------- #
def _lde_kernel(xf_ref, f_win, f_bin, f_w1a, f_w1b, f_b1, f_w2, f_b2, f_w3d,
                f_b3d,
                xl_ref, l_wina, l_bina, l_winb, l_binb, l_w1a, l_w1b, l_b1,
                l_w2, l_b2, l_w3d, l_b3d,
                logits_ref, bank_ref, out_ref, *, K, momentum, eps):
    f32 = jnp.float32
    bf16 = jnp.bfloat16
    B = out_ref.shape[0]

    row = lax.broadcasted_iota(jnp.int32, (B, B), 0)
    col = lax.broadcasted_iota(jnp.int32, (B, B), 1)

    def neighbor(x):
        # cosine similarity (EUP rsqrt), diag = -1, top-K binary mask per row.
        nrm2 = jnp.sum(x * x, axis=-1, keepdims=True)
        xn = x * lax.rsqrt(jnp.maximum(nrm2, 1e-24))
        sim = lax.dot_general(xn, xn, (((1,), (1,)), ((), ())),
                              preferred_element_type=f32)            # (B, B)
        sim = jnp.where(row == col, -1.0, sim)
        nb = jnp.zeros_like(sim)
        for _ in range(K):   # K is a tiny static int -> unrolled argmax+mask
            m = jnp.max(sim, axis=-1, keepdims=True)
            first = jnp.min(jnp.where(sim == m, col, B), axis=-1, keepdims=True)
            pick = col == first
            nb = jnp.where(pick, 1.0, nb)
            sim = jnp.where(pick, -jnp.inf, sim)
        return nb

    def pairwise_weight(A, Cm, nb, b1, w2, b2, w3d, b3d, mm_dtype):
        # Batched pairwise MLP over all B*B (query, key) pairs:
        #   h1[i,j] = relu(A[i] + Cm[j] + b1)       (single broadcast add)
        #   h2      = relu(h1_2d @ w2 + b2)         (one MXU matmul, M = B*B)
        #   z[i,j]  = sum(h2 * w3d) + b3d           (VPU mul + XLU lane reduce)
        D2 = A.shape[-1]
        h1 = jnp.maximum(A[:, None, :] + Cm[None, :, :] + b1, 0.0)   # (B,B,D2)
        h1 = h1.reshape(B * B, D2).astype(mm_dtype)
        h2 = jnp.dot(h1, w2, preferred_element_type=f32) + b2        # (B*B,D4)
        h2 = jnp.maximum(h2, 0.0)
        D4 = h2.shape[-1]
        z = jnp.sum((h2 * w3d).reshape(B, B, D4), axis=-1) + b3d     # (B, B)
        # softmax([z0, z1])[0] == sigmoid(z0 - z1);  w3d = W3[:,0] - W3[:,1]
        s = pl.reciprocal(1.0 + jnp.exp(-z), approx=True)
        w = s * nb
        w = (w + eps / B) * pl.reciprocal(
            jnp.sum(w, axis=-1, keepdims=True) + eps, approx=True)
        return w                                                     # (B, B)

    # ---------------- fer stream (dim = 512): bf16 MXU operands ------------ #
    xf = xf_ref[...]
    fnb = neighbor(xf)                      # similarity / top-K kept in f32
    feat = jnp.dot(xf.astype(bf16), f_win[...],
                   preferred_element_type=f32) + f_bin[...]          # (B, D)
    Dh = feat.shape[-1] // 2                # 256: lane-aligned slice is free
    fA = jnp.dot(feat[:, :Dh].astype(bf16), f_w1a[...],
                 preferred_element_type=f32)                         # (B, D2)
    fC = jnp.dot(feat[:, Dh:].astype(bf16), f_w1b[...],
                 preferred_element_type=f32)                         # (B, D2)
    fw = pairwise_weight(fA, fC, fnb, f_b1[...], f_w2[...], f_b2[...],
                         f_w3d[...], f_b3d[...], bf16)

    # ---------------- lm stream (dim = 64): keep f32, split fc_in ---------- #
    xl = xl_ref[...]
    lnb = neighbor(xl)
    l1 = jnp.dot(xl, l_wina[...], preferred_element_type=f32) + l_bina[...]
    l2 = jnp.dot(xl, l_winb[...], preferred_element_type=f32) + l_binb[...]
    lA = jnp.dot(l1, l_w1a[...], preferred_element_type=f32)
    lC = jnp.dot(l2, l_w1b[...], preferred_element_type=f32)
    lw = pairwise_weight(lA, lC, lnb, l_b1[...], l_w2[...], l_b2[...],
                         l_w3d[...], l_b3d[...], f32)

    # ---------------- combine: one matmul, one full-block store ------------ #
    lg = logits_ref[...]
    lg_exp = jnp.exp(lg - jnp.max(lg, axis=-1, keepdims=True))
    P = lg_exp * pl.reciprocal(jnp.sum(lg_exp, axis=-1, keepdims=True),
                               approx=True)                          # (B, C)
    w_comb = 0.5 * (fw + lw)
    tgt = jnp.dot(w_comb, P, preferred_element_type=f32)             # (B, C)
    out_ref[...] = bank_ref[...] * momentum + tgt * (1.0 - momentum)


# --------------------------------------------------------------------------- #
# Wrapper (parameter splitting / casting is glue; compute happens in-kernel)
# --------------------------------------------------------------------------- #
def _prep_fer_params(p):
    # fer path: fused fc_in weight (slice at D/2=256 is lane-aligned in-kernel),
    # bf16 matmul operands, f32 biases / epilogue params.
    d = p["w_in"].shape[0]
    bf16 = jnp.bfloat16
    return [
        p["w_in"].astype(bf16),
        p["b_in"][None, :],
        p["w1"][: d // 2, :].astype(bf16),
        p["w1"][d // 2:, :].astype(bf16),
        p["b1"][None, :],
        p["w2"].astype(bf16),
        p["b2"][None, :],
        (p["w3"][:, 0] - p["w3"][:, 1])[None, :],
        jnp.reshape(p["b3"][0] - p["b3"][1], (1, 1)),
    ]


def _prep_lm_params(p):
    # lm path: keep split fc_in halves (D/2 = 32 < 128 lanes) and f32.
    d = p["w_in"].shape[0]
    return [
        p["w_in"][:, : d // 2],
        p["b_in"][: d // 2][None, :],
        p["w_in"][:, d // 2:],
        p["b_in"][d // 2:][None, :],
        p["w1"][: d // 2, :],
        p["w1"][d // 2:, :],
        p["b1"][None, :],
        p["w2"],
        p["b2"][None, :],
        (p["w3"][:, 0] - p["w3"][:, 1])[None, :],
        jnp.reshape(p["b3"][0] - p["b3"][1], (1, 1)),
    ]


def lde_forward(fer_x, lm_x, logits, bank_rows, fer_params, lm_params, K,
                momentum):
    B, C = logits.shape
    fp = _prep_fer_params(fer_params)
    lp = _prep_lm_params(lm_params)
    args = [fer_x] + fp + [lm_x] + lp + [logits, bank_rows]

    kernel = functools.partial(_lde_kernel, K=int(K), momentum=float(momentum),
                               eps=1e-8)
    return pl.pallas_call(
        kernel,
        out_shape=jax.ShapeDtypeStruct((B, C), jnp.float32),
        in_specs=[pl.BlockSpec(memory_space=pltpu.MemorySpace.VMEM)
                  for _ in args],
        out_specs=pl.BlockSpec(memory_space=pltpu.MemorySpace.VMEM),
    )(*args)


# --------------------------------------------------------------------------- #
# Pure-JAX reference (mirrors the PyTorch forward)
# --------------------------------------------------------------------------- #
def lde_reference(fer_x, lm_x, logits, bank_rows, fer_p, lm_p, K, momentum):
    def score_fwd(x, p):
        Bn, Cc = x.shape
        feat = x @ p["w_in"] + p["b_in"]
        f1, f2 = feat[:, : Cc // 2], feat[:, Cc // 2:]
        f = jnp.concatenate(
            [jnp.broadcast_to(f1[:, None, :], (Bn, Bn, Cc // 2)),
             jnp.broadcast_to(f2[None, :, :], (Bn, Bn, Cc // 2))], axis=-1)
        h = jax.nn.relu(f @ p["w1"] + p["b1"])
        h = jax.nn.relu(h @ p["w2"] + p["b2"])
        z = h @ p["w3"] + p["b3"]
        return jax.nn.softmax(z, axis=-1)

    def neighbor(x):
        Bn = x.shape[0]
        xn = x / jnp.maximum(jnp.linalg.norm(x, axis=-1, keepdims=True), 1e-12)
        sim = xn @ xn.T
        sim = sim.at[jnp.arange(Bn), jnp.arange(Bn)].set(-1.0)
        _, ti = jax.lax.top_k(sim, K)
        nb = jnp.zeros_like(sim)
        nb = nb.at[jnp.arange(Bn)[:, None], ti].set(1.0)
        return nb

    eps = 1e-8
    B = fer_x.shape[0]
    fnb, lnb = neighbor(fer_x), neighbor(lm_x)
    fw = score_fwd(fer_x, fer_p)[:, :, 0] * fnb
    lw = score_fwd(lm_x, lm_p)[:, :, 0] * lnb
    fw = (fw + eps / B) / (fw.sum(-1, keepdims=True) + eps)
    lw = (lw + eps / B) / (lw.sum(-1, keepdims=True) + eps)
    P = jax.nn.softmax(logits, axis=-1)
    targets = 0.5 * (fw @ P + lw @ P)
    return bank_rows * momentum + targets * (1.0 - momentum)


# --------------------------------------------------------------------------- #
# Main
# --------------------------------------------------------------------------- #
def _init_score_params(key, dim):
    ks = jax.random.split(key, 8)

    def lin_w(k, fi, fo):
        return jax.random.normal(k, (fi, fo), jnp.float32) / jnp.sqrt(fi)

    return dict(
        w_in=lin_w(ks[0], dim, dim),
        b_in=jax.random.normal(ks[1], (dim,), jnp.float32) * 0.01,
        w1=lin_w(ks[2], dim, dim // 2),
        b1=jax.random.normal(ks[3], (dim // 2,), jnp.float32) * 0.01,
        w2=lin_w(ks[4], dim // 2, dim // 4),
        b2=jax.random.normal(ks[5], (dim // 4,), jnp.float32) * 0.01,
        w3=lin_w(ks[6], dim // 4, 2),
        b3=jax.random.normal(ks[7], (2,), jnp.float32) * 0.01,
    )


if __name__ == "__main__":
    key = jax.random.PRNGKey(0)
    B = 8                 # batch size
    expansion = 1         # -> fer dim = 512, lm dim = 64 (as in the module)
    K = 3                 # top-K neighbors
    momentum = 0.9
    fer_dim = 512 * expansion
    lm_dim = 64 * expansion

    N_bank = 16
    labels = [i % 8 for i in range(N_bank)]           # max label = 7 -> 8 classes
    num_classes = max(labels) + 1
    bank = jax.nn.one_hot(jnp.array(labels), num_classes, dtype=jnp.float32)

    keys = jax.random.split(key, 6)
    fer_params = _init_score_params(keys[0], fer_dim)
    lm_params = _init_score_params(keys[1], lm_dim)
    fer_features = jax.random.normal(keys[2], (B, fer_dim), jnp.float32)
    lm_features = jax.random.normal(keys[3], (B, lm_dim), jnp.float32)
    logits = jax.random.normal(keys[4], (B, num_classes), jnp.float32)
    idx = jnp.arange(B)                                # indices into the bank
    bank_rows = bank[idx]                              # gather = glue

    out = lde_forward(fer_features, lm_features, logits, bank_rows,
                      fer_params, lm_params, K, momentum)
    out = jax.block_until_ready(out)

    # reference check (pure JAX, mirrors the PyTorch forward)
    with jax.default_matmul_precision("highest"):
        ref = lde_reference(fer_features, lm_features, logits, bank_rows,
                            fer_params, lm_params, K, momentum)
    np.testing.assert_allclose(np.asarray(out), np.asarray(ref),
                               rtol=2e-2, atol=3e-3)

    # _update side-effect: updated bank rows equal the returned targets
    # (bank[idx]*m + targets*(1-m)); expressed functionally here.
    # TODO(synk): in-place stateful bank mutation (and .cpu()/.detach()) has no
    # Pallas equivalent; modeled as a functional scatter on the host side.
    new_bank = bank.at[idx].set(out)
    jax.block_until_ready(new_bank)

    print("KERNEL_OK")
</pallas_src>

<mosaic_0001>
module attributes {stable_mosaic.version = 11 : i64} {
  func.func @_lde_kernel(%arg0: memref<8x512xf32, #tpu.memory_space<vmem>>, %arg1: memref<512x512xbf16, #tpu.memory_space<vmem>>, %arg2: memref<1x512xf32, #tpu.memory_space<vmem>>, %arg3: memref<256x256xbf16, #tpu.memory_space<vmem>>, %arg4: memref<256x256xbf16, #tpu.memory_space<vmem>>, %arg5: memref<1x256xf32, #tpu.memory_space<vmem>>, %arg6: memref<256x128xbf16, #tpu.memory_space<vmem>>, %arg7: memref<1x128xf32, #tpu.memory_space<vmem>>, %arg8: memref<1x128xf32, #tpu.memory_space<vmem>>, %arg9: memref<1x1xf32, #tpu.memory_space<vmem>>, %arg10: memref<8x64xf32, #tpu.memory_space<vmem>>, %arg11: memref<64x32xf32, #tpu.memory_space<vmem>>, %arg12: memref<1x32xf32, #tpu.memory_space<vmem>>, %arg13: memref<64x32xf32, #tpu.memory_space<vmem>>, %arg14: memref<1x32xf32, #tpu.memory_space<vmem>>, %arg15: memref<32x32xf32, #tpu.memory_space<vmem>>, %arg16: memref<32x32xf32, #tpu.memory_space<vmem>>, %arg17: memref<1x32xf32, #tpu.memory_space<vmem>>, %arg18: memref<32x16xf32, #tpu.memory_space<vmem>>, %arg19: memref<1x16xf32, #tpu.memory_space<vmem>>, %arg20: memref<1x16xf32, #tpu.memory_space<vmem>>, %arg21: memref<1x1xf32, #tpu.memory_space<vmem>>, %arg22: memref<8x8xf32, #tpu.memory_space<vmem>>, %arg23: memref<8x8xf32, #tpu.memory_space<vmem>>, %arg24: memref<8x8xf32, #tpu.memory_space<vmem>>) attributes {dimension_semantics = [], scalar_prefetch = 0 : i64, scratch_operands = 0 : i64, tpu.core_type = #tpu.core_type<tc>} {
    %0 = tpu.iota {dimensions = array<i32: 0>} : vector<8x8xi32>
    %1 = tpu.iota {dimensions = array<i32: 1>} : vector<8x8xi32>
    %c0 = arith.constant 0 : index
    %c0_0 = arith.constant 0 : index
    %2 = vector.load %arg0[%c0, %c0_0] : memref<8x512xf32, #tpu.memory_space<vmem>>, vector<8x512xf32>
    %3 = arith.mulf %2, %2 : vector<8x512xf32>
    %cst = arith.constant dense<0.000000e+00> : vector<8xf32>
    %4 = vector.multi_reduction <add>, %3, %cst [1] : vector<8x512xf32> to vector<8xf32>
    %5 = vector.shape_cast %4 : vector<8xf32> to vector<8x1xf32>
    %cst_1 = arith.constant 1.000000e-24 : f32
    %6 = vector.broadcast %cst_1 : f32 to vector<8x1xf32>
    %7 = arith.maximumf %5, %6 : vector<8x1xf32>
    %8 = math.rsqrt %7 : vector<8x1xf32>
    %9 = vector.broadcast %8 : vector<8x1xf32> to vector<8x512xf32>
    %10 = arith.mulf %2, %9 : vector<8x512xf32>
    %cst_2 = arith.constant dense<0.000000e+00> : vector<8x8xf32>
    %11 = tpu.matmul %10, %10, %cst_2 {dimension_numbers = #tpu.dot_dimension_numbers<[1], [1], [0], [0], [0, 0, 1, 0], [], []>} : vector<8x512xf32>, vector<8x512xf32>, vector<8x8xf32> -> vector<8x8xf32>
    %12 = arith.cmpi eq, %0, %1 : vector<8x8xi32>
    %cst_3 = arith.constant -1.000000e+00 : f32
    %13 = vector.broadcast %cst_3 : f32 to vector<8x8xf32>
    %14 = arith.select %12, %13, %11 : vector<8x8xi1>, vector<8x8xf32>
    %cst_4 = arith.constant 0.000000e+00 : f32
    %15 = vector.broadcast %cst_4 : f32 to vector<8x8xf32>
    %cst_5 = arith.constant dense<0xFF800000> : vector<8xf32>
    %16 = vector.multi_reduction <maximumf>, %14, %cst_5 [1] : vector<8x8xf32> to vector<8xf32>
    %17 = vector.shape_cast %16 : vector<8xf32> to vector<8x1xf32>
    %18 = vector.broadcast %17 : vector<8x1xf32> to vector<8x8xf32>
    %19 = arith.cmpf oeq, %14, %18 : vector<8x8xf32>
    %c8_i32 = arith.constant 8 : i32
    %20 = vector.broadcast %c8_i32 : i32 to vector<8x8xi32>
    %21 = arith.select %19, %1, %20 : vector<8x8xi1>, vector<8x8xi32>
    %cst_6 = arith.constant dense<2147483647> : vector<8xi32>
    %22 = vector.multi_reduction <minsi>, %21, %cst_6 [1] : vector<8x8xi32> to vector<8xi32>
    %23 = vector.shape_cast %22 : vector<8xi32> to vector<8x1xi32>
    %24 = vector.broadcast %23 : vector<8x1xi32> to vector<8x8xi32>
    %25 = arith.cmpi eq, %1, %24 : vector<8x8xi32>
    %cst_7 = arith.constant 1.000000e+00 : f32
    %26 = vector.broadcast %cst_7 : f32 to vector<8x8xf32>
    %27 = arith.select %25, %26, %15 : vector<8x8xi1>, vector<8x8xf32>
    %cst_8 = arith.constant 0xFF800000 : f32
    %28 = vector.broadcast %cst_8 : f32 to vector<8x8xf32>
    %29 = arith.select %25, %28, %14 : vector<8x8xi1>, vector<8x8xf32>
    %cst_9 = arith.constant dense<0xFF800000> : vector<8xf32>
    %30 = vector.multi_reduction <maximumf>, %29, %cst_9 [1] : vector<8x8xf32> to vector<8xf32>
    %31 = vector.shape_cast %30 : vector<8xf32> to vector<8x1xf32>
    %32 = vector.broadcast %31 : vector<8x1xf32> to vector<8x8xf32>
    %33 = arith.cmpf oeq, %29, %32 : vector<8x8xf32>
    %c8_i32_10 = arith.constant 8 : i32
    %34 = vector.broadcast %c8_i32_10 : i32 to vector<8x8xi32>
    %35 = arith.select %33, %1, %34 : vector<8x8xi1>, vector<8x8xi32>
    %cst_11 = arith.constant dense<2147483647> : vector<8xi32>
    %36 = vector.multi_reduction <minsi>, %35, %cst_11 [1] : vector<8x8xi32> to vector<8xi32>
    %37 = vector.shape_cast %36 : vector<8xi32> to vector<8x1xi32>
    %38 = vector.broadcast %37 : vector<8x1xi32> to vector<8x8xi32>
    %39 = arith.cmpi eq, %1, %38 : vector<8x8xi32>
    %cst_12 = arith.constant 1.000000e+00 : f32
    %40 = vector.broadcast %cst_12 : f32 to vector<8x8xf32>
    %41 = arith.select %39, %40, %27 : vector<8x8xi1>, vector<8x8xf32>
    %cst_13 = arith.constant 0xFF800000 : f32
    %42 = vector.broadcast %cst_13 : f32 to vector<8x8xf32>
    %43 = arith.select %39, %42, %29 : vector<8x8xi1>, vector<8x8xf32>
    %cst_14 = arith.constant dense<0xFF800000> : vector<8xf32>
    %44 = vector.multi_reduction <maximumf>, %43, %cst_14 [1] : vector<8x8xf32> to vector<8xf32>
    %45 = vector.shape_cast %44 : vector<8xf32> to vector<8x1xf32>
    %46 = vector.broadcast %45 : vector<8x1xf32> to vector<8x8xf32>
    %47 = arith.cmpf oeq, %43, %46 : vector<8x8xf32>
    %c8_i32_15 = arith.constant 8 : i32
    %48 = vector.broadcast %c8_i32_15 : i32 to vector<8x8xi32>
    %49 = arith.select %47, %1, %48 : vector<8x8xi1>, vector<8x8xi32>
    %cst_16 = arith.constant dense<2147483647> : vector<8xi32>
    %50 = vector.multi_reduction <minsi>, %49, %cst_16 [1] : vector<8x8xi32> to vector<8xi32>
    %51 = vector.shape_cast %50 : vector<8xi32> to vector<8x1xi32>
    %52 = vector.broadcast %51 : vector<8x1xi32> to vector<8x8xi32>
    %53 = arith.cmpi eq, %1, %52 : vector<8x8xi32>
    %cst_17 = arith.constant 1.000000e+00 : f32
    %54 = vector.broadcast %cst_17 : f32 to vector<8x8xf32>
    %55 = arith.select %53, %54, %41 : vector<8x8xi1>, vector<8x8xf32>
    %56 = arith.truncf %2 : vector<8x512xf32> to vector<8x512xbf16>
    %c0_18 = arith.constant 0 : index
    %c0_19 = arith.constant 0 : index
    %57 = vector.load %arg1[%c0_18, %c0_19] : memref<512x512xbf16, #tpu.memory_space<vmem>>, vector<512x512xbf16>
    %cst_20 = arith.constant dense<0.000000e+00> : vector<8x512xf32>
    %58 = tpu.matmul %56, %57, %cst_20 {dimension_numbers = #tpu.dot_dimension_numbers<[1], [0], [0], [1], [0, 0, 1, 1], [], []>} : vector<8x512xbf16>, vector<512x512xbf16>, vector<8x512xf32> -> vector<8x512xf32>
    %c0_21 = arith.constant 0 : index
    %c0_22 = arith.constant 0 : index
    %59 = vector.load %arg2[%c0_21, %c0_22] : memref<1x512xf32, #tpu.memory_space<vmem>>, vector<1x512xf32>
    %60 = vector.broadcast %59 : vector<1x512xf32> to vector<8x512xf32>
    %61 = arith.addf %58, %60 : vector<8x512xf32>
    %62 = vector.extract_strided_slice %61 {offsets = [0, 0], sizes = [8, 256], strides = [1, 1]} : vector<8x512xf32> to vector<8x256xf32>
    %63 = arith.truncf %62 : vector<8x256xf32> to vector<8x256xbf16>
    %c0_23 = arith.constant 0 : index
    %c0_24 = arith.constant 0 : index
    %64 = vector.load %arg3[%c0_23, %c0_24] : memref<256x256xbf16, #tpu.memory_space<vmem>>, vector<256x256xbf16>
    %cst_25 = arith.constant dense<0.000000e+00> : vector<8x256xf32>
    %65 = tpu.matmul %63, %64, %cst_25 {dimension_numbers = #tpu.dot_dimension_numbers<[1], [0], [0], [1], [0, 0, 1, 1], [], []>} : vector<8x256xbf16>, vector<256x256xbf16>, vector<8x256xf32> -> vector<8x256xf32>
    %66 = vector.extract_strided_slice %61 {offsets = [0, 256], sizes = [8, 256], strides = [1, 1]} : vector<8x512xf32> to vector<8x256xf32>
    %67 = arith.truncf %66 : vector<8x256xf32> to vector<8x256xbf16>
    %c0_26 = arith.constant 0 : index
    %c0_27 = arith.constant 0 : index
    %68 = vector.load %arg4[%c0_26, %c0_27] : memref<256x256xbf16, #tpu.memory_space<vmem>>, vector<256x256xbf16>
    %cst_28 = arith.constant dense<0.000000e+00> : vector<8x256xf32>
    %69 = tpu.matmul %67, %68, %cst_28 {dimension_numbers = #tpu.dot_dimension_numbers<[1], [0], [0], [1], [0, 0, 1, 1], [], []>} : vector<8x256xbf16>, vector<256x256xbf16>, vector<8x256xf32> -> vector<8x256xf32>
    %c0_29 = arith.constant 0 : index
    %c0_30 = arith.constant 0 : index
    %70 = vector.load %arg5[%c0_29, %c0_30] : memref<1x256xf32, #tpu.memory_space<vmem>>, vector<1x256xf32>
    %c0_31 = arith.constant 0 : index
    %c0_32 = arith.constant 0 : index
    %71 = vector.load %arg6[%c0_31, %c0_32] : memref<256x128xbf16, #tpu.memory_space<vmem>>, vector<256x128xbf16>
    %c0_33 = arith.constant 0 : index
    %c0_34 = arith.constant 0 : index
    %72 = vector.load %arg7[%c0_33, %c0_34] : memref<1x128xf32, #tpu.memory_space<vmem>>, vector<1x128xf32>
    %c0_35 = arith.constant 0 : index
    %c0_36 = arith.constant 0 : index
    %73 = vector.load %arg8[%c0_35, %c0_36] : memref<1x128xf32, #tpu.memory_space<vmem>>, vector<1x128xf32>
    %c0_37 = arith.constant 0 : index
    %c0_38 = arith.constant 0 : index
    %74 = vector.load %arg9[%c0_37, %c0_38] : memref<1x1xf32, #tpu.memory_space<vmem>>, vector<1x1xf32>
    %75 = vector.shape_cast %65 : vector<8x256xf32> to vector<8x1x256xf32>
    %76 = vector.shape_cast %69 : vector<8x256xf32> to vector<1x8x256xf32>
    %77 = vector.broadcast %75 : vector<8x1x256xf32> to vector<8x8x256xf32>
    %78 = vector.broadcast %76 : vector<1x8x256xf32> to vector<8x8x256xf32>
    %79 = arith.addf %77, %78 : vector<8x8x256xf32>
    %80 = vector.shape_cast %70 : vector<1x256xf32> to vector<1x1x256xf32>
    %81 = vector.broadcast %80 : vector<1x1x256xf32> to vector<8x8x256xf32>
    %82 = arith.addf %79, %81 : vector<8x8x256xf32>
    %cst_39 = arith.constant 0.000000e+00 : f32
    %83 = vector.broadcast %cst_39 : f32 to vector<8x8x256xf32>
    %84 = arith.maximumf %82, %83 : vector<8x8x256xf32>
    %85 = vector.shape_cast %84 : vector<8x8x256xf32> to vector<64x256xf32>
    %86 = arith.truncf %85 : vector<64x256xf32> to vector<64x256xbf16>
    %cst_40 = arith.constant dense<0.000000e+00> : vector<64x128xf32>
    %87 = tpu.matmul %86, %71, %cst_40 {dimension_numbers = #tpu.dot_dimension_numbers<[1], [0], [0], [1], [0, 0, 1, 1], [], []>} : vector<64x256xbf16>, vector<256x128xbf16>, vector<64x128xf32> -> vector<64x128xf32>
    %88 = vector.broadcast %72 : vector<1x128xf32> to vector<64x128xf32>
    %89 = arith.addf %87, %88 : vector<64x128xf32>
    %cst_41 = arith.constant 0.000000e+00 : f32
    %90 = vector.broadcast %cst_41 : f32 to vector<64x128xf32>
    %91 = arith.maximumf %89, %90 : vector<64x128xf32>
    %92 = vector.broadcast %73 : vector<1x128xf32> to vector<64x128xf32>
    %93 = arith.mulf %91, %92 : vector<64x128xf32>
    %94 = vector.shape_cast %93 : vector<64x128xf32> to vector<8x8x128xf32>
    %cst_42 = arith.constant dense<0.000000e+00> : vector<8x8xf32>
    %95 = vector.multi_reduction <add>, %94, %cst_42 [2] : vector<8x8x128xf32> to vector<8x8xf32>
    %96 = vector.broadcast %74 : vector<1x1xf32> to vector<8x8xf32>
    %97 = arith.addf %95, %96 : vector<8x8xf32>
    %cst_43 = arith.constant 0.000000e+00 : f32
    %98 = vector.broadcast %cst_43 : f32 to vector<8x8xf32>
    %99 = arith.subf %98, %97 : vector<8x8xf32>
    %100 = math.exp %99 : vector<8x8xf32>
    %cst_44 = arith.constant 1.000000e+00 : f32
    %101 = vector.broadcast %cst_44 : f32 to vector<8x8xf32>
    %102 = arith.addf %101, %100 : vector<8x8xf32>
    %103 = tpu.reciprocal %102 {approx = true} : vector<8x8xf32> -> vector<8x8xf32>
    %104 = arith.mulf %103, %55 : vector<8x8xf32>
    %cst_45 = arith.constant 1.250000e-09 : f32
    %105 = vector.broadcast %cst_45 : f32 to vector<8x8xf32>
    %106 = arith.addf %104, %105 : vector<8x8xf32>
    %cst_46 = arith.constant dense<0.000000e+00> : vector<8xf32>
    %107 = vector.multi_reduction <add>, %104, %cst_46 [1] : vector<8x8xf32> to vector<8xf32>
    %108 = vector.shape_cast %107 : vector<8xf32> to vector<8x1xf32>
    %cst_47 = arith.constant 9.99999993E-9 : f32
    %109 = vector.broadcast %cst_47 : f32 to vector<8x1xf32>
    %110 = arith.addf %108, %109 : vector<8x1xf32>
    %111 = tpu.reciprocal %110 {approx = true} : vector<8x1xf32> -> vector<8x1xf32>
    %112 = vector.broadcast %111 : vector<8x1xf32> to vector<8x8xf32>
    %113 = arith.mulf %106, %112 : vector<8x8xf32>
    %c0_48 = arith.constant 0 : index
    %c0_49 = arith.constant 0 : index
    %114 = vector.load %arg10[%c0_48, %c0_49] : memref<8x64xf32, #tpu.memory_space<vmem>>, vector<8x64xf32>
    %115 = arith.mulf %114, %114 : vector<8x64xf32>
    %cst_50 = arith.constant dense<0.000000e+00> : vector<8xf32>
    %116 = vector.multi_reduction <add>, %115, %cst_50 [1] : vector<8x64xf32> to vector<8xf32>
    %117 = vector.shape_cast %116 : vector<8xf32> to vector<8x1xf32>
    %cst_51 = arith.constant 1.000000e-24 : f32
    %118 = vector.broadcast %cst_51 : f32 to vector<8x1xf32>
    %119 = arith.maximumf %117, %118 : vector<8x1xf32>
    %120 = math.rsqrt %119 : vector<8x1xf32>
    %121 = vector.broadcast %120 : vector<8x1xf32> to vector<8x64xf32>
    %122 = arith.mulf %114, %121 : vector<8x64xf32>
    %cst_52 = arith.constant dense<0.000000e+00> : vector<8x8xf32>
    %123 = tpu.matmul %122, %122, %cst_52 {dimension_numbers = #tpu.dot_dimension_numbers<[1], [1], [0], [0], [0, 0, 1, 0], [], []>} : vector<8x64xf32>, vector<8x64xf32>, vector<8x8xf32> -> vector<8x8xf32>
    %124 = arith.cmpi eq, %0, %1 : vector<8x8xi32>
    %cst_53 = arith.constant -1.000000e+00 : f32
    %125 = vector.broadcast %cst_53 : f32 to vector<8x8xf32>
    %126 = arith.select %124, %125, %123 : vector<8x8xi1>, vector<8x8xf32>
    %cst_54 = arith.constant 0.000000e+00 : f32
    %127 = vector.broadcast %cst_54 : f32 to vector<8x8xf32>
    %cst_55 = arith.constant dense<0xFF800000> : vector<8xf32>
    %128 = vector.multi_reduction <maximumf>, %126, %cst_55 [1] : vector<8x8xf32> to vector<8xf32>
    %129 = vector.shape_cast %128 : vector<8xf32> to vector<8x1xf32>
    %130 = vector.broadcast %129 : vector<8x1xf32> to vector<8x8xf32>
    %131 = arith.cmpf oeq, %126, %130 : vector<8x8xf32>
    %c8_i32_56 = arith.constant 8 : i32
    %132 = vector.broadcast %c8_i32_56 : i32 to vector<8x8xi32>
    %133 = arith.select %131, %1, %132 : vector<8x8xi1>, vector<8x8xi32>
    %cst_57 = arith.constant dense<2147483647> : vector<8xi32>
    %134 = vector.multi_reduction <minsi>, %133, %cst_57 [1] : vector<8x8xi32> to vector<8xi32>
    %135 = vector.shape_cast %134 : vector<8xi32> to vector<8x1xi32>
    %136 = vector.broadcast %135 : vector<8x1xi32> to vector<8x8xi32>
    %137 = arith.cmpi eq, %1, %136 : vector<8x8xi32>
    %cst_58 = arith.constant 1.000000e+00 : f32
    %138 = vector.broadcast %cst_58 : f32 to vector<8x8xf32>
    %139 = arith.select %137, %138, %127 : vector<8x8xi1>, vector<8x8xf32>
    %cst_59 = arith.constant 0xFF800000 : f32
    %140 = vector.broadcast %cst_59 : f32 to vector<8x8xf32>
    %141 = arith.select %137, %140, %126 : vector<8x8xi1>, vector<8x8xf32>
    %cst_60 = arith.constant dense<0xFF800000> : vector<8xf32>
    %142 = vector.multi_reduction <maximumf>, %141, %cst_60 [1] : vector<8x8xf32> to vector<8xf32>
    %143 = vector.shape_cast %142 : vector<8xf32> to vector<8x1xf32>
    %144 = vector.broadcast %143 : vector<8x1xf32> to vector<8x8xf32>
    %145 = arith.cmpf oeq, %141, %144 : vector<8x8xf32>
    %c8_i32_61 = arith.constant 8 : i32
    %146 = vector.broadcast %c8_i32_61 : i32 to vector<8x8xi32>
    %147 = arith.select %145, %1, %146 : vector<8x8xi1>, vector<8x8xi32>
    %cst_62 = arith.constant dense<2147483647> : vector<8xi32>
    %148 = vector.multi_reduction <minsi>, %147, %cst_62 [1] : vector<8x8xi32> to vector<8xi32>
    %149 = vector.shape_cast %148 : vector<8xi32> to vector<8x1xi32>
    %150 = vector.broadcast %149 : vector<8x1xi32> to vector<8x8xi32>
    %151 = arith.cmpi eq, %1, %150 : vector<8x8xi32>
    %cst_63 = arith.constant 1.000000e+00 : f32
    %152 = vector.broadcast %cst_63 : f32 to vector<8x8xf32>
    %153 = arith.select %151, %152, %139 : vector<8x8xi1>, vector<8x8xf32>
    %cst_64 = arith.constant 0xFF800000 : f32
    %154 = vector.broadcast %cst_64 : f32 to vector<8x8xf32>
    %155 = arith.select %151, %154, %141 : vector<8x8xi1>, vector<8x8xf32>
    %cst_65 = arith.constant dense<0xFF800000> : vector<8xf32>
    %156 = vector.multi_reduction <maximumf>, %155, %cst_65 [1] : vector<8x8xf32> to vector<8xf32>
    %157 = vector.shape_cast %156 : vector<8xf32> to vector<8x1xf32>
    %158 = vector.broadcast %157 : vector<8x1xf32> to vector<8x8xf32>
    %159 = arith.cmpf oeq, %155, %158 : vector<8x8xf32>
    %c8_i32_66 = arith.constant 8 : i32
    %160 = vector.broadcast %c8_i32_66 : i32 to vector<8x8xi32>
    %161 = arith.select %159, %1, %160 : vector<8x8xi1>, vector<8x8xi32>
    %cst_67 = arith.constant dense<2147483647> : vector<8xi32>
    %162 = vector.multi_reduction <minsi>, %161, %cst_67 [1] : vector<8x8xi32> to vector<8xi32>
    %163 = vector.shape_cast %162 : vector<8xi32> to vector<8x1xi32>
    %164 = vector.broadcast %163 : vector<8x1xi32> to vector<8x8xi32>
    %165 = arith.cmpi eq, %1, %164 : vector<8x8xi32>
    %cst_68 = arith.constant 1.000000e+00 : f32
    %166 = vector.broadcast %cst_68 : f32 to vector<8x8xf32>
    %167 = arith.select %165, %166, %153 : vector<8x8xi1>, vector<8x8xf32>
    %c0_69 = arith.constant 0 : index
    %c0_70 = arith.constant 0 : index
    %168 = vector.load %arg11[%c0_69, %c0_70] : memref<64x32xf32, #tpu.memory_space<vmem>>, vector<64x32xf32>
    %cst_71 = arith.constant dense<0.000000e+00> : vector<8x32xf32>
    %169 = tpu.matmul %114, %168, %cst_71 {dimension_numbers = #tpu.dot_dimension_numbers<[1], [0], [0], [1], [0, 0, 1, 1], [], []>} : vector<8x64xf32>, vector<64x32xf32>, vector<8x32xf32> -> vector<8x32xf32>
    %c0_72 = arith.constant 0 : index
    %c0_73 = arith.constant 0 : index
    %170 = vector.load %arg12[%c0_72, %c0_73] : memref<1x32xf32, #tpu.memory_space<vmem>>, vector<1x32xf32>
    %171 = vector.broadcast %170 : vector<1x32xf32> to vector<8x32xf32>
    %172 = arith.addf %169, %171 : vector<8x32xf32>
    %c0_74 = arith.constant 0 : index
    %c0_75 = arith.constant 0 : index
    %173 = vector.load %arg13[%c0_74, %c0_75] : memref<64x32xf32, #tpu.memory_space<vmem>>, vector<64x32xf32>
    %cst_76 = arith.constant dense<0.000000e+00> : vector<8x32xf32>
    %174 = tpu.matmul %114, %173, %cst_76 {dimension_numbers = #tpu.dot_dimension_numbers<[1], [0], [0], [1], [0, 0, 1, 1], [], []>} : vector<8x64xf32>, vector<64x32xf32>, vector<8x32xf32> -> vector<8x32xf32>
    %c0_77 = arith.constant 0 : index
    %c0_78 = arith.constant 0 : index
    %175 = vector.load %arg14[%c0_77, %c0_78] : memref<1x32xf32, #tpu.memory_space<vmem>>, vector<1x32xf32>
    %176 = vector.broadcast %175 : vector<1x32xf32> to vector<8x32xf32>
    %177 = arith.addf %174, %176 : vector<8x32xf32>
    %c0_79 = arith.constant 0 : index
    %c0_80 = arith.constant 0 : index
    %178 = vector.load %arg15[%c0_79, %c0_80] : memref<32x32xf32, #tpu.memory_space<vmem>>, vector<32x32xf32>
    %cst_81 = arith.constant dense<0.000000e+00> : vector<8x32xf32>
    %179 = tpu.matmul %172, %178, %cst_81 {dimension_numbers = #tpu.dot_dimension_numbers<[1], [0], [0], [1], [0, 0, 1, 1], [], []>} : vector<8x32xf32>, vector<32x32xf32>, vector<8x32xf32> -> vector<8x32xf32>
    %c0_82 = arith.constant 0 : index
    %c0_83 = arith.constant 0 : index
    %180 = vector.load %arg16[%c0_82, %c0_83] : memref<32x32xf32, #tpu.memory_space<vmem>>, vector<32x32xf32>
    %cst_84 = arith.constant dense<0.000000e+00> : vector<8x32xf32>
    %181 = tpu.matmul %177, %180, %cst_84 {dimension_numbers = #tpu.dot_dimension_numbers<[1], [0], [0], [1], [0, 0, 1, 1], [], []>} : vector<8x32xf32>, vector<32x32xf32>, vector<8x32xf32> -> vector<8x32xf32>
    %c0_85 = arith.constant 0 : index
    %c0_86 = arith.constant 0 : index
    %182 = vector.load %arg17[%c0_85, %c0_86] : memref<1x32xf32, #tpu.memory_space<vmem>>, vector<1x32xf32>
    %c0_87 = arith.constant 0 : index
    %c0_88 = arith.constant 0 : index
    %183 = vector.load %arg18[%c0_87, %c0_88] : memref<32x16xf32, #tpu.memory_space<vmem>>, vector<32x16xf32>
    %c0_89 = arith.constant 0 : index
    %c0_90 = arith.constant 0 : index
    %184 = vector.load %arg19[%c0_89, %c0_90] : memref<1x16xf32, #tpu.memory_space<vmem>>, vector<1x16xf32>
    %c0_91 = arith.constant 0 : index
    %c0_92 = arith.constant 0 : index
    %185 = vector.load %arg20[%c0_91, %c0_92] : memref<1x16xf32, #tpu.memory_space<vmem>>, vector<1x16xf32>
    %c0_93 = arith.constant 0 : index
    %c0_94 = arith.constant 0 : index
    %186 = vector.load %arg21[%c0_93, %c0_94] : memref<1x1xf32, #tpu.memory_space<vmem>>, vector<1x1xf32>
    %187 = vector.shape_cast %179 : vector<8x32xf32> to vector<8x1x32xf32>
    %188 = vector.shape_cast %181 : vector<8x32xf32> to vector<1x8x32xf32>
    %189 = vector.broadcast %187 : vector<8x1x32xf32> to vector<8x8x32xf32>
    %190 = vector.broadcast %188 : vector<1x8x32xf32> to vector<8x8x32xf32>
    %191 = arith.addf %189, %190 : vector<8x8x32xf32>
    %192 = vector.shape_cast %182 : vector<1x32xf32> to vector<1x1x32xf32>
    %193 = vector.broadcast %192 : vector<1x1x32xf32> to vector<8x8x32xf32>
    %194 = arith.addf %191, %193 : vector<8x8x32xf32>
    %cst_95 = arith.constant 0.000000e+00 : f32
    %195 = vector.broadcast %cst_95 : f32 to vector<8x8x32xf32>
    %196 = arith.maximumf %194, %195 : vector<8x8x32xf32>
    %197 = vector.shape_cast %196 : vector<8x8x32xf32> to vector<64x32xf32>
    %cst_96 = arith.constant dense<0.000000e+00> : vector<64x16xf32>
    %198 = tpu.matmul %197, %183, %cst_96 {dimension_numbers = #tpu.dot_dimension_numbers<[1], [0], [0], [1], [0, 0, 1, 1], [], []>} : vector<64x32xf32>, vector<32x16xf32>, vector<64x16xf32> -> vector<64x16xf32>
    %199 = vector.broadcast %184 : vector<1x16xf32> to vector<64x16xf32>
    %200 = arith.addf %198, %199 : vector<64x16xf32>
    %cst_97 = arith.constant 0.000000e+00 : f32
    %201 = vector.broadcast %cst_97 : f32 to vector<64x16xf32>
    %202 = arith.maximumf %200, %201 : vector<64x16xf32>
    %203 = vector.broadcast %185 : vector<1x16xf32> to vector<64x16xf32>
    %204 = arith.mulf %202, %203 : vector<64x16xf32>
    %205 = vector.shape_cast %204 : vector<64x16xf32> to vector<8x8x16xf32>
    %cst_98 = arith.constant dense<0.000000e+00> : vector<8x8xf32>
    %206 = vector.multi_reduction <add>, %205, %cst_98 [2] : vector<8x8x16xf32> to vector<8x8xf32>
    %207 = vector.broadcast %186 : vector<1x1xf32> to vector<8x8xf32>
    %208 = arith.addf %206, %207 : vector<8x8xf32>
    %cst_99 = arith.constant 0.000000e+00 : f32
    %209 = vector.broadcast %cst_99 : f32 to vector<8x8xf32>
    %210 = arith.subf %209, %208 : vector<8x8xf32>
    %211 = math.exp %210 : vector<8x8xf32>
    %cst_100 = arith.constant 1.000000e+00 : f32
    %212 = vector.broadcast %cst_100 : f32 to vector<8x8xf32>
    %213 = arith.addf %212, %211 : vector<8x8xf32>
    %214 = tpu.reciprocal %213 {approx = true} : vector<8x8xf32> -> vector<8x8xf32>
    %215 = arith.mulf %214, %167 : vector<8x8xf32>
    %cst_101 = arith.constant 1.250000e-09 : f32
    %216 = vector.broadcast %cst_101 : f32 to vector<8x8xf32>
    %217 = arith.addf %215, %216 : vector<8x8xf32>
    %cst_102 = arith.constant dense<0.000000e+00> : vector<8xf32>
    %218 = vector.multi_reduction <add>, %215, %cst_102 [1] : vector<8x8xf32> to vector<8xf32>
    %219 = vector.shape_cast %218 : vector<8xf32> to vector<8x1xf32>
    %cst_103 = arith.constant 9.99999993E-9 : f32
    %220 = vector.broadcast %cst_103 : f32 to vector<8x1xf32>
    %221 = arith.addf %219, %220 : vector<8x1xf32>
    %222 = tpu.reciprocal %221 {approx = true} : vector<8x1xf32> -> vector<8x1xf32>
    %223 = vector.broadcast %222 : vector<8x1xf32> to vector<8x8xf32>
    %224 = arith.mulf %217, %223 : vector<8x8xf32>
    %c0_104 = arith.constant 0 : index
    %c0_105 = arith.constant 0 : index
    %225 = vector.load %arg22[%c0_104, %c0_105] : memref<8x8xf32, #tpu.memory_space<vmem>>, vector<8x8xf32>
    %cst_106 = arith.constant dense<0xFF800000> : vector<8xf32>
    %226 = vector.multi_reduction <maximumf>, %225, %cst_106 [1] : vector<8x8xf32> to vector<8xf32>
    %227 = vector.shape_cast %226 : vector<8xf32> to vector<8x1xf32>
    %228 = vector.broadcast %227 : vector<8x1xf32> to vector<8x8xf32>
    %229 = arith.subf %225, %228 : vector<8x8xf32>
    %230 = math.exp %229 : vector<8x8xf32>
    %cst_107 = arith.constant dense<0.000000e+00> : vector<8xf32>
    %231 = vector.multi_reduction <add>, %230, %cst_107 [1] : vector<8x8xf32> to vector<8xf32>
    %232 = vector.shape_cast %231 : vector<8xf32> to vector<8x1xf32>
    %233 = tpu.reciprocal %232 {approx = true} : vector<8x1xf32> -> vector<8x1xf32>
    %234 = vector.broadcast %233 : vector<8x1xf32> to vector<8x8xf32>
    %235 = arith.mulf %230, %234 : vector<8x8xf32>
    %236 = arith.addf %113, %224 : vector<8x8xf32>
    %cst_108 = arith.constant 5.000000e-01 : f32
    %237 = vector.broadcast %cst_108 : f32 to vector<8x8xf32>
    %238 = arith.mulf %237, %236 : vector<8x8xf32>
    %cst_109 = arith.constant dense<0.000000e+00> : vector<8x8xf32>
    %239 = tpu.matmul %238, %235, %cst_109 {dimension_numbers = #tpu.dot_dimension_numbers<[1], [0], [0], [1], [0, 0, 1, 1], [], []>} : vector<8x8xf32>, vector<8x8xf32>, vector<8x8xf32> -> vector<8x8xf32>
    %c0_110 = arith.constant 0 : index
    %c0_111 = arith.constant 0 : index
    %240 = vector.load %arg23[%c0_110, %c0_111] : memref<8x8xf32, #tpu.memory_space<vmem>>, vector<8x8xf32>
    %cst_112 = arith.constant 0.899999976 : f32
    %241 = vector.broadcast %cst_112 : f32 to vector<8x8xf32>
    %242 = arith.mulf %240, %241 : vector<8x8xf32>
    %cst_113 = arith.constant 1.000000e-01 : f32
    %243 = vector.broadcast %cst_113 : f32 to vector<8x8xf32>
    %244 = arith.mulf %239, %243 : vector<8x8xf32>
    %245 = arith.addf %242, %244 : vector<8x8xf32>
    %c0_114 = arith.constant 0 : index
    %c0_115 = arith.constant 0 : index
    %246 = vector.load %arg24[%c0_114, %c0_115] : memref<8x8xf32, #tpu.memory_space<vmem>>, vector<8x8xf32>
    tpu.vector_store %arg24[%c0_114, %c0_115], %245 {strides = array<i32>} : memref<8x8xf32, #tpu.memory_space<vmem>>, vector<8x8xf32>,
    return
  }
}

</mosaic_0001>

<bundles_post_ra>
// kernel: tpu_custom_call.1
= control target key start
LH: loop header
LB: loop body
LE: loop exit
PB: predicated region body
PF: predicated region fallthrough
CT: control target
= control target key end

     0   :  { %s5731_s0 = inlined_call_operand.vmem [shape: f32[8,512], index: 0, kind: input, shape index: {}]   ;;  %s5732_s1 = inlined_call_operand.hbm [shape: bf16[512,512], index: 1, kind: input, shape index: {}]   ;;  %s5733_s2 = inlined_call_operand.hbm [shape: f32[1,512], index: 2, kind: input, shape index: {}]   ;;  %s5734_s3 = inlined_call_operand.hbm [shape: bf16[256,256], index: 3, kind: input, shape index: {}]   ;;  %s5735_s4 = inlined_call_operand.hbm [shape: bf16[256,256], index: 4, kind: input, shape index: {}]   ;;  %s5736_s5 = inlined_call_operand.hbm [shape: f32[1,256], index: 5, kind: input, shape index: {}]   ;;  %s5737_s6 = inlined_call_operand.vmem [shape: bf16[256,128], index: 6, kind: input, shape index: {}]   ;;  %s5738_s7 = inlined_call_operand.hbm [shape: f32[1,128], index: 7, kind: input, shape index: {}]   ;;  %s5739_s8 = inlined_call_operand.hbm [shape: f32[1,128], index: 8, kind: input, shape index: {}]   ;;  %s5740_s9 = inlined_call_operand.<no memory space> [shape: f32[1,1], index: 9, kind: input, shape index: {}]   ;;  %s5741_s10 = inlined_call_operand.vmem [shape: f32[8,64], index: 10, kind: input, shape index: {}]   ;;  %s5742_s11 = inlined_call_operand.vmem [shape: f32[64,32], index: 11, kind: input, shape index: {}]   ;;  %s5743_s12 = inlined_call_operand.hbm [shape: f32[1,32], index: 12, kind: input, shape index: {}]   ;;  %s5744_s13 = inlined_call_operand.vmem [shape: f32[64,32], index: 13, kind: input, shape index: {}]   ;;  %s5745_s14 = inlined_call_operand.hbm [shape: f32[1,32], index: 14, kind: input, shape index: {}]   ;;  %s5746_s15 = inlined_call_operand.hbm [shape: f32[32,32], index: 15, kind: input, shape index: {}]   ;;  %s5747_s16 = inlined_call_operand.hbm [shape: f32[32,32], index: 16, kind: input, shape index: {}]   ;;  %s5748_s17 = inlined_call_operand.hbm [shape: f32[1,32], index: 17, kind: input, shape index: {}]   ;;  %s5749_s18 = inlined_call_operand.vmem [shape: f32[32,16], index: 18, kind: input, shape index: {}]   ;;  %s5750_s19 = inlined_call_operand.hbm [shape: f32[1,16], index: 19, kind: input, shape index: {}]   ;;  %s5751_s20 = inlined_call_operand.hbm [shape: f32[1,16], index: 20, kind: input, shape index: {}]   ;;  %s5752_s22 = inlined_call_operand.vmem [shape: f32[8,8], index: 22, kind: input, shape index: {}]   ;;  %s5753_s23 = inlined_call_operand.vmem [shape: f32[8,8], index: 23, kind: input, shape index: {}]   ;;  %s5754_s24 = inlined_call_operand.hbm [shape: f32[8,8], index: 24, kind: output, shape index: {}]   ;;  %s5755_s21 = inlined_call_operand.<no memory space> [shape: f32[1,1], index: 21, kind: input, shape index: {}]  }
   0x1   :  { %5758 = sst [smem:[#allocation37_spill]] %s5731_s0  ;;  %v29_v0 = vstv %s5740_s9  ;;  %v31_v1 = vstv %s5755_s21 }
   0x2   :  { %5759 = sst [smem:[#allocation38_spill]] %s5732_s1  ;;  %30 = vst [vmem:[#allocation2] sm:$0x1] %v29_v0 }
   0x3   :  { %5760 = sst [smem:[#allocation39_spill]] %s5733_s2  ;;  %32 = vst [vmem:[#allocation3] sm:$0x1] %v31_v1 }
   0x4   :  { %5761 = sst [smem:[#allocation40_spill]] %s5734_s3 }
   0x5   :  { %5762 = sst [smem:[#allocation41_spill]] %s5735_s4 }
   0x6   :  { %5763 = sst [smem:[#allocation42_spill]] %s5736_s5 }
   0x7   :  { %5764 = sst [smem:[#allocation43_spill]] %s5737_s6 }
   0x8   :  { %5765 = sst [smem:[#allocation44_spill]] %s5738_s7 }
   0x9   :  { %5766 = sst [smem:[#allocation45_spill]] %s5739_s8 }
   0xa   :  { %33 = vsyncpa [#allocation5], 0 }
   0xb   :  { %34 = vsyncpa [#allocation8], 0 }
   0xc   :  { %35 = vsyncpa [#allocation11], 0 }
   0xd   :  { %36 = vsyncpa [#allocation14], 0 }
   0xe   :  { %37 = vsyncpa [#allocation17], 0 }
   0xf   :  { %38 = vsyncpa [#allocation20], 0 }
  0x10   :  { %39 = vsyncpa [#allocation23], 0 }
  0x11   :  { %40 = vsyncpa [#allocation26], 0  ;;  %s5767_s29 = sld [smem:[#allocation39_spill]] }
  0x17   :  { %s62_s0 = sshll.u32 %s5767_s29, 4  ;;  %s63_s0 = int_to_ptr.hbm [resolvable:$true] %s62_s0 }
  0x18   :  { %41 = vsyncpa [#allocation6], 0  ;;  %s4840_s9 = smov [#allocation7]   ;;  %s5768_s3 = sld [smem:[#allocation41_spill]] }
  0x19   :  { %s64_s7 = sshll.u32 %s4840_s9, 4  ;;  %s4841_s8 = smov [#allocation10]   ;;  %s65_s7 = int_to_ptr.vmem [resolvable:$true] %s64_s7 }
  0x1a   :  { %67 = dma.hbm_to_vmem [thread:$0]  %s63_s0, 64, %s65_s7, [#allocation8]  }
  0x1b   :  { %s87_s4 = sshll.u32 %s4841_s8, 4  ;;  %s5769_s26 = sld [smem:[#allocation44_spill]]  ;;  %s88_s4 = int_to_ptr.vmem [resolvable:$true] %s87_s4 }
  0x1c   :  { %s4842_s28 = smov 128   ;;  %s4843_s6 = smov 8  }
  0x1d   :  { %s140_s0 = sshll.u32 %s5743_s12, 4  ;;  %s4844_s9 = smov [#allocation13]   ;;  %s141_s0 = int_to_ptr.hbm [resolvable:$true] %s140_s0 }
  0x1e   :  { %s85_s25 = sshll.u32 %s5768_s3, 4  ;;  %s114_s7 = sshll.u32 %s4844_s9, 4  ;;  %s86_s25 = int_to_ptr.hbm [resolvable:$true] %s85_s25  ;;  %s115_s7 = int_to_ptr.vmem [resolvable:$true] %s114_s7 }
  0x1f   :  { %93 = dma.hbm_to_vmem [thread:$0]  %s86_s25, 4096, %s88_s4, [#allocation11], %s4842_s28, %s4842_s28, %s4843_s6  }
  0x20   :  { %s4845_s21 = smov [#allocation16]   ;;  %s163_s1 = sshll.u32 %s5746_s15, 4  ;;  %s164_s1 = int_to_ptr.hbm [resolvable:$true] %s163_s1 }
  0x21   :  { %s112_s27 = sshll.u32 %s5769_s26, 4  ;;  %s142_s30 = sshll.u32 %s4845_s21, 4  ;;  %s113_s27 = int_to_ptr.hbm [resolvable:$true] %s112_s27  ;;  %s143_s30 = int_to_ptr.vmem [resolvable:$true] %s142_s30 }
  0x22   :  { %117 = dma.hbm_to_vmem [thread:$0]  %s113_s27, 16, %s115_s7, [#allocation14]  }
  0x23   :  { %145 = dma.hbm_to_vmem [thread:$0]  %s141_s0, 16, %s143_s30, [#allocation17]  }
  0x24   :  { %s190_s4 = sshll.u32 %s5748_s17, 4  ;;  %s4846_s26 = smov [#allocation19]   ;;  %s191_s4 = int_to_ptr.hbm [resolvable:$true] %s190_s4 }
  0x25   :  { %s165_s12 = sshll.u32 %s4846_s26, 4  ;;  %s4847_s27 = smov [#allocation22]   ;;  %s166_s12 = int_to_ptr.vmem [resolvable:$true] %s165_s12 }
  0x26   :  { %171 = dma.hbm_to_vmem [thread:$0]  %s164_s1, 512, %s166_s12, [#allocation20], %s4842_s28, %s4842_s28, %s4843_s6  }
  0x27   :  { %s192_s2 = sshll.u32 %s4847_s27, 4  ;;  %s5770_s15 = sld [smem:[#allocation38_spill]]  ;;  %s193_s2 = int_to_ptr.vmem [resolvable:$true] %s192_s2 }
  0x28   :  { %195 = dma.hbm_to_vmem [thread:$0]  %s191_s4, 16, %s193_s2, [#allocation23]  }
  0x29   :  { %s4848_s0 = smov [#allocation4]   ;;  %s5771_s3 = sld [smem:[#allocation40_spill]] }
  0x2a   :  { %s50_s21 = sshll.u32 %s4848_s0, 4  ;;  %s4849_s5 = smov 256   ;;  %s51_s21 = int_to_ptr.vmem [resolvable:$true] %s50_s21 }
  0x2b   :  { %s4850_s25 = smov 16   ;;  %s4851_s1 = smov [#allocation9]  }
  0x2c   :  { %s74_s26 = sshll.u32 %s4851_s1, 4  ;;  %s5772_s29 = sld [smem:[#allocation42_spill]]  ;;  %s75_s26 = int_to_ptr.vmem [resolvable:$true] %s74_s26 }
  0x2d   :  { %s48_s7 = sshll.u32 %s5770_s15, 4  ;;  %s5773_s15 = sld [smem:[#allocation45_spill]]  ;;  %s49_s7 = int_to_ptr.hbm [resolvable:$true] %s48_s7 }
  0x2e   :  { %56 = dma.hbm_to_vmem [thread:$0]  %s49_s7, 16384, %s51_s21, [#allocation5], %s4849_s5, %s4849_s5, %s4850_s25  }
  0x2f   :  { %s72_s8 = sshll.u32 %s5771_s3, 4  ;;  %s4852_s17 = smov [#allocation12]   ;;  %s73_s8 = int_to_ptr.hbm [resolvable:$true] %s72_s8 }
  0x30   :  { %80 = dma.hbm_to_vmem [thread:$0]  %s73_s8, 4096, %s75_s26, [#allocation8], %s4842_s28, %s4842_s28, %s4843_s6  }
  0x31   :  { %s101_s30 = sshll.u32 %s4852_s17, 4  ;;  %s4853_s7 = smov [#allocation15]   ;;  %s102_s30 = int_to_ptr.vmem [resolvable:$true] %s101_s30 }
  0x32   :  { %s99_s9 = sshll.u32 %s5772_s29, 4  ;;  %s125_s21 = sshll.u32 %s4853_s7, 4  ;;  %s100_s9 = int_to_ptr.hbm [resolvable:$true] %s99_s9  ;;  %s126_s21 = int_to_ptr.vmem [resolvable:$true] %s125_s21 }
  0x33   :  { %s123_s0 = sshll.u32 %s5773_s15, 4  ;;  %s153_s25 = sshll.u32 %s5745_s14, 4  ;;  %s124_s0 = int_to_ptr.hbm [resolvable:$true] %s123_s0  ;;  %s154_s25 = int_to_ptr.hbm [resolvable:$true] %s153_s25 }
  0x34   :  { %104 = dma.hbm_to_vmem [thread:$0]  %s100_s9, 32, %s102_s30, [#allocation11]  }
  0x35   :  { %128 = dma.hbm_to_vmem [thread:$0]  %s124_s0, 16, %s126_s21, [#allocation14]  }
  0x36   :  { %s176_s26 = sshll.u32 %s5747_s16, 4  ;;  %s4854_s12 = smov [#allocation18]   ;;  %s177_s26 = int_to_ptr.hbm [resolvable:$true] %s176_s26 }
  0x37   :  { %s155_s27 = sshll.u32 %s4854_s12, 4  ;;  %s4855_s29 = smov [#allocation21]   ;;  %s156_s27 = int_to_ptr.vmem [resolvable:$true] %s155_s27 }
  0x38   :  { %158 = dma.hbm_to_vmem [thread:$0]  %s154_s25, 16, %s156_s27, [#allocation17]  }
  0x39   :  { %s178_s9 = sshll.u32 %s4855_s29, 4  ;;  %s203_s15 = sshll.u32 %s5750_s19, 4  ;;  %s179_s9 = int_to_ptr.vmem [resolvable:$true] %s178_s9  ;;  %s204_s15 = int_to_ptr.hbm [resolvable:$true] %s203_s15 }
  0x3a   :  { %184 = dma.hbm_to_vmem [thread:$0]  %s177_s26, 512, %s179_s9, [#allocation20], %s4842_s28, %s4842_s28, %s4843_s6  }
  0x3b   :  { %s214_s16 = sshll.u32 %s5751_s20, 4  ;;  %s4856_s17 = smov [#allocation24]   ;;  %s215_s16 = int_to_ptr.hbm [resolvable:$true] %s214_s16 }
  0x3c   :  { %s205_s30 = sshll.u32 %s4856_s17, 4  ;;  %s4857_s7 = smov [#allocation25]   ;;  %s206_s30 = int_to_ptr.vmem [resolvable:$true] %s205_s30 }
  0x3d   :  { %208 = dma.hbm_to_vmem [thread:$0]  %s204_s15, 16, %s206_s30, [#allocation23]  }
  0x3e   :  { %s216_s21 = sshll.u32 %s4857_s7, 4  ;;  %s217_s21 = int_to_ptr.vmem [resolvable:$true] %s216_s21 }
  0x3f   :  { %219 = dma.hbm_to_vmem [thread:$0]  %s215_s16, 16, %s217_s21, [#allocation26]  }
  0x40   :  { %4822 = dma.done.wait [#allocation5], 16384  }
  0x41   :  { %4823 = vsyncadd [#allocation5], 4294950912 }
  0x42   :  { %4824 = dma.done.wait [#allocation8], 4160  }
  0x43   :  { %4825 = vsyncadd [#allocation8], 4294963136 }
  0x44   :  { %4826 = dma.done.wait [#allocation11], 4128  }
  0x45   :  { %4827 = vsyncadd [#allocation11], 4294963168 }
  0x46   :  { %4828 = dma.done.wait [#allocation14], 32  }
  0x47   :  { %4829 = vsyncadd [#allocation14], 4294967264 }
  0x48   :  { %4830 = dma.done.wait [#allocation17], 32  }
  0x49   :  { %4831 = vsyncadd [#allocation17], 4294967264 }
  0x4a   :  { %4832 = dma.done.wait [#allocation20], 1024  }
  0x4b   :  { %4833 = vsyncadd [#allocation20], 4294966272 }
  0x4c   :  { %4834 = dma.done.wait [#allocation23], 32  }
  0x4d   :  { %4835 = vsyncadd [#allocation23], 4294967264 }
  0x4e   :  { %4836 = dma.done.wait [#allocation26], 16  }
  0x4f   :  { %4837 = vsyncadd [#allocation26], 4294967280  ;;  %s5774_s28 = sld [smem:[#allocation37_spill]]  ;;  %v3364_v17 = vld [vmem:[#allocation4 + $0xe0] sm:$0xf]  ;;  %vm2510_vm3 = vcmask 523264  }
  0x50   :  { %v4127_v18 = vld [vmem:[#allocation4 + $0xec] sm:$0xf0]  ;;  %v3492_v21 = vld [vmem:[#allocation4 + $0x1e0] sm:$0xf]  ;;  %vm396_vm5 = vcmask 64512   ;;  %s5775_s9 = sld [smem:[#allocation43_spill]] }
  0x51   :  { %v3365_v19 = vor.u32 %v4127_v18, %v3364_v17  ;;  %v4159_v22 = vld [vmem:[#allocation4 + $0x1ec] sm:$0xf0]  ;;  %v3348_v25 = vld [vmem:[#allocation4 + $0xc0] sm:$0xf]  ;;  %vm1986_vm10 = vcmask 1040384   ;;  %vm1988_vm11 = vcmask 1041409  }
  0x52   :  { %v3493_v23 = vor.u32 %v4159_v22, %v3492_v21  ;;  %v4123_v26 = vld [vmem:[#allocation4 + $0xcc] sm:$0xf0]  ;;  %v3476_v29 = vld [vmem:[#allocation4 + $0x1c0] sm:$0xf]  ;;  %vm1991_vm12 = vcmask 1042434   ;;  %vm1994_vm13 = vcmask 1043459  }
  0x53   :  { %1247 = vmatpush.bf16.msra.mxu0 %v3365_v19  ;;  %v3349_v27 = vor.u32 %v4123_v26, %v3348_v25  ;;  %v4155_v30 = vld [vmem:[#allocation4 + $0x1cc] sm:$0xf0]  ;;  %v3620_v31 = vld [vmem:[#allocation4 + $0x2e0] sm:$0xf]  ;;  %v4189_v25 = vld [vmem:[#allocation4 + $0x2e4] sm:$0xf] }
  0x54   :  { %1260 = vmatpush.bf16.msra.mxu1 %v3493_v23  ;;  %v4191_v32 = vld [vmem:[#allocation4 + $0x2ec] sm:$0xf0]  ;;  %v3477_v33 = vor.u32 %v4155_v30, %v3476_v29  ;;  %v3332_v35 = vld [vmem:[#allocation4 + $0xa0] sm:$0xf]  ;;  %v3622_v26 = vld [vmem:[#allocation4 + $0x2f0] sm:$0xf0] }
  0x55   :  { %v5049_v2 = vld [vmem:[%s5774_s28] sm:$0xff]  ;;  %v5054_v3 = vld [vmem:[%s5774_s28 + $0x8] sm:$0xff]  ;;  %v5059_v4 = vld [vmem:[%s5774_s28 + $0x10] sm:$0xff]  ;;  %v3621_v39 = vor.u32 %v4191_v32, %v3620_v31  ;;  %vm1997_vm14 = vcmask 1044484   ;;  %vm2000_vm15 = vcmask 1045509   ;;  %s4860_s4 = smov [#allocation27]  }
  0x56   :  { %v5064_v5 = vld [vmem:[%s5774_s28 + $0x18] sm:$0xff]  ;;  %v290_v6 = vmul.f32 %v5049_v2, %v5049_v2  ;;  %v291_v7 = vmul.f32 %v5054_v3, %v5054_v3  ;;  %v292_v8 = vmul.f32 %v5059_v4, %v5059_v4  ;;  %v4119_v36 = vld [vmem:[#allocation4 + $0xac] sm:$0xf0]  ;;  %v3604_v40 = vld [vmem:[#allocation4 + $0x2c0] sm:$0xf]  ;;  %s3231_s2 = sshll.u32 %s4860_s4, 4  ;;  %s3232_s2 = int_to_ptr.vmem [resolvable:$true] %s3231_s2 }
  0x57   :  { %v293_v9 = vmul.f32 %v5064_v5, %v5064_v5  ;;  %1248 = vmatpush.bf16.msra.mxu0 %v3349_v27  ;;  %v3333_v37 = vor.u32 %v4119_v36, %v3332_v35  ;;  %v3460_v41 = vld [vmem:[#allocation4 + $0x1a0] sm:$0xf]  ;;  %v4151_v42 = vld [vmem:[#allocation4 + $0x1ac] sm:$0xf0]  ;;  %v4125_v32 = vld [vmem:[#allocation4 + $0xe4] sm:$0xf] }
  0x58   :  { %v294_v10 = vadd.f32 %v291_v7, %v290_v6  ;;  %1261 = vmatpush.bf16.msra.mxu1 %v3477_v33  ;;  %v4187_v46 = vld [vmem:[#allocation4 + $0x2cc] sm:$0xf0]  ;;  %v3316_v47 = vld [vmem:[#allocation4 + $0x80] sm:$0xf]  ;;  %v3461_v49 = vor.u32 %v4151_v42, %v3460_v41  ;;  %v3366_v33 = vld [vmem:[#allocation4 + $0xf0] sm:$0xf0] }
  0x59   :  { %v4115_v48 = vld [vmem:[#allocation4 + $0x8c] sm:$0xf0]  ;;  %v3605_v51 = vor.u32 %v4187_v46, %v3604_v40  ;;  %v3588_v52 = vld [vmem:[#allocation4 + $0x2a0] sm:$0xf]  ;;  %v3369_v36 = vor.u32 %v4125_v32, %v3366_v33  ;;  %v4157_v40 = vld [vmem:[#allocation4 + $0x1e4] sm:$0xf] }
  0x5a   :  { %v295_v11 = vadd.f32 %v294_v10, %v292_v8  ;;  %v3317_v50 = vor.u32 %v4115_v48, %v3316_v47  ;;  %v3444_v53 = vld [vmem:[#allocation4 + $0x180] sm:$0xf]  ;;  %v4147_v54 = vld [vmem:[#allocation4 + $0x18c] sm:$0xf0]  ;;  %v3494_v41 = vld [vmem:[#allocation4 + $0x1f0] sm:$0xf0] }
  0x5b   :  { %1249 = vmatpush.bf16.msra.mxu0 %v3333_v37  ;;  %v4183_v56 = vld [vmem:[#allocation4 + $0x2ac] sm:$0xf0]  ;;  %v3445_v57 = vor.u32 %v4147_v54, %v3444_v53  ;;  %v3300_v58 = vld [vmem:[#allocation4 + $0x60] sm:$0xf]  ;;  %v4185_v42 = vld [vmem:[#allocation4 + $0x2c4] sm:$0xf] }
  0x5c   :  { %v296_v12 = vadd.f32 %v295_v11, %v293_v9  ;;  %1262 = vmatpush.bf16.msra.mxu1 %v3461_v49  ;;  %v4111_v59 = vld [vmem:[#allocation4 + $0x6c] sm:$0xf0]  ;;  %v3589_v61 = vor.u32 %v4183_v56, %v3588_v52  ;;  %v3572_v62 = vld [vmem:[#allocation4 + $0x280] sm:$0xf]  ;;  %v4121_v46 = vld [vmem:[#allocation4 + $0xc4] sm:$0xf] }
  0x5d   :  { %v3301_v60 = vor.u32 %v4111_v59, %v3300_v58  ;;  %v3428_v63 = vld [vmem:[#allocation4 + $0x160] sm:$0xf]  ;;  %v4143_v0 = vld [vmem:[#allocation4 + $0x16c] sm:$0xf0]  ;;  %v3350_v47 = vld [vmem:[#allocation4 + $0xd0] sm:$0xf0] }
  0x5e   :  { %297 = vadd.xlane.f32.xlu0 %v296_v12  ;;  %v4179_v1 = vld [vmem:[#allocation4 + $0x28c] sm:$0xf0]  ;;  %v3429_v6 = vor.u32 %v4143_v0, %v3428_v63  ;;  %v3284_v7 = vld [vmem:[#allocation4 + $0x40] sm:$0xf]  ;;  %v4153_v52 = vld [vmem:[#allocation4 + $0x1c4] sm:$0xf] }
  0x5f   :  { %1250 = vmatpush.bf16.msra.mxu0 %v3317_v50  ;;  %v4107_v8 = vld [vmem:[#allocation4 + $0x4c] sm:$0xf0]  ;;  %v3573_v10 = vor.u32 %v4179_v1, %v3572_v62  ;;  %v3556_v11 = vld [vmem:[#allocation4 + $0x260] sm:$0xf]  ;;  %v3478_v53 = vld [vmem:[#allocation4 + $0x1d0] sm:$0xf0] }
  0x60   :  { %1263 = vmatpush.bf16.msra.mxu1 %v3445_v57  ;;  %v3285_v9 = vor.u32 %v4107_v8, %v3284_v7  ;;  %v3412_v12 = vld [vmem:[#allocation4 + $0x140] sm:$0xf]  ;;  %v4103_v17 = vld [vmem:[#allocation4 + $0x2c] sm:$0xf0]  ;;  %v4181_v54 = vld [vmem:[#allocation4 + $0x2a4] sm:$0xf] }
  0x61   :  { %v3540_v19 = vld [vmem:[#allocation4 + $0x240] sm:$0xf]  ;;  %v4171_v21 = vld [vmem:[#allocation4 + $0x24c] sm:$0xf0]  ;;  %v3590_v58 = vld [vmem:[#allocation4 + $0x2b0] sm:$0xf0] }
  0x62   :  { %v3396_v22 = vld [vmem:[#allocation4 + $0x120] sm:$0xf]  ;;  %v4135_v23 = vld [vmem:[#allocation4 + $0x12c] sm:$0xf0]  ;;  %v3593_v59 = vor.u32 %v4181_v54, %v3590_v58  ;;  %v4149_v1 = vld [vmem:[#allocation4 + $0x1a4] sm:$0xf] }
  0x63   :  { %1251 = vmatpush.bf16.msra.mxu0 %v3301_v60  ;;  %v3252_v27 = vld [vmem:[#allocation4] sm:$0xf]  ;;  %v4099_v29 = vld [vmem:[#allocation4 + $0xc] sm:$0xf0]  ;;  %v4117_v60 = vld [vmem:[#allocation4 + $0xa4] sm:$0xf] }
  0x64   :  { %1264 = vmatpush.bf16.msra.mxu1 %v3429_v6  ;;  %v3524_v30 = vld [vmem:[#allocation4 + $0x220] sm:$0xf]  ;;  %v3253_v31 = vor.u32 %v4099_v29, %v3252_v27  ;;  %v4167_v35 = vld [vmem:[#allocation4 + $0x22c] sm:$0xf0]  ;;  %v3462_v6 = vld [vmem:[#allocation4 + $0x1b0] sm:$0xf0] }
  0x65   :  { %v3380_v37 = vld [vmem:[#allocation4 + $0x100] sm:$0xf]  ;;  %v3525_v48 = vor.u32 %v4167_v35, %v3524_v30  ;;  %v4163_v50 = vld [vmem:[#allocation4 + $0x20c] sm:$0xf0]  ;;  %v4177_v7 = vld [vmem:[#allocation4 + $0x284] sm:$0xf] }
  0x66   :  { %v3508_v49 = vld [vmem:[#allocation4 + $0x200] sm:$0xf]  ;;  %v4223_v57 = vld [vmem:[#allocation4 + $0x3ec] sm:$0xf0]  ;;  %v3430_v32 = vld [vmem:[#allocation4 + $0x170] sm:$0xf0] }
  0x67   :  { %1252 = vmatpush.bf16.msra.mxu0 %v3285_v9  ;;  %v3748_v56 = vld [vmem:[#allocation4 + $0x3e0] sm:$0xf]  ;;  %v3509_v62 = vor.u32 %v4163_v50, %v3508_v49  ;;  %v4219_v9 = vld [vmem:[#allocation4 + $0x3cc] sm:$0xf0]  ;;  %v4169_v33 = vld [vmem:[#allocation4 + $0x244] sm:$0xf] }
  0x68   :  { %v3749_v0 = vor.u32 %v4223_v57, %v3748_v56  ;;  %v3732_v8 = vld [vmem:[#allocation4 + $0x3c0] sm:$0xf]  ;;  %v4211_v29 = vld [vmem:[#allocation4 + $0x38c] sm:$0xf0]  ;;  %v3542_v35 = vld [vmem:[#allocation4 + $0x250] sm:$0xf0] }
  0x69   :  { %v3270_v49 = vld [vmem:[#allocation4 + $0x30] sm:$0xf0]  ;;  %v4133_v56 = vld [vmem:[#allocation4 + $0x124] sm:$0xf]  ;;  %s3233_s0 = sshll.u32 %s5754_s24, 4  ;;  %s3234_s0 = int_to_ptr.hbm [resolvable:$true] %s3233_s0 }
  0x6a   :  { %v3398_v57 = vld [vmem:[#allocation4 + $0x130] sm:$0xf0] }
  0x6b   :  { %v3401_v58 = vor.u32 %v4133_v56, %v3398_v57  ;;  %v3452_v57 = vld [vmem:[#allocation4 + $0x188] sm:$0xf] }
  0xd1   :  { %v298_v13 = vpop.xlane.xlu0 %297 }
  0xd2   :  { %v299_v14 = vmax.f32 %v298_v13, 1e-24  ;;  %v4139_v13 = vld [vmem:[#allocation4 + $0x14c] sm:$0xf0] }
  0xd4   :  { %4385 = vrsqrt.f32 %v299_v14  ;;  %vm306_vm1 = vweird.f32 %v299_v14 }
  0xda   :  { %v4386_v15 = vpop.eup %4385 }
  0xdb   :  { %v301_v16 = vmul.f32 %v4386_v15, %v299_v14  ;;  %vm307_vm0 = vweird.f32 %v4386_v15  ;;  %v4175_v14 = vld [vmem:[#allocation4 + $0x26c] sm:$0xf0] }
  0xdc   :  { %vm308_vm2 = vmor %vm306_vm1, %vm307_vm0  ;;  %vm2003_vm0 = vcmask 1046534   ;;  %vm2006_vm1 = vcmask 1046528  }
  0xdd   :  { %v302_v20 = vmul.f32 %v4386_v15, %v301_v16  ;;  %v3268_v16 = vld [vmem:[#allocation4 + $0x20] sm:$0xf] }
  0xde   :  { %v3269_v18 = vor.u32 %v4103_v17, %v3268_v16  ;;  %v3318_v16 = vld [vmem:[#allocation4 + $0x90] sm:$0xf0]  ;;  %v3716_v17 = vld [vmem:[#allocation4 + $0x3a0] sm:$0xf] }
  0xdf   :  { %v303_v24 = vmul.f32 0.5, %v302_v20  ;;  %v3557_v20 = vor.u32 %v4175_v14, %v3556_v11  ;;  %v3465_v11 = vor.u32 %v4149_v1, %v3462_v6  ;;  %v3254_v1 = vld [vmem:[#allocation4 + $0x10] sm:$0xf0]  ;;  %v3652_v6 = vld [vmem:[#allocation4 + $0x320] sm:$0xf] }
  0xe0   :  { %1253 = vmatpush.bf16.msra.mxu0 %v3269_v18  ;;  %v4215_v18 = vld [vmem:[#allocation4 + $0x3ac] sm:$0xf0] }
  0xe1   :  { %v304_v28 = vsub.f32 1.5, %v303_v24  ;;  %v3397_v24 = vor.u32 %v4135_v23, %v3396_v22  ;;  %v3446_v22 = vld [vmem:[#allocation4 + $0x190] sm:$0xf0]  ;;  %v3717_v30 = vor.u32 %v4215_v18, %v3716_v17  ;;  %v3500_v18 = vld [vmem:[#allocation4 + $0x1e8] sm:$0xf] }
  0xe3   :  { %v305_v34 = vmul.f32 %v4386_v15, %v304_v28  ;;  %v3625_v28 = vor.u32 %v4189_v25, %v3622_v26  ;;  %v4109_v25 = vld [vmem:[#allocation4 + $0x64] sm:$0xf]  ;;  %v3302_v26 = vld [vmem:[#allocation4 + $0x70] sm:$0xf0] }
  0xe4   :  { %1254 = vmatpush.bf16.msra.mxu0 %v3253_v31  ;;  %v4141_v31 = vld [vmem:[#allocation4 + $0x164] sm:$0xf] }
  0xe5   :  { %v309_v38 = vsel %vm308_vm2, %v4386_v15, %v305_v34  ;;  %v3413_v15 = vor.u32 %v4139_v13, %v3412_v12  ;;  %v3541_v34 = vor.u32 %v4171_v21, %v3540_v19  ;;  %v3574_v12 = vld [vmem:[#allocation4 + $0x290] sm:$0xf0]  ;;  %v5088_v13 = vpack.c.bf16 %v5059_v4, %v5059_v4  ;;  %v4145_v21 = vld [vmem:[#allocation4 + $0x184] sm:$0xf] }
  0xe6   :  { %v310_v43 = vmul.f32 %v309_v38, %v5049_v2  ;;  %v313_v44 = vmul.f32 %v309_v38, %v5064_v5  ;;  %v311_v45 = vmul.f32 %v309_v38, %v5054_v3  ;;  %v5078_v55 = vmul.f32 %v309_v38, %v5059_v4  ;;  %v4131_v38 = vld [vmem:[#allocation4 + $0x10c] sm:$0xf0]  ;;  %v4173_v4 = vld [vmem:[#allocation4 + $0x264] sm:$0xf] }
  0xe7   :  { %1265 = vmatpush.bf16.msra.mxu1 %v3413_v15  ;;  %v3577_v14 = vor.u32 %v4177_v7, %v3574_v12  ;;  %v4113_v15 = vld [vmem:[#allocation4 + $0x84] sm:$0xf]  ;;  %v5093_v19 = vpack.c.bf16 %v5054_v3, %v5054_v3  ;;  %v3449_v23 = vor.u32 %v4145_v21, %v3446_v22  ;;  %v3305_v3 = vor.u32 %v4109_v25, %v3302_v26  ;;  %v4199_v12 = vld [vmem:[#allocation4 + $0x32c] sm:$0xf0]  ;;  %v4188_v22 = vld [vmem:[#allocation4 + $0x2d4] sm:$0xf0] }
  0xe8   :  { %329 = vmatpush.xpose.msra.mxu2 %v310_v43  ;;  %389 = vmatpush.xpose.msra.mxu3 %v313_v44  ;;  %v3653_v25 = vor.u32 %v4199_v12, %v3652_v6  ;;  %v3636_v26 = vld [vmem:[#allocation4 + $0x300] sm:$0xf]  ;;  %v4172_v12 = vld [vmem:[#allocation4 + $0x254] sm:$0xf0] }
  0xe9   :  { %1299 = vmatpush.bf16.msrb.mxu0 %v3369_v36  ;;  %v4105_v36 = vld [vmem:[#allocation4 + $0x44] sm:$0xf] }
  0xeb   :  { %330 = vmatmul.f32.vlgmr.msra.gmra.mxu2 %v310_v43  ;;  %390 = vmatmul.f32.vlgmr.msra.gmra.mxu3 %v313_v44  ;;  %v3497_v43 = vor.u32 %v4157_v40, %v3494_v41  ;;  %v3606_v44 = vld [vmem:[#allocation4 + $0x2d0] sm:$0xf0]  ;;  %v3684_v40 = vld [vmem:[#allocation4 + $0x360] sm:$0xf]  ;;  %v4207_v41 = vld [vmem:[#allocation4 + $0x36c] sm:$0xf0] }
  0xec   :  { %349 = vmatpush.xpose.msrb.mxu2 %v311_v45  ;;  %1273 = vmatpush.bf16.msrb.mxu3 %v3621_v39  ;;  %v3381_v39 = vor.u32 %v4131_v38, %v3380_v37  ;;  %v3286_v37 = vld [vmem:[#allocation4 + $0x50] sm:$0xf0]  ;;  %v3545_v38 = vor.u32 %v4169_v33, %v3542_v35  ;;  %v3685_v54 = vor.u32 %v4207_v41, %v3684_v40  ;;  %v3468_v41 = vld [vmem:[#allocation4 + $0x1a8] sm:$0xf] }
  0xed   :  { %1266 = vmatpush.bf16.msra.mxu1 %v3397_v24  ;;  %v3558_v24 = vld [vmem:[#allocation4 + $0x270] sm:$0xf0] }
  0xee   :  { %v3561_v27 = vor.u32 %v4173_v4, %v3558_v24  ;;  %v4124_v24 = vld [vmem:[#allocation4 + $0xd4] sm:$0xf0] }
  0xf0   :  { %369 = vmatpush.xpose.msra.mxu2 %v5078_v55  ;;  %1274 = vmatpush.bf16.msrb.mxu3 %v3605_v51  ;;  %v3353_v51 = vor.u32 %v4121_v46, %v3350_v47  ;;  %v3526_v47 = vld [vmem:[#allocation4 + $0x230] sm:$0xf0] }
  0xf1   :  { %1267 = vmatpush.bf16.msra.mxu1 %v3381_v39  ;;  %v3289_v39 = vor.u32 %v4105_v36, %v3286_v37  ;;  %v3340_v36 = vld [vmem:[#allocation4 + $0xa8] sm:$0xf]  ;;  %v4120_v37 = vld [vmem:[#allocation4 + $0xb4] sm:$0xf0] }
  0xf2   :  { %1300 = vmatpush.bf16.msrb.mxu0 %v3353_v51 }
  0xf3   :  { %350 = vmatmul.f32.vlgmr.msrb.gmra.mxu2 %v311_v45  ;;  %v3609_v45 = vor.u32 %v4185_v42, %v3606_v44  ;;  %v3414_v44 = vld [vmem:[#allocation4 + $0x150] sm:$0xf0] }
  0xf4   :  { %1275 = vmatpush.bf16.msrb.mxu3 %v3589_v61  ;;  %1325 = vmatpush.bf16.msrb.mxu2 %v3625_v28  ;;  %v3334_v61 = vld [vmem:[#allocation4 + $0xb0] sm:$0xf0]  ;;  %v3700_v28 = vld [vmem:[#allocation4 + $0x380] sm:$0xf] }
  0xf5   :  { %1312 = vmatpush.bf16.msrb.mxu1 %v3497_v43  ;;  %v3337_v63 = vor.u32 %v4117_v60, %v3334_v61  ;;  %v3701_v42 = vor.u32 %v4211_v29, %v3700_v28  ;;  %v4137_v43 = vld [vmem:[#allocation4 + $0x144] sm:$0xf]  ;;  %v3628_v60 = vld [vmem:[#allocation4 + $0x2e8] sm:$0xf]  ;;  %v4192_v61 = vld [vmem:[#allocation4 + $0x2f4] sm:$0xf0] }
  0xf6   :  { %1268 = vmatmul.bf16.vlgmr.msra.gmra.mxu1 %v5093_v19  ;;  %v3417_v46 = vor.u32 %v4137_v43, %v3414_v44  ;;  %v3484_v28 = vld [vmem:[#allocation4 + $0x1c8] sm:$0xf]  ;;  %v4156_v29 = vld [vmem:[#allocation4 + $0x1d4] sm:$0xf0]  ;;  %v4217_v44 = vld [vmem:[#allocation4 + $0x3c4] sm:$0xf] }
  0xf7   :  { %1301 = vmatpush.bf16.msrb.mxu0 %v3337_v63  ;;  %v3629_v63 = vor.u32 %v4192_v61, %v3628_v60  ;;  %v3485_v33 = vor.u32 %v4156_v29, %v3484_v28  ;;  %v3580_v43 = vld [vmem:[#allocation4 + $0x288] sm:$0xf]  ;;  %v4176_v60 = vld [vmem:[#allocation4 + $0x274] sm:$0xf0]  ;;  %v4201_v29 = vld [vmem:[#allocation4 + $0x344] sm:$0xf] }
  0xf8   :  { %1276 = vmatpush.bf16.msrb.mxu3 %v3573_v10  ;;  %1326 = vmatpush.bf16.msrb.mxu2 %v3609_v45  ;;  %v5084_v10 = vpack.c.bf16 %v5049_v2, %v5049_v2  ;;  %v3321_v2 = vor.u32 %v4113_v15, %v3318_v16  ;;  %v4165_v45 = vld [vmem:[#allocation4 + $0x224] sm:$0xf]  ;;  %v3382_v16 = vld [vmem:[#allocation4 + $0x110] sm:$0xf0]  ;;  %v3308_v61 = vld [vmem:[#allocation4 + $0x68] sm:$0xf] }
  0xf9   :  { %v3529_v50 = vor.u32 %v4165_v45, %v3526_v47  ;;  %v4129_v15 = vld [vmem:[#allocation4 + $0x104] sm:$0xf]  ;;  %v3734_v45 = vld [vmem:[#allocation4 + $0x3d0] sm:$0xf0]  ;;  %v4180_v47 = vld [vmem:[#allocation4 + $0x294] sm:$0xf0] }
  0xfa   :  { %1255 = vmatmul.bf16.vlgmr.msra.gmra.mxu0 %v5084_v10  ;;  %v3385_v17 = vor.u32 %v4129_v15, %v3382_v16  ;;  %v3737_v56 = vor.u32 %v4217_v44, %v3734_v45  ;;  %v4108_v15 = vld [vmem:[#allocation4 + $0x54] sm:$0xf0]  ;;  %v3388_v44 = vld [vmem:[#allocation4 + $0x108] sm:$0xf] }
  0xfb   :  { %370 = vmatmul.f32.vlgmr.msra.gmra.mxu2 %v5078_v55  ;;  %v3481_v55 = vor.u32 %v4153_v52, %v3478_v53  ;;  %1302 = vmatpush.bf16.msrb.mxu0 %v3321_v2  ;;  %v3668_v52 = vld [vmem:[#allocation4 + $0x340] sm:$0xf]  ;;  %v4203_v53 = vld [vmem:[#allocation4 + $0x34c] sm:$0xf0]  ;;  %v4160_v2 = vld [vmem:[#allocation4 + $0x1f4] sm:$0xf0] }
  0xfc   :  { %1277 = vmatpush.bf16.msrb.mxu3 %v3557_v20  ;;  %1327 = vmatpush.bf16.msrb.mxu2 %v3593_v59  ;;  %v3733_v20 = vor.u32 %v4219_v9, %v3732_v8  ;;  %v3510_v59 = vld [vmem:[#allocation4 + $0x210] sm:$0xf0]  ;;  %v3372_v8 = vld [vmem:[#allocation4 + $0xe8] sm:$0xf]  ;;  %v4128_v9 = vld [vmem:[#allocation4 + $0xf4] sm:$0xf0]  ;;  %v3501_v21 = vor.u32 %v4160_v2, %v3500_v18 }
  0xfd   :  { %1313 = vmatpush.bf16.msrb.mxu1 %v3481_v55  ;;  %v4161_v55 = vld [vmem:[#allocation4 + $0x204] sm:$0xf]  ;;  %v3686_v2 = vld [vmem:[#allocation4 + $0x370] sm:$0xf0]  ;;  %v4104_v28 = vld [vmem:[#allocation4 + $0x34] sm:$0xf0] }
  0xfe   :  { %v4205_v18 = vld [vmem:[#allocation4 + $0x364] sm:$0xf]  ;;  %v4132_v45 = vld [vmem:[#allocation4 + $0x114] sm:$0xf0] }
  0xff   :  { %1303 = vmatpush.bf16.msrb.mxu0 %v3305_v3 }
 0x100   :  { %1278 = vmatpush.bf16.msrb.mxu3 %v3541_v34  ;;  %1328 = vmatpush.bf16.msrb.mxu2 %v3577_v14  ;;  %v3433_v34 = vor.u32 %v4141_v31, %v3430_v32  ;;  %v3373_v14 = vor.u32 %v4128_v9, %v3372_v8  ;;  %v4221_v31 = vld [vmem:[#allocation4 + $0x3e4] sm:$0xf]  ;;  %v3750_v32 = vld [vmem:[#allocation4 + $0x3f0] sm:$0xf0]  ;;  %v4144_v8 = vld [vmem:[#allocation4 + $0x174] sm:$0xf0] }
 0x101   :  { %1314 = vmatpush.bf16.msrb.mxu1 %v3465_v11  ;;  %v3669_v11 = vor.u32 %v4203_v53, %v3668_v52  ;;  %v3753_v40 = vor.u32 %v4221_v31, %v3750_v32  ;;  %v4213_v52 = vld [vmem:[#allocation4 + $0x3a4] sm:$0xf]  ;;  %v3718_v53 = vld [vmem:[#allocation4 + $0x3b0] sm:$0xf0]  ;;  %v3548_v9 = vld [vmem:[#allocation4 + $0x248] sm:$0xf]  ;;  %v3689_v32 = vor.u32 %v4205_v18, %v3686_v2 }
 0x102   :  { %v3721_v6 = vor.u32 %v4213_v52, %v3718_v53  ;;  %v3549_v16 = vor.u32 %v4172_v12, %v3548_v9  ;;  %v3638_v52 = vld [vmem:[#allocation4 + $0x310] sm:$0xf0]  ;;  %v4190_v53 = vld [vmem:[#allocation4 + $0x2ec] sm:$0xf]  ;;  %v3358_v12 = vld [vmem:[#allocation4 + $0xd8] sm:$0xf0] }
 0x103   :  { %1304 = vmatpush.bf16.msrb.mxu0 %v3289_v39  ;;  %v3341_v39 = vor.u32 %v4120_v37, %v3340_v36  ;;  %v3516_v37 = vld [vmem:[#allocation4 + $0x208] sm:$0xf]  ;;  %v4154_v18 = vld [vmem:[#allocation4 + $0x1cc] sm:$0xf]  ;;  %v3486_v2 = vld [vmem:[#allocation4 + $0x1d8] sm:$0xf0] }
 0x104   :  { %1279 = vmatpush.bf16.msrb.mxu3 %v3525_v48  ;;  %1329 = vmatpush.bf16.msrb.mxu2 %v3561_v27  ;;  %v4101_v48 = vld [vmem:[#allocation4 + $0x24] sm:$0xf]  ;;  %v4195_v27 = vld [vmem:[#allocation4 + $0x30c] sm:$0xf0] }
 0x105   :  { %1315 = vmatpush.bf16.msrb.mxu1 %v3449_v23  ;;  %v3273_v51 = vor.u32 %v4101_v48, %v3270_v49  ;;  %v3356_v23 = vld [vmem:[#allocation4 + $0xc8] sm:$0xf]  ;;  %v5102_v48 = vpack.c.bf16 %v5064_v5, %v5064_v5  ;;  %v3581_v49 = vor.u32 %v4180_v47, %v3580_v43  ;;  %v4112_v5 = vld [vmem:[#allocation4 + $0x74] sm:$0xf0]  ;;  %v3654_v47 = vld [vmem:[#allocation4 + $0x330] sm:$0xf0] }
 0x106   :  { %v3357_v3 = vor.u32 %v4124_v24, %v3356_v23  ;;  %v5108_v24 = vld [vmem:[%s5741_s10] sm:$0xff] }
 0x107   :  { %1305 = vmatpush.bf16.msrb.mxu0 %v3273_v51  ;;  %v4116_v51 = vld [vmem:[#allocation4 + $0x94] sm:$0xf0] }
 0x108   :  { %1280 = vmatpush.bf16.msrb.mxu3 %v3509_v62  ;;  %1330 = vmatpush.bf16.msrb.mxu2 %v3545_v38  ;;  %v3513_v62 = vor.u32 %v4161_v55, %v3510_v59  ;;  %v3637_v38 = vor.u32 %v4195_v27, %v3636_v26  ;;  %v4148_v55 = vld [vmem:[#allocation4 + $0x194] sm:$0xf0]  ;;  %v3276_v26 = vld [vmem:[#allocation4 + $0x28] sm:$0xf]  ;;  %v2509_v27 = vmul.f32 %v5108_v24, %v5108_v24 }
 0x109   :  { %1316 = vmatpush.bf16.msrb.mxu1 %v3433_v34  ;;  %v4184_v34 = vld [vmem:[#allocation4 + $0x2b4] sm:$0xf0]  ;;  %v3453_v59 = vor.u32 %v4148_v55, %v3452_v57  ;;  %v3277_v31 = vor.u32 %v4104_v28, %v3276_v26 }
 0x10a   :  { %v4224_v57 = vld [vmem:[#allocation4 + $0x3f4] sm:$0xf0] }
 0x10b   :  { %1281 = vmatmul.bf16.vlgmr.msrb.gmra.mxu3 %v5088_v13 }
 0x10c   :  { %1286 = vmatpush.bf16.msra.mxu3 %v3749_v0  ;;  %1331 = vmatpush.bf16.msrb.mxu2 %v3529_v50  ;;  %v4097_v0 = vld [vmem:[#allocation4 + $0x4] sm:$0xf]  ;;  %v3324_v50 = vld [vmem:[#allocation4 + $0x88] sm:$0xf] }
 0x10d   :  { %1317 = vmatpush.bf16.msrb.mxu1 %v3417_v46  ;;  %v3257_v7 = vor.u32 %v4097_v0, %v3254_v1  ;;  %v4209_v0 = vld [vmem:[#allocation4 + $0x384] sm:$0xf]  ;;  %v3702_v1 = vld [vmem:[#allocation4 + $0x390] sm:$0xf0] }
 0x10f   :  { %1306 = vmatpush.bf16.msrb.mxu0 %v3257_v7  ;;  %v3436_v7 = vld [vmem:[#allocation4 + $0x168] sm:$0xf] }
 0x110   :  { %1287 = vmatpush.bf16.msra.mxu3 %v3733_v20  ;;  %1332 = vmatpush.bf16.msrb.mxu2 %v3513_v62  ;;  %v3612_v20 = vld [vmem:[#allocation4 + $0x2c8] sm:$0xf] }
 0x111   :  { %1318 = vmatpush.bf16.msrb.mxu1 %v3401_v58  ;;  %v3613_v4 = vor.u32 %v4188_v22, %v3612_v20  ;;  %v3564_v58 = vld [vmem:[#allocation4 + $0x268] sm:$0xf]  ;;  %v3705_v20 = vor.u32 %v4209_v0, %v3702_v1  ;;  %v4140_v22 = vld [vmem:[#allocation4 + $0x154] sm:$0xf0]  ;;  %v4186_v0 = vld [vmem:[#allocation4 + $0x2cc] sm:$0xf] }
 0x112   :  { %1307 = vmatmul.bf16.vlgmr.msrb.gmra.mxu0 %v5084_v10  ;;  %v3565_v62 = vor.u32 %v4176_v60, %v3564_v58  ;;  %v4126_v58 = vld [vmem:[#allocation4 + $0xec] sm:$0xf]  ;;  %v3740_v1 = vld [vmem:[#allocation4 + $0x3c8] sm:$0xf] }
 0x113   :  { %1351 = vmatpush.bf16.msra.mxu0 %v3373_v14  ;;  %1333 = vmatmul.bf16.vlgmr.msrb.gmra.mxu2 %v5088_v13  ;;  %v3292_v14 = vld [vmem:[#allocation4 + $0x48] sm:$0xf] }
 0x114   :  { %1288 = vmatpush.bf16.msra.mxu3 %v3717_v30  ;;  %1377 = vmatpush.bf16.msra.mxu2 %v3629_v63  ;;  %v3596_v30 = vld [vmem:[#allocation4 + $0x2a8] sm:$0xf]  ;;  %v3309_v63 = vor.u32 %v4112_v5, %v3308_v61 }
 0x115   :  { %1319 = vmatpush.bf16.msrb.mxu1 %v3385_v17  ;;  %v3597_v35 = vor.u32 %v4184_v34, %v3596_v30  ;;  %v3293_v17 = vor.u32 %v4108_v15, %v3292_v14  ;;  %v3670_v30 = vld [vmem:[#allocation4 + $0x350] sm:$0xf0]  ;;  %v3404_v34 = vld [vmem:[#allocation4 + $0x128] sm:$0xf]  ;;  %v4216_v15 = vld [vmem:[#allocation4 + $0x3b4] sm:$0xf0] }
 0x116   :  { %v3673_v43 = vor.u32 %v4201_v29, %v3670_v30  ;;  %v3724_v14 = vld [vmem:[#allocation4 + $0x3a8] sm:$0xf]  ;;  %v4150_v29 = vld [vmem:[#allocation4 + $0x1ac] sm:$0xf]  ;;  %v3470_v30 = vld [vmem:[#allocation4 + $0x1b8] sm:$0xf0] }
 0x117   :  { %1352 = vmatpush.bf16.msra.mxu0 %v3357_v3  ;;  %v3725_v28 = vor.u32 %v4216_v15, %v3724_v14 }
 0x118   :  { %1289 = vmatpush.bf16.msra.mxu3 %v3701_v42  ;;  %1378 = vmatpush.bf16.msra.mxu2 %v3613_v4  ;;  %v4152_v42 = vld [vmem:[#allocation4 + $0x1b4] sm:$0xf0]  ;;  %v3532_v4 = vld [vmem:[#allocation4 + $0x228] sm:$0xf] }
 0x119   :  { %1364 = vmatpush.bf16.msra.mxu1 %v3501_v21  ;;  %v3469_v46 = vor.u32 %v4152_v42, %v3468_v41  ;;  %v3420_v21 = vld [vmem:[#allocation4 + $0x148] sm:$0xf]  ;;  %v4100_v41 = vld [vmem:[#allocation4 + $0x14] sm:$0xf0] }
 0x11a   :  { %1320 = vmatmul.bf16.vlgmr.msrb.gmra.mxu1 %v5093_v19  ;;  %v3421_v23 = vor.u32 %v4140_v22, %v3420_v21  ;;  %v3489_v21 = vor.u32 %v4154_v18, %v3486_v2  ;;  %v3598_v22 = vld [vmem:[#allocation4 + $0x2b8] sm:$0xf0]  ;;  %v4134_v18 = vld [vmem:[#allocation4 + $0x12c] sm:$0xf] }
 0x11b   :  { %1353 = vmatpush.bf16.msra.mxu0 %v3341_v39  ;;  %v3260_v39 = vld [vmem:[#allocation4 + $0x8] sm:$0xf]  ;;  %v3406_v2 = vld [vmem:[#allocation4 + $0x138] sm:$0xf0] }
 0x11c   :  { %1290 = vmatpush.bf16.msra.mxu3 %v3685_v54  ;;  %1379 = vmatpush.bf16.msra.mxu2 %v3597_v35  ;;  %v3325_v54 = vor.u32 %v4116_v51, %v3324_v50  ;;  %v4136_v35 = vld [vmem:[#allocation4 + $0x134] sm:$0xf0]  ;;  %v3261_v42 = vor.u32 %v4100_v41, %v3260_v39  ;;  %v4193_v51 = vld [vmem:[#allocation4 + $0x304] sm:$0xf]  ;;  %v4146_v41 = vld [vmem:[#allocation4 + $0x18c] sm:$0xf] }
 0x11d   :  { %1365 = vmatpush.bf16.msra.mxu1 %v3485_v33  ;;  %v2511_v33 = vsel %vm2510_vm3, %v2509_v27, 0.0  ;;  %v3405_v36 = vor.u32 %v4136_v35, %v3404_v34  ;;  %v3641_v60 = vor.u32 %v4193_v51, %v3638_v52  ;;  %v3708_v27 = vld [vmem:[#allocation4 + $0x388] sm:$0xf]  ;;  %v4114_v34 = vld [vmem:[#allocation4 + $0x8c] sm:$0xf] }
 0x11e   :  { %2512 = vadd.xlane.f32.xlu0 %v2511_v33  ;;  %v3582_v33 = vld [vmem:[#allocation4 + $0x298] sm:$0xf0]  ;;  %v4208_v39 = vld [vmem:[#allocation4 + $0x374] sm:$0xf0]  ;;  %v4142_v52 = vld [vmem:[#allocation4 + $0x16c] sm:$0xf] }
 0x11f   :  { %1354 = vmatpush.bf16.msra.mxu0 %v3325_v54  ;;  %v3630_v54 = vld [vmem:[#allocation4 + $0x2f8] sm:$0xf0] }
 0x120   :  { %1291 = vmatpush.bf16.msra.mxu3 %v3669_v11  ;;  %1380 = vmatpush.bf16.msra.mxu2 %v3581_v49  ;;  %v3437_v11 = vor.u32 %v4144_v8, %v3436_v7  ;;  %v3389_v49 = vor.u32 %v4132_v45, %v3388_v44  ;;  %v3633_v55 = vor.u32 %v4190_v53, %v3630_v54  ;;  %v3614_v8 = vld [vmem:[#allocation4 + $0x2d8] sm:$0xf0]  ;;  %v4170_v54 = vld [vmem:[#allocation4 + $0x24c] sm:$0xf] }
 0x121   :  { %1366 = vmatpush.bf16.msra.mxu1 %v3469_v46  ;;  %v4197_v46 = vld [vmem:[#allocation4 + $0x324] sm:$0xf]  ;;  %v3617_v9 = vor.u32 %v4186_v0, %v3614_v8  ;;  %v3326_v35 = vld [vmem:[#allocation4 + $0x98] sm:$0xf0] }
 0x122   :  { %v3657_v50 = vor.u32 %v4197_v46, %v3654_v47  ;;  %v3566_v45 = vld [vmem:[#allocation4 + $0x278] sm:$0xf0]  ;;  %v4110_v46 = vld [vmem:[#allocation4 + $0x6c] sm:$0xf] }
 0x123   :  { %1355 = vmatpush.bf16.msra.mxu0 %v3309_v63  ;;  %v3502_v63 = vld [vmem:[#allocation4 + $0x1f8] sm:$0xf0] }
 0x124   :  { %1292 = vmatpush.bf16.msra.mxu3 %v3653_v25  ;;  %1381 = vmatpush.bf16.msra.mxu2 %v3565_v62  ;;  %v4168_v25 = vld [vmem:[#allocation4 + $0x234] sm:$0xf0]  ;;  %v4158_v62 = vld [vmem:[#allocation4 + $0x1ec] sm:$0xf]  ;;  %v3310_v47 = vld [vmem:[#allocation4 + $0x78] sm:$0xf0] }
 0x125   :  { %1367 = vmatpush.bf16.msra.mxu1 %v3453_v59  ;;  %v3533_v3 = vor.u32 %v4168_v25, %v3532_v4  ;;  %v3374_v59 = vld [vmem:[#allocation4 + $0xf8] sm:$0xf0]  ;;  %v3505_v7 = vor.u32 %v4158_v62, %v3502_v63  ;;  %v4118_v4 = vld [vmem:[#allocation4 + $0xac] sm:$0xf]  ;;  %v4200_v62 = vld [vmem:[#allocation4 + $0x334] sm:$0xf0] }
 0x126   :  { %v3377_v61 = vor.u32 %v4126_v58, %v3374_v59  ;;  %v3438_v53 = vld [vmem:[#allocation4 + $0x178] sm:$0xf0] }
 0x127   :  { %1356 = vmatpush.bf16.msra.mxu0 %v3293_v17  ;;  %v3550_v58 = vld [vmem:[#allocation4 + $0x258] sm:$0xf0] }
 0x128   :  { %1293 = vmatpush.bf16.msra.mxu3 %v3637_v38  ;;  %1382 = vmatpush.bf16.msra.mxu2 %v3549_v16  ;;  %v4164_v38 = vld [vmem:[#allocation4 + $0x214] sm:$0xf0]  ;;  %v3553_v59 = vor.u32 %v4170_v54, %v3550_v58  ;;  %v3814_v54 = vld [vmem:[#allocation9 + $0x68] sm:$0xf0] }
 0x129   :  { %1368 = vmatpush.bf16.msra.mxu1 %v3437_v11  ;;  %v4122_v11 = vld [vmem:[#allocation4 + $0xcc] sm:$0xf] }
 0x12a   :  { %v3361_v16 = vor.u32 %v4122_v11, %v3358_v12  ;;  %v4102_v11 = vld [vmem:[#allocation4 + $0x2c] sm:$0xf]  ;;  %v3278_v12 = vld [vmem:[#allocation4 + $0x38] sm:$0xf0] }
 0x12b   :  { %1294 = vmatmul.bf16.vlgmr.msra.gmra.mxu3 %v5102_v48  ;;  %1357 = vmatpush.bf16.msra.mxu0 %v3277_v31  ;;  %v4178_v31 = vld [vmem:[#allocation4 + $0x28c] sm:$0xf]  ;;  %v3281_v15 = vor.u32 %v4102_v11, %v3278_v12  ;;  %v3662_v11 = vld [vmem:[#allocation4 + $0x338] sm:$0xf0]  ;;  %v4233_v12 = vld [vmem:[#allocation9 + $0x44] sm:$0xf] }
 0x12c   :  { %1338 = vmatpush.bf16.msrb.mxu3 %v3753_v40  ;;  %1383 = vmatpush.bf16.msra.mxu2 %v3533_v3  ;;  %v3517_v40 = vor.u32 %v4164_v38, %v3516_v37  ;;  %v4212_v3 = vld [vmem:[#allocation4 + $0x394] sm:$0xf0]  ;;  %v3329_v37 = vor.u32 %v4114_v34, %v3326_v35  ;;  %v3692_v38 = vld [vmem:[#allocation4 + $0x368] sm:$0xf]  ;;  %v4218_v34 = vld [vmem:[#allocation4 + $0x3cc] sm:$0xf] }
 0x12d   :  { %1369 = vmatpush.bf16.msra.mxu1 %v3421_v23  ;;  %v3342_v23 = vld [vmem:[#allocation4 + $0xb8] sm:$0xf0]  ;;  %v3693_v51 = vor.u32 %v4208_v39, %v3692_v38  ;;  %v282_v39 = vlaneseq }
 0x12e   :  { %v3345_v26 = vor.u32 %v4118_v4, %v3342_v23  ;;  %v3409_v4 = vor.u32 %v4134_v18, %v3406_v2  ;;  %v3518_v23 = vld [vmem:[#allocation4 + $0x218] sm:$0xf0]  ;;  %v3788_v2 = vld [vmem:[#allocation9 + $0x30] sm:$0xf] }
 0x12f   :  { %1358 = vmatpush.bf16.msra.mxu0 %v3261_v42  ;;  %v3454_v42 = vld [vmem:[#allocation4 + $0x198] sm:$0xf0] }
 0x130   :  { %1339 = vmatpush.bf16.msrb.mxu3 %v3737_v56  ;;  %1384 = vmatpush.bf16.msra.mxu2 %v3517_v40  ;;  %v3756_v56 = vld [vmem:[#allocation4 + $0x3e8] sm:$0xf]  ;;  %v3709_v40 = vor.u32 %v4212_v3, %v3708_v27  ;;  %v3457_v44 = vor.u32 %v4146_v41, %v3454_v42  ;;  %v4098_v27 = vld [vmem:[#allocation4 + $0xc] sm:$0xf]  ;;  %v3262_v3 = vld [vmem:[#allocation4 + $0x18] sm:$0xf0] }
 0x131   :  { %1370 = vmatpush.bf16.msra.mxu1 %v3405_v36  ;;  %v3757_v5 = vor.u32 %v4224_v57, %v3756_v56  ;;  %v3585_v36 = vor.u32 %v4178_v31, %v3582_v33  ;;  %v3676_v56 = vld [vmem:[#allocation4 + $0x348] sm:$0xf]  ;;  %v4204_v57 = vld [vmem:[#allocation4 + $0x354] sm:$0xf0]  ;;  %v3390_v31 = vld [vmem:[#allocation4 + $0x118] sm:$0xf0] }
 0x132   :  { %1359 = vmatmul.bf16.vlgmr.msra.gmra.mxu0 %v5084_v10  ;;  %v3677_v0 = vor.u32 %v4204_v57, %v3676_v56  ;;  %v3742_v35 = vld [vmem:[#allocation4 + $0x3d8] sm:$0xf0]  ;;  %v4210_v42 = vld [vmem:[#allocation4 + $0x38c] sm:$0xf] }
 0x133   :  { %1385 = vmatmul.bf16.vlgmr.msra.gmra.mxu2 %v5088_v13  ;;  %1403 = vmatpush.bf16.msrb.mxu0 %v3377_v61  ;;  %v3294_v61 = vld [vmem:[#allocation4 + $0x58] sm:$0xf0] }
 0x134   :  { %1340 = vmatpush.bf16.msrb.mxu3 %v3721_v6  ;;  %1429 = vmatpush.bf16.msrb.mxu2 %v3633_v55  ;;  %v4220_v6 = vld [vmem:[#allocation4 + $0x3d4] sm:$0xf0]  ;;  %v3441_v55 = vor.u32 %v4142_v52, %v3438_v53  ;;  %v3726_v38 = vld [vmem:[#allocation4 + $0x3b8] sm:$0xf0]  ;;  %v4237_v53 = vld [vmem:[#allocation9 + $0x64] sm:$0xf] }
 0x135   :  { %1371 = vmatpush.bf16.msra.mxu1 %v3389_v49  ;;  %v3741_v17 = vor.u32 %v4220_v6, %v3740_v1  ;;  %v4138_v1 = vld [vmem:[#allocation4 + $0x14c] sm:$0xf]  ;;  %v3422_v6 = vld [vmem:[#allocation4 + $0x158] sm:$0xf0]  ;;  %v3817_v58 = vor.u32 %v4237_v53, %v3814_v54 }
 0x136   :  { %v3425_v8 = vor.u32 %v4138_v1, %v3422_v6  ;;  %v4198_v1 = vld [vmem:[#allocation4 + $0x32c] sm:$0xf]  ;;  %v4256_v53 = vld [vmem:[#allocation9 + $0xf4] sm:$0xf0] }
 0x137   :  { %1404 = vmatpush.bf16.msrb.mxu0 %v3361_v16  ;;  %v3644_v16 = vld [vmem:[#allocation4 + $0x308] sm:$0xf] }
 0x138   :  { %1341 = vmatpush.bf16.msrb.mxu3 %v3705_v20  ;;  %1372 = vmatmul.bf16.vlgmr.msra.gmra.mxu1 %v5093_v19  ;;  %v4182_v20 = vld [vmem:[#allocation4 + $0x2ac] sm:$0xf] }
 0x139   :  { %1416 = vmatpush.bf16.msrb.mxu1 %v3505_v7  ;;  %1430 = vmatpush.bf16.msrb.mxu2 %v3617_v9  ;;  %v3601_v25 = vor.u32 %v4182_v20, %v3598_v22  ;;  %v4166_v7 = vld [vmem:[#allocation4 + $0x22c] sm:$0xf]  ;;  %v3534_v9 = vld [vmem:[#allocation4 + $0x238] sm:$0xf0] }
 0x13a   :  { %v3537_v14 = vor.u32 %v4166_v7, %v3534_v9  ;;  %v4162_v20 = vld [vmem:[#allocation4 + $0x20c] sm:$0xf]  ;;  %v3796_v7 = vld [vmem:[#allocation9 + $0x40] sm:$0xf] }
 0x13b   :  { %1405 = vmatpush.bf16.msrb.mxu0 %v3345_v26  ;;  %v4222_v22 = vld [vmem:[#allocation4 + $0x3ec] sm:$0xf]  ;;  %v3521_v26 = vor.u32 %v4162_v20, %v3518_v23  ;;  %v4232_v20 = vld [vmem:[#allocation9 + $0x34] sm:$0xf0] }
 0x13c   :  { %1342 = vmatpush.bf16.msrb.mxu3 %v3689_v32  ;;  %v3473_v32 = vor.u32 %v4150_v29, %v3470_v30  ;;  %v4130_v30 = vld [vmem:[#allocation4 + $0x10c] sm:$0xf]  ;;  %v3789_v23 = vor.u32 %v4232_v20, %v3788_v2  ;;  %v4271_v2 = vld [vmem:[#allocation10 + $0x74] sm:$0xf]  ;;  %v3950_v20 = vld [vmem:[#allocation10 + $0x78] sm:$0xf0] }
 0x13d   :  { %1417 = vmatpush.bf16.msrb.mxu1 %v3489_v21  ;;  %1431 = vmatpush.bf16.msrb.mxu2 %v3601_v25  ;;  %v4196_v21 = vld [vmem:[#allocation4 + $0x314] sm:$0xf0]  ;;  %v3758_v25 = vld [vmem:[#allocation4 + $0x3f8] sm:$0xf0]  ;;  %v3393_v33 = vor.u32 %v4130_v30, %v3390_v31  ;;  %v3782_v30 = vld [vmem:[#allocation9 + $0x28] sm:$0xf0] }
 0x13e   :  { %v3645_v29 = vor.u32 %v4196_v21, %v3644_v16  ;;  %v3665_v16 = vor.u32 %v4198_v1, %v3662_v11  ;;  %v3646_v21 = vld [vmem:[#allocation4 + $0x318] sm:$0xf0]  ;;  %v3868_v1 = vld [vmem:[#allocation9 + $0xd0] sm:$0xf]  ;;  %v3870_v11 = vld [vmem:[#allocation9 + $0xd8] sm:$0xf0] }
 0x13f   :  { %1406 = vmatpush.bf16.msrb.mxu0 %v3329_v37  ;;  %v4214_v37 = vld [vmem:[#allocation4 + $0x3ac] sm:$0xf] }
 0x140   :  { %1343 = vmatpush.bf16.msrb.mxu3 %v3673_v43  ;;  %v4174_v43 = vld [vmem:[#allocation4 + $0x26c] sm:$0xf]  ;;  %v3729_v41 = vor.u32 %v4214_v37, %v3726_v38  ;;  %v5127_v37 = vand.u32 127, %v282_v39 }
 0x141   :  { %1418 = vmatpush.bf16.msrb.mxu1 %v3473_v32  ;;  %1432 = vmatpush.bf16.msrb.mxu2 %v3585_v36  ;;  %v3569_v49 = vor.u32 %v4174_v43, %v3566_v45  ;;  %v3761_v32 = vor.u32 %v4222_v22, %v3758_v25  ;;  %v3745_v36 = vor.u32 %v4218_v34, %v3742_v35  ;;  %v4206_v43 = vld [vmem:[#allocation4 + $0x36c] sm:$0xf]  ;;  %v3820_v45 = vld [vmem:[#allocation9 + $0x70] sm:$0xf]  ;;  %v4231_v22 = vld [vmem:[#allocation9 + $0x34] sm:$0xf] }
 0x142   :  { %v4228_v34 = vld [vmem:[#allocation9 + $0x14] sm:$0xf0]  ;;  %v4227_v35 = vld [vmem:[#allocation9 + $0x14] sm:$0xf] }
 0x144   :  { %1344 = vmatpush.bf16.msrb.mxu3 %v3657_v50  ;;  %v3313_v50 = vor.u32 %v4110_v46, %v3310_v47  ;;  %v4240_v46 = vld [vmem:[#allocation9 + $0x74] sm:$0xf0]  ;;  %v4239_v47 = vld [vmem:[#allocation9 + $0x74] sm:$0xf] }
 0x145   :  { %1419 = vmatpush.bf16.msrb.mxu1 %v3457_v44  ;;  %1433 = vmatpush.bf16.msrb.mxu2 %v3569_v49  ;;  %v3822_v49 = vld [vmem:[#allocation9 + $0x78] sm:$0xf0] }
 0x146   :  { %1407 = vmatpush.bf16.msrb.mxu0 %v3313_v50  ;;  %v3812_v50 = vld [vmem:[#allocation9 + $0x60] sm:$0xf]  ;;  %v3825_v52 = vor.u32 %v4239_v47, %v3822_v49  ;;  %v4225_v49 = vld [vmem:[#allocation9 + $0x4] sm:$0xf] }
 0x147   :  { %v3764_v47 = vld [vmem:[#allocation9] sm:$0xf] }
 0x148   :  { %1345 = vmatpush.bf16.msrb.mxu3 %v3641_v60  ;;  %v4106_v60 = vld [vmem:[#allocation4 + $0x4c] sm:$0xf] }
 0x149   :  { %1420 = vmatpush.bf16.msrb.mxu1 %v3441_v55  ;;  %v3297_v63 = vor.u32 %v4106_v60, %v3294_v61  ;;  %1434 = vmatpush.bf16.msrb.mxu2 %v3553_v59  ;;  %v4202_v55 = vld [vmem:[#allocation4 + $0x34c] sm:$0xf]  ;;  %v3804_v59 = vld [vmem:[#allocation9 + $0x50] sm:$0xf]  ;;  %v4236_v60 = vld [vmem:[#allocation9 + $0x54] sm:$0xf0] }
 0x14a   :  { %v3678_v61 = vld [vmem:[#allocation4 + $0x358] sm:$0xf0] }
 0x14b   :  { %1346 = vmatmul.bf16.vlgmr.msrb.gmra.mxu3 %v5102_v48  ;;  %1408 = vmatpush.bf16.msrb.mxu0 %v3297_v63  ;;  %v3805_v63 = vor.u32 %v4236_v60, %v3804_v59 }
 0x14c   :  { %1390 = vmatpush.bf16.msra.mxu3 %v3757_v5  ;;  %v3660_v5 = vld [vmem:[#allocation4 + $0x328] sm:$0xf] }
 0x14d   :  { %1421 = vmatpush.bf16.msrb.mxu1 %v3425_v8  ;;  %1435 = vmatpush.bf16.msrb.mxu2 %v3537_v14  ;;  %v4234_v8 = vld [vmem:[#allocation9 + $0x44] sm:$0xf0]  ;;  %v3798_v14 = vld [vmem:[#allocation9 + $0x48] sm:$0xf0] }
 0x14e   :  { %v3801_v18 = vor.u32 %v4233_v12, %v3798_v14 }
 0x14f   :  { %1409 = vmatpush.bf16.msrb.mxu0 %v3281_v15  ;;  %v3797_v15 = vor.u32 %v4234_v8, %v3796_v7 }
 0x150   :  { %1391 = vmatpush.bf16.msra.mxu3 %v3741_v17  ;;  %v3661_v17 = vor.u32 %v4200_v62, %v3660_v5  ;;  %v4235_v5 = vld [vmem:[#allocation9 + $0x54] sm:$0xf]  ;;  %v3806_v62 = vld [vmem:[#allocation9 + $0x58] sm:$0xf0] }
 0x151   :  { %1422 = vmatpush.bf16.msrb.mxu1 %v3409_v4  ;;  %1436 = vmatpush.bf16.msrb.mxu2 %v3521_v26  ;;  %v3809_v6 = vor.u32 %v4235_v5, %v3806_v62  ;;  %v3790_v4 = vld [vmem:[#allocation9 + $0x38] sm:$0xf0]  ;;  %v4254_v5 = vld [vmem:[#allocation9 + $0xe4] sm:$0xf0]  ;;  %v4253_v62 = vld [vmem:[#allocation9 + $0xe4] sm:$0xf] }
 0x152   :  { %v3793_v26 = vor.u32 %v4231_v22, %v3790_v4  ;;  %v5144_v4 = vld [vmem:[#allocation7] sm:$0xf] }
 0x154   :  { %1392 = vmatpush.bf16.msra.mxu3 %v3725_v28  ;;  %v3265_v28 = vor.u32 %v4098_v27, %v3262_v3  ;;  %1437 = vmatmul.bf16.vlgmr.msrb.gmra.mxu2 %v5088_v13  ;;  %v3710_v13 = vld [vmem:[#allocation4 + $0x398] sm:$0xf0]  ;;  %v3780_v27 = vld [vmem:[#allocation9 + $0x20] sm:$0xf]  ;;  %v4230_v3 = vld [vmem:[#allocation9 + $0x24] sm:$0xf0] }
 0x155   :  { %1423 = vmatpush.bf16.msrb.mxu1 %v3393_v33  ;;  %v3713_v44 = vor.u32 %v4210_v42, %v3710_v13  ;;  %1675 = vmatpush.bf16.msra.mxu2 %v3825_v52  ;;  %v3781_v31 = vor.u32 %v4230_v3, %v3780_v27  ;;  %v3772_v33 = vld [vmem:[#allocation9 + $0x10] sm:$0xf]  ;;  %v4248_v3 = vld [vmem:[#allocation9 + $0xb4] sm:$0xf0] }
 0x156   :  { %1410 = vmatpush.bf16.msrb.mxu0 %v3265_v28  ;;  %v3773_v38 = vor.u32 %v4228_v34, %v3772_v33  ;;  %v3884_v52 = vld [vmem:[#allocation9 + $0xf0] sm:$0xf] }
 0x157   :  { %v3852_v27 = vld [vmem:[#allocation9 + $0xb0] sm:$0xf] }
 0x158   :  { %1393 = vmatpush.bf16.msra.mxu3 %v3709_v40  ;;  %1424 = vmatmul.bf16.vlgmr.msrb.gmra.mxu1 %v5093_v19  ;;  %v5122_v40 = vshrl.u32 %v282_v39, 7  ;;  %v3821_v19 = vor.u32 %v4240_v46, %v3820_v45  ;;  %v3853_v33 = vor.u32 %v4248_v3, %v3852_v27  ;;  %v4261_v27 = vld [vmem:[#allocation10 + $0x24] sm:$0xf]  ;;  %v3910_v3 = vld [vmem:[#allocation10 + $0x28] sm:$0xf0] }
 0x159   :  { %1411 = vmatmul.bf16.vlgmr.msrb.gmra.mxu0 %v5084_v10  ;;  %v3694_v10 = vld [vmem:[#allocation4 + $0x378] sm:$0xf0]  ;;  %1676 = vmatpush.bf16.msra.mxu2 %v3817_v58 }
 0x15a   :  { %4334 = vset.pattern.permute.xlu2 %v5122_v40  ;;  %1649 = vmatpush.bf16.msra.mxu0 %v3821_v19  ;;  %v3697_v57 = vor.u32 %v4206_v43, %v3694_v10  ;;  %vm394_vm4 = vcmp.eq.s32.totalorder %v5122_v40, %v5127_v37  ;;  %v4226_v19 = vld [vmem:[#allocation9 + $0x4] sm:$0xf0] }
 0x15c   :  { %1394 = vmatpush.bf16.msra.mxu3 %v3693_v51  ;;  %v4238_v51 = vld [vmem:[#allocation9 + $0x64] sm:$0xf0] }
 0x15d   :  { %v3813_v56 = vor.u32 %v4238_v51, %v3812_v50  ;;  %1677 = vmatpush.bf16.msra.mxu2 %v3809_v6  ;;  %v3765_v50 = vor.u32 %v4226_v19, %v3764_v47  ;;  %v3766_v51 = vld [vmem:[#allocation9 + $0x8] sm:$0xf0]  ;;  %v4252_v6 = vld [vmem:[#allocation9 + $0xd4] sm:$0xf0] }
 0x15e   :  { %v3769_v54 = vor.u32 %v4225_v49, %v3766_v51  ;;  %v3869_v12 = vor.u32 %v4252_v6, %v3868_v1  ;;  %v3836_v49 = vld [vmem:[#allocation9 + $0x90] sm:$0xf]  ;;  %v4241_v1 = vld [vmem:[#allocation9 + $0x84] sm:$0xf]  ;;  %v3830_v6 = vld [vmem:[#allocation9 + $0x88] sm:$0xf0] }
 0x15f   :  { %1650 = vmatpush.bf16.msra.mxu0 %v3813_v56  ;;  %v3885_v56 = vor.u32 %v4256_v53, %v3884_v52  ;;  %v4243_v52 = vld [vmem:[#allocation9 + $0x94] sm:$0xf]  ;;  %v3838_v53 = vld [vmem:[#allocation9 + $0x98] sm:$0xf0] }
 0x160   :  { %1395 = vmatpush.bf16.msra.mxu3 %v3677_v0  ;;  %v3681_v0 = vor.u32 %v4202_v55, %v3678_v61  ;;  %v3886_v55 = vld [vmem:[#allocation9 + $0xf8] sm:$0xf0]  ;;  %v3876_v61 = vld [vmem:[#allocation9 + $0xe0] sm:$0xf] }
 0x161   :  { %1678 = vmatpush.bf16.msra.mxu2 %v3801_v18  ;;  %1662 = vmatpush.bf16.msra.mxu1 %v3885_v56  ;;  %v3862_v18 = vld [vmem:[#allocation9 + $0xc8] sm:$0xf0]  ;;  %v3841_v56 = vor.u32 %v4243_v52, %v3838_v53  ;;  %v600_v52 = vperm.slane %v5144_v4, 1 }
 0x163   :  { %1651 = vmatpush.bf16.msra.mxu0 %v3805_v63  ;;  %v3877_v63 = vor.u32 %v4254_v5, %v3876_v61  ;;  %v3828_v5 = vld [vmem:[#allocation9 + $0x80] sm:$0xf] }
 0x164   :  { %1396 = vmatpush.bf16.msra.mxu3 %v3661_v17  ;;  %v4194_v17 = vld [vmem:[#allocation4 + $0x30c] sm:$0xf] }
 0x165   :  { %v3649_v25 = vor.u32 %v4194_v17, %v3646_v21  ;;  %1679 = vmatpush.bf16.msra.mxu2 %v3793_v26  ;;  %1663 = vmatpush.bf16.msra.mxu1 %v3877_v63  ;;  %v4249_v17 = vld [vmem:[#allocation9 + $0xc4] sm:$0xf]  ;;  %v3953_v21 = vor.u32 %v4271_v2, %v3950_v20  ;;  %v4263_v2 = vld [vmem:[#allocation10 + $0x34] sm:$0xf] }
 0x166   :  { %v3865_v26 = vor.u32 %v4249_v17, %v3862_v18  ;;  %v3940_v17 = vld [vmem:[#allocation10 + $0x60] sm:$0xf]  ;;  %v4270_v18 = vld [vmem:[#allocation10 + $0x64] sm:$0xf0] }
 0x167   :  { %1652 = vmatpush.bf16.msra.mxu0 %v3797_v15  ;;  %v3860_v15 = vld [vmem:[#allocation9 + $0xc0] sm:$0xf]  ;;  %v3941_v20 = vor.u32 %v4270_v18, %v3940_v17 }
 0x168   :  { %1397 = vmatpush.bf16.msra.mxu3 %v3645_v29  ;;  %v4229_v29 = vld [vmem:[#allocation9 + $0x24] sm:$0xf] }
 0x169   :  { %1664 = vmatpush.bf16.msra.mxu1 %v3869_v12  ;;  %v4265_v12 = vld [vmem:[#allocation10 + $0x44] sm:$0xf] }
 0x16b   :  { %1398 = vmatmul.bf16.vlgmr.msra.gmra.mxu3 %v5102_v48  ;;  %1653 = vmatpush.bf16.msra.mxu0 %v3789_v23 }
 0x16c   :  { %1442 = vmatpush.bf16.msrb.mxu3 %v3761_v32  ;;  %v3785_v32 = vor.u32 %v4229_v29, %v3782_v30  ;;  %v4247_v29 = vld [vmem:[#allocation9 + $0xb4] sm:$0xf]  ;;  %v3854_v30 = vld [vmem:[#allocation9 + $0xb8] sm:$0xf0] }
 0x16d   :  { %v3857_v34 = vor.u32 %v4247_v29, %v3854_v30 }
 0x16e   :  { %v331_v9 = vpop.f32.mrf.mxu2  ;;  %1680 = vmatpush.bf16.msra.mxu2 %v3785_v32  ;;  %v391_v10 = vpop.f32.mrf.mxu3  ;;  %v599_v32 = vperm.slane %v5144_v4, 0 }
 0x16f   :  { %1654 = vmatpush.bf16.msra.mxu0 %v3781_v31 }
 0x170   :  { %1443 = vmatpush.bf16.msrb.mxu3 %v3745_v36  ;;  %v3774_v36 = vld [vmem:[#allocation9 + $0x18] sm:$0xf0] }
 0x171   :  { %v3777_v42 = vor.u32 %v4227_v35, %v3774_v36  ;;  %v3844_v35 = vld [vmem:[#allocation9 + $0xa0] sm:$0xf]  ;;  %v4246_v36 = vld [vmem:[#allocation9 + $0xa4] sm:$0xf0] }
 0x173   :  { %1655 = vmatpush.bf16.msra.mxu0 %v3773_v38  ;;  %1681 = vmatpush.bf16.msra.mxu2 %v3777_v42  ;;  %v5140_v46 = vpop.f32.mrf.mxu1  ;;  %v4245_v38 = vld [vmem:[#allocation9 + $0xa4] sm:$0xf]  ;;  %v3846_v42 = vld [vmem:[#allocation9 + $0xa8] sm:$0xf0] }
 0x174   :  { %1444 = vmatpush.bf16.msrb.mxu3 %v3729_v41  ;;  %v3849_v47 = vor.u32 %v4245_v38, %v3846_v42 }
 0x176   :  { %v351_v28 = vpop.f32.mrf.mxu2 }
 0x177   :  { %v352_v41 = vadd.f32 %v351_v28, %v331_v9  ;;  %v5131_v45 = vpop.f32.mrf.mxu0  ;;  %1656 = vmatpush.bf16.msra.mxu0 %v3765_v50  ;;  %1682 = vmatpush.bf16.msra.mxu2 %v3769_v54  ;;  %v4251_v9 = vld [vmem:[#allocation9 + $0xd4] sm:$0xf]  ;;  %v3942_v28 = vld [vmem:[#allocation10 + $0x68] sm:$0xf0]  ;;  %v4244_v50 = vld [vmem:[#allocation9 + $0x94] sm:$0xf0] }
 0x178   :  { %1445 = vmatpush.bf16.msrb.mxu3 %v3713_v44  ;;  %v3873_v14 = vor.u32 %v4251_v9, %v3870_v11  ;;  %v1257_v51 = vadd.f32 %v5131_v45, %v599_v32  ;;  %v3837_v54 = vor.u32 %v4244_v50, %v3836_v49  ;;  %v4272_v9 = vld [vmem:[#allocation10 + $0x74] sm:$0xf0]  ;;  %v3924_v32 = vld [vmem:[#allocation10 + $0x40] sm:$0xf]  ;;  %v3894_v49 = vld [vmem:[#allocation10 + $0x8] sm:$0xf0] }
 0x17b   :  { %v1271_v7 = vpop.f32.mrf.mxu1  ;;  %1921 = vmatpush.bf16.msrb.mxu2 %v3953_v21 }
 0x17c   :  { %1446 = vmatpush.bf16.msrb.mxu3 %v3697_v57  ;;  %v4255_v57 = vld [vmem:[#allocation9 + $0xf4] sm:$0xf]  ;;  %v3948_v7 = vld [vmem:[#allocation10 + $0x70] sm:$0xf] }
 0x17d   :  { %v3889_v58 = vor.u32 %v4255_v57, %v3886_v55  ;;  %v1270_v57 = vadd.f32 %v5140_v46, %v1257_v51  ;;  %v3949_v46 = vor.u32 %v4272_v9, %v3948_v7  ;;  %v4258_v9 = vld [vmem:[#allocation10 + $0x4] sm:$0xf0] }
 0x17e   :  { %v371_v13 = vpop.f32.mrf.mxu2 }
 0x17f   :  { %v372_v43 = vadd.f32 %v371_v13, %v352_v41  ;;  %v1258_v59 = vpop.f32.mrf.mxu0  ;;  %v4267_v13 = vld [vmem:[#allocation10 + $0x54] sm:$0xf]  ;;  %1895 = vmatpush.bf16.msrb.mxu0 %v3949_v46 }
 0x180   :  { %1447 = vmatpush.bf16.msrb.mxu3 %v3681_v0  ;;  %v3878_v0 = vld [vmem:[#allocation9 + $0xe8] sm:$0xf0] }
 0x181   :  { %v392_v44 = vadd.f32 %v391_v10, %v372_v43  ;;  %v3881_v8 = vor.u32 %v4253_v62, %v3878_v0  ;;  %v3934_v43 = vld [vmem:[#allocation10 + $0x58] sm:$0xf0]  ;;  %v4242_v62 = vld [vmem:[#allocation9 + $0x84] sm:$0xf0] }
 0x182   :  { %v3937_v10 = vor.u32 %v4267_v13, %v3934_v43  ;;  %v3829_v45 = vor.u32 %v4242_v62, %v3828_v5 }
 0x183   :  { %1896 = vmatpush.bf16.msrb.mxu0 %v3941_v20  ;;  %v4285_v20 = vld [vmem:[#allocation10 + $0xe4] sm:$0xf] }
 0x184   :  { %1448 = vmatpush.bf16.msrb.mxu3 %v3665_v16  ;;  %v4250_v16 = vld [vmem:[#allocation9 + $0xc4] sm:$0xf0] }
 0x185   :  { %v3861_v23 = vor.u32 %v4250_v16, %v3860_v15 }
 0x187   :  { %1665 = vmatpush.bf16.msra.mxu1 %v3861_v23  ;;  %v3932_v23 = vld [vmem:[#allocation10 + $0x50] sm:$0xf] }
 0x188   :  { %1449 = vmatpush.bf16.msrb.mxu3 %v3649_v25  ;;  %v4269_v25 = vld [vmem:[#allocation10 + $0x64] sm:$0xf] }
 0x189   :  { %v3945_v31 = vor.u32 %v4269_v25, %v3942_v28  ;;  %v4268_v25 = vld [vmem:[#allocation10 + $0x54] sm:$0xf0] }
 0x18a   :  { %v3933_v29 = vor.u32 %v4268_v25, %v3932_v23  ;;  %v3996_v25 = vld [vmem:[#allocation10 + $0xd0] sm:$0xf] }
 0x18b   :  { %1450 = vmatmul.bf16.vlgmr.msrb.gmra.mxu3 %v5102_v48  ;;  %v5136_v48 = vsel %vm394_vm4, -1.0, %v392_v44  ;;  %1922 = vmatpush.bf16.msrb.mxu2 %v3945_v31  ;;  %v3845_v44 = vor.u32 %v4246_v36, %v3844_v35  ;;  %v3913_v31 = vor.u32 %v4261_v27, %v3910_v3  ;;  %v4259_v35 = vld [vmem:[#allocation10 + $0x14] sm:$0xf]  ;;  %v3902_v36 = vld [vmem:[#allocation10 + $0x18] sm:$0xf0] }
 0x18c   :  { %v397_v39 = vsel %vm396_vm5, %v5136_v48, -inf  ;;  %1688 = vmatpush.bf16.msra.mxu3 %v3889_v58  ;;  %1666 = vmatpush.bf16.msra.mxu1 %v3853_v33  ;;  %v4266_v33 = vld [vmem:[#allocation10 + $0x44] sm:$0xf0]  ;;  %v3905_v43 = vor.u32 %v4259_v35, %v3902_v36  ;;  %v4283_v27 = vld [vmem:[#allocation10 + $0xd4] sm:$0xf] }
 0x18d   :  { %398 = vmax.xlane.f32.xlu1 %v397_v39  ;;  %1897 = vmatpush.bf16.msrb.mxu0 %v3933_v29  ;;  %v3925_v42 = vor.u32 %v4266_v33, %v3924_v32  ;;  %v3988_v29 = vld [vmem:[#allocation10 + $0xc0] sm:$0xf]  ;;  %v4281_v32 = vld [vmem:[#allocation10 + $0xc4] sm:$0xf]  ;;  %v3990_v33 = vld [vmem:[#allocation10 + $0xc8] sm:$0xf0] }
 0x18e   :  { %v5142_v60 = vpop.f32.mrf.mxu3  ;;  %v3980_v36 = vld [vmem:[#allocation10 + $0xb0] sm:$0xf] }
 0x18f   :  { %v5147_v41 = vpop.f32.mrf.mxu0  ;;  %1923 = vmatpush.bf16.msrb.mxu2 %v3937_v10  ;;  %v1283_v0 = vadd.f32 %v5142_v60, %v1270_v57  ;;  %v3918_v60 = vld [vmem:[#allocation10 + $0x38] sm:$0xf0]  ;;  %v3916_v10 = vld [vmem:[#allocation10 + $0x30] sm:$0xf]  ;;  %v3908_v57 = vld [vmem:[#allocation10 + $0x20] sm:$0xf] }
 0x190   :  { %1689 = vmatpush.bf16.msra.mxu3 %v3881_v8  ;;  %1667 = vmatpush.bf16.msra.mxu1 %v3845_v44  ;;  %v3833_v8 = vor.u32 %v4241_v1, %v3830_v6  ;;  %v4264_v44 = vld [vmem:[#allocation10 + $0x34] sm:$0xf0]  ;;  %v1309_v5 = vadd.f32 %v5147_v41, %v600_v52  ;;  %v4277_v52 = vld [vmem:[#allocation10 + $0xa4] sm:$0xf] }
 0x191   :  { %v2513_v58 = vpop.xlane.xlu0 %2512  ;;  %1898 = vmatpush.bf16.msrb.mxu0 %v3925_v42  ;;  %v3917_v53 = vor.u32 %v4264_v44, %v3916_v10  ;;  %v3993_v42 = vor.u32 %v4281_v32, %v3990_v33  ;;  %v601_v44 = vperm.slane %v5144_v4, 2  ;;  %v4296_v32 = vld [vmem:[%s5775_s9 + $0x38] sm:$0xff] }
 0x192   :  { %v2514_v61 = vmax.f32 %v2513_v58, 1e-24 }
 0x194   :  { %1690 = vmatpush.bf16.msra.mxu3 %v3873_v14  ;;  %1668 = vmatpush.bf16.msra.mxu1 %v3837_v54  ;;  %4387 = vrsqrt.f32 %v2514_v61  ;;  %v3926_v14 = vld [vmem:[#allocation10 + $0x48] sm:$0xf0]  ;;  %vm2521_vm6 = vweird.f32 %v2514_v61 }
 0x195   :  { %v3929_v16 = vor.u32 %v4265_v12, %v3926_v14  ;;  %1899 = vmatpush.bf16.msrb.mxu0 %v3917_v53  ;;  %v4288_v12 = vld [vmem:[#allocation10 + $0xf4] sm:$0xf0]  ;;  %v4287_v14 = vld [vmem:[#allocation10 + $0xf4] sm:$0xf] }
 0x196   :  { %v1284_v22 = vpop.f32.mrf.mxu3  ;;  %v5151_v19 = vpop.f32.mrf.mxu2 }
 0x197   :  { %v5149_v39 = vpop.f32.mrf.mxu1  ;;  %v1310_v55 = vpop.f32.mrf.mxu0  ;;  %1924 = vmatpush.bf16.msrb.mxu2 %v3929_v16  ;;  %v3921_v22 = vor.u32 %v4263_v2, %v3918_v60  ;;  %v4014_v16 = vld [vmem:[#allocation10 + $0xf8] sm:$0xf0]  ;;  %v4286_v60 = vld [vmem:[#allocation10 + $0xe4] sm:$0xf0] }
 0x198   :  { %1691 = vmatpush.bf16.msra.mxu3 %v3865_v26  ;;  %1669 = vmatpush.bf16.msra.mxu1 %v3829_v45  ;;  %v4262_v55 = vld [vmem:[#allocation10 + $0x24] sm:$0xf0]  ;;  %v1322_v1 = vadd.f32 %v5149_v39, %v1309_v5  ;;  %v4017_v17 = vor.u32 %v4287_v14, %v4014_v16  ;;  %v4004_v39 = vld [vmem:[#allocation10 + $0xe0] sm:$0xf]  ;;  %v3964_v5 = vld [vmem:[#allocation10 + $0x90] sm:$0xf] }
 0x199   :  { %v3909_v62 = vor.u32 %v4262_v55, %v3908_v57 }
 0x19a   :  { %v4388_v26 = vpop.eup %4387  ;;  %v1335_v46 = vadd.f32 %v5151_v19, %v1322_v1 }
 0x19b   :  { %v2516_v28 = vmul.f32 %v4388_v26, %v2514_v61  ;;  %1925 = vmatpush.bf16.msrb.mxu2 %v3921_v22  ;;  %vm2522_vm7 = vweird.f32 %v4388_v26  ;;  %1900 = vmatpush.bf16.msrb.mxu0 %v3909_v62  ;;  %v4006_v22 = vld [vmem:[#allocation10 + $0xe8] sm:$0xf0]  ;;  %v4276_v62 = vld [vmem:[#allocation10 + $0x94] sm:$0xf0] }
 0x19c   :  { %1692 = vmatpush.bf16.msra.mxu3 %v3857_v34  ;;  %vm2523_vm8 = vmor %vm2521_vm6, %vm2522_vm7  ;;  %v4009_v19 = vor.u32 %v4285_v20, %v4006_v22  ;;  %v3965_v1 = vor.u32 %v4276_v62, %v3964_v5  ;;  %v4302_v5 = vld [vmem:[%s5775_s9 + $0x68] sm:$0xff]  ;;  %v4292_v62 = vld [vmem:[%s5775_s9 + $0x18] sm:$0xff]  ;;  %vm2689_vm6 = vcmask 261120  }
 0x19d   :  { %v2517_v30 = vmul.f32 %v4388_v26, %v2516_v28  ;;  %v3998_v28 = vld [vmem:[#allocation10 + $0xd8] sm:$0xf0] }
 0x19e   :  { %v1336_v63 = vpop.f32.mrf.mxu2 }
 0x19f   :  { %v1323_v59 = vpop.f32.mrf.mxu1  ;;  %v2518_v38 = vmul.f32 0.5, %v2517_v30  ;;  %1926 = vmatpush.bf16.msrb.mxu2 %v3913_v31  ;;  %v3900_v63 = vld [vmem:[#allocation10 + $0x10] sm:$0xf]  ;;  %v4282_v30 = vld [vmem:[#allocation10 + $0xc4] sm:$0xf0]  ;;  %v4001_v31 = vor.u32 %v4283_v27, %v3998_v28 }
 0x1a0   :  { %1693 = vmatpush.bf16.msra.mxu3 %v3849_v47  ;;  %v4257_v47 = vld [vmem:[#allocation10 + $0x4] sm:$0xf]  ;;  %v3989_v35 = vor.u32 %v4282_v30, %v3988_v29 }
 0x1a1   :  { %v2519_v13 = vsub.f32 1.5, %v2518_v38  ;;  %v4280_v38 = vld [vmem:[#allocation10 + $0xb4] sm:$0xf0] }
 0x1a2   :  { %v3981_v10 = vor.u32 %v4280_v38, %v3980_v36 }
 0x1a3   :  { %v2520_v50 = vmul.f32 %v4388_v26, %v2519_v13  ;;  %1927 = vmatpush.bf16.msrb.mxu2 %v3905_v43  ;;  %v4279_v13 = vld [vmem:[#allocation10 + $0xb4] sm:$0xf]  ;;  %v3982_v43 = vld [vmem:[#allocation10 + $0xb8] sm:$0xf0] }
 0x1a4   :  { %1694 = vmatpush.bf16.msra.mxu3 %v3841_v56  ;;  %v3897_v56 = vor.u32 %v4257_v47, %v3894_v49  ;;  %v3985_v47 = vor.u32 %v4279_v13, %v3982_v43  ;;  %v3972_v49 = vld [vmem:[#allocation10 + $0xa0] sm:$0xf]  ;;  %v4304_v13 = vld [vmem:[%s5775_s9 + $0x78] sm:$0xff] }
 0x1a5   :  { %v2524_v54 = vsel %vm2523_vm8, %v4388_v26, %v2520_v50  ;;  %v4284_v26 = vld [vmem:[#allocation10 + $0xd4] sm:$0xf0]  ;;  %v4278_v50 = vld [vmem:[#allocation10 + $0xa4] sm:$0xf0] }
 0x1a6   :  { %v5160_v58 = vmul.f32 %v2524_v54, %v5108_v24  ;;  %v3997_v3 = vor.u32 %v4284_v26, %v3996_v25  ;;  %v3973_v54 = vor.u32 %v4278_v50, %v3972_v49  ;;  %v4294_v49 = vld [vmem:[%s5775_s9 + $0x28] sm:$0xff] }
 0x1a7   :  { %1928 = vmatpush.bf16.msrb.mxu2 %v3897_v56  ;;  %v3974_v56 = vld [vmem:[#allocation10 + $0xa8] sm:$0xf0] }
 0x1a8   :  { %1695 = vmatpush.bf16.msra.mxu3 %v3833_v8  ;;  %v3892_v8 = vld [vmem:[#allocation10] sm:$0xf]  ;;  %v3977_v57 = vor.u32 %v4277_v52, %v3974_v56  ;;  %v4303_v56 = vld [vmem:[%s5775_s9 + $0x70] sm:$0xff] }
 0x1a9   :  { %v3893_v41 = vor.u32 %v4258_v9, %v3892_v8  ;;  %v3956_v8 = vld [vmem:[#allocation10 + $0x80] sm:$0xf]  ;;  %v4273_v9 = vld [vmem:[#allocation10 + $0x84] sm:$0xf] }
 0x1ac   :  { %1934 = vmatpush.bf16.msrb.mxu3 %v4017_v17 }
 0x1ae   :  { %v1295_v11 = vpop.f32.mrf.mxu3 }
 0x1af   :  { %v1296_v15 = vadd.f32 %v1295_v11, %v1283_v0  ;;  %v5156_v51 = vpop.f32.mrf.mxu0  ;;  %v4260_v0 = vld [vmem:[#allocation10 + $0x14] sm:$0xf0]  ;;  %v4012_v11 = vld [vmem:[#allocation10 + $0xf0] sm:$0xf] }
 0x1b0   :  { %v3901_v24 = vor.u32 %v4260_v0, %v3900_v63  ;;  %1935 = vmatpush.bf16.msrb.mxu3 %v4009_v19  ;;  %v1361_v53 = vadd.f32 %v5156_v51, %v601_v44  ;;  %v4275_v63 = vld [vmem:[#allocation10 + $0x94] sm:$0xf]  ;;  %v4274_v51 = vld [vmem:[#allocation10 + $0x84] sm:$0xf0] }
 0x1b1   :  { %v1455_v21 = vpack.c.bf16 %v1296_v15, %v1296_v15  ;;  %v4013_v15 = vor.u32 %v4288_v12, %v4012_v11  ;;  %v3958_v11 = vld [vmem:[#allocation10 + $0x88] sm:$0xf0] }
 0x1b2   :  { %1901 = vmatpush.bf16.msrb.mxu0 %v3901_v24  ;;  %v3966_v24 = vld [vmem:[#allocation10 + $0x98] sm:$0xf0]  ;;  %v3961_v12 = vor.u32 %v4273_v9, %v3958_v11 }
 0x1b3   :  { %1657 = vmatmul.bf16.vlgmr.msra.gmra.mxu0 %v1455_v21  ;;  %1683 = vmatmul.bf16.vlgmr.msra.gmra.mxu2 %v1455_v21  ;;  %v4005_v21 = vor.u32 %v4286_v60, %v4004_v39  ;;  %v602_v39 = vperm.slane %v5144_v4, 3 }
 0x1b4   :  { %4082 = vmatpush.xpose.msk.msra.mxu2 %vm2510_vm3, %v5160_v58  ;;  %1908 = vmatpush.bf16.msrb.mxu1 %v4013_v15 }
 0x1b5   :  { %v5162_v59 = vpop.f32.mrf.mxu1  ;;  %1936 = vmatpush.bf16.msrb.mxu3 %v4001_v31 }
 0x1b6   :  { %v1297_v34 = vpop.f32.mrf.mxu3  ;;  %v5164_v61 = vpop.f32.mrf.mxu2  ;;  %1902 = vmatpush.bf16.msrb.mxu0 %v3893_v41  ;;  %v1374_v0 = vadd.f32 %v5162_v59, %v1361_v53  ;;  %v3957_v41 = vor.u32 %v4274_v51, %v3956_v8  ;;  %v4298_v8 = vld [vmem:[%s5775_s9 + $0x48] sm:$0xff] }
 0x1b7   :  { %v1362_v45 = vpop.f32.mrf.mxu0 }
 0x1b8   :  { %1909 = vmatpush.bf16.msrb.mxu1 %v4005_v21 }
 0x1b9   :  { %1937 = vmatpush.bf16.msrb.mxu3 %v3993_v42 }
 0x1ba   :  { %2201 = vmatpush.bf16.msra.mxu0 %v4296_v32 }
 0x1bc   :  { %1910 = vmatpush.bf16.msrb.mxu1 %v3997_v3 }
 0x1bd   :  { %v1375_v6 = vpop.f32.mrf.mxu1  ;;  %1938 = vmatpush.bf16.msrb.mxu3 %v3985_v47 }
 0x1be   :  { %v1388_v7 = vpop.f32.mrf.mxu2  ;;  %v3969_v6 = vor.u32 %v4275_v63, %v3966_v24  ;;  %v4301_v63 = vld [vmem:[%s5775_s9 + $0x60] sm:$0xff] }
 0x1c0   :  { %1911 = vmatpush.bf16.msrb.mxu1 %v3989_v35 }
 0x1c1   :  { %1939 = vmatpush.bf16.msrb.mxu3 %v3977_v57  ;;  %v4293_v57 = vld [vmem:[%s5775_s9 + $0x20] sm:$0xff] }
 0x1c4   :  { %1912 = vmatpush.bf16.msrb.mxu1 %v3981_v10 }
 0x1c5   :  { %1940 = vmatpush.bf16.msrb.mxu3 %v3969_v6  ;;  %v4299_v6 = vld [vmem:[%s5775_s9 + $0x50] sm:$0xff] }
 0x1c8   :  { %1913 = vmatpush.bf16.msrb.mxu1 %v3973_v54 }
 0x1c9   :  { %1941 = vmatpush.bf16.msrb.mxu3 %v3961_v12 }
 0x1cc   :  { %1914 = vmatpush.bf16.msrb.mxu1 %v3965_v1  ;;  %v4290_v1 = vld [vmem:[%s5775_s9 + $0x8] sm:$0xff] }
 0x1ce   :  { %v1347_v18 = vpop.f32.mrf.mxu3 }
 0x1cf   :  { %v1348_v2 = vadd.f32 %v1347_v18, %v1335_v46  ;;  %v1387_v46 = vadd.f32 %v5164_v61, %v1374_v0  ;;  %v4291_v0 = vld [vmem:[%s5775_s9 + $0x10] sm:$0xff] }
 0x1d0   :  { %1915 = vmatpush.bf16.msrb.mxu1 %v3957_v41 }
 0x1d1   :  { %v1456_v23 = vpack.c.bf16 %v1348_v2, %v1348_v2 }
 0x1d3   :  { %1670 = vmatmul.bf16.vlgmr.msra.gmra.mxu1 %v1456_v23  ;;  %1696 = vmatmul.bf16.vlgmr.msra.gmra.mxu3 %v1456_v23 }
 0x1d4   :  { %2230 = vmatpush.bf16.msra.mxu1 %v4304_v13 }
 0x1d5   :  { %v1425_v45 = vpop.f32.mrf.mxu1 }
 0x1d6   :  { %v1349_v34 = vpop.f32.mrf.mxu3  ;;  %v1412_v55 = vpop.f32.mrf.mxu0 }
 0x1d7   :  { %v1438_v7 = vpop.f32.mrf.mxu2  ;;  %v1413_v60 = vadd.f32 %v1412_v55, %v602_v39  ;;  %v4295_v34 = vld [vmem:[%s5775_s9 + $0x30] sm:$0xff] }
 0x1d8   :  { %2202 = vmatpush.bf16.msra.mxu0 %v4295_v34  ;;  %2231 = vmatpush.bf16.msra.mxu1 %v4303_v56 }
 0x1d9   :  { %v1426_v20 = vadd.f32 %v1425_v45, %v1413_v60  ;;  %v4300_v45 = vld [vmem:[%s5775_s9 + $0x58] sm:$0xff] }
 0x1db   :  { %v1439_v23 = vadd.f32 %v1438_v7, %v1426_v20  ;;  %v4289_v7 = vld [vmem:[%s5775_s9] sm:$0xff] }
 0x1dc   :  { %2203 = vmatpush.bf16.msra.mxu0 %v4294_v49  ;;  %2232 = vmatpush.bf16.msra.mxu1 %v4302_v5 }
 0x1dd   :  { %v1427_v16 = vpop.f32.mrf.mxu1 }
 0x1de   :  { %v1414_v14 = vpop.f32.mrf.mxu0 }
 0x1df   :  { %v1440_v18 = vpop.f32.mrf.mxu2 }
 0x1e0   :  { %2204 = vmatpush.bf16.msra.mxu0 %v4293_v57  ;;  %2233 = vmatpush.bf16.msra.mxu1 %v4301_v63 }
 0x1e4   :  { %2205 = vmatpush.bf16.msra.mxu0 %v4292_v62  ;;  %2234 = vmatpush.bf16.msra.mxu1 %v4300_v45 }
 0x1e8   :  { %2206 = vmatpush.bf16.msra.mxu0 %v4291_v0  ;;  %2235 = vmatpush.bf16.msra.mxu1 %v4299_v6 }
 0x1ec   :  { %2207 = vmatpush.bf16.msra.mxu0 %v4290_v1  ;;  %2236 = vmatpush.bf16.msra.mxu1 %v4298_v8 }
 0x1ee   :  { %v1399_v15 = vpop.f32.mrf.mxu3 }
 0x1ef   :  { %v1400_v59 = vadd.f32 %v1399_v15, %v1387_v46  ;;  %v4297_v46 = vld [vmem:[%s5775_s9 + $0x40] sm:$0xff] }
 0x1f0   :  { %2208 = vmatpush.bf16.msra.mxu0 %v4289_v7  ;;  %2237 = vmatpush.bf16.msra.mxu1 %v4297_v46 }
 0x1f1   :  { %v1701_v17 = vpack.c.bf16 %v1400_v59, %v1400_v59 }
 0x1f3   :  { %1903 = vmatmul.bf16.vlgmr.msrb.gmra.mxu0 %v1701_v17  ;;  %1929 = vmatmul.bf16.vlgmr.msrb.gmra.mxu2 %v1701_v17 }
 0x1f6   :  { %v1401_v2 = vpop.f32.mrf.mxu3 }
 0x200   :  { %v399_v61 = vpop.xlane.xlu1 %398 }
 0x201   :  { %vm400_vm9 = vcmp.eq.f32.partialorder %v5136_v48, %v399_v61 }
 0x202   :  { %v401_v21 = vsel %vm400_vm9, %v5127_v37, 8 }
 0x203   :  { %4083 = vmatmul.msk.f32.vlgmr.msra.gmra.mxu2 %vm2510_vm3, %v5160_v58  ;;  %v5181_v22 = vsel %vm396_vm5, %v401_v21, 2147483647  ;;  %v1947_v21 = vld [vmem:[#allocation12] sm:$0x3] }
 0x204   :  { %v404_v19 = vshra.s32 %v5181_v22, 16  ;;  %v403_v41 = vand.u32 65535, %v5181_v22 }
 0x206   :  { %v5184_v25 = vcvt.s32.f32 %v404_v19  ;;  %v405_v14 = vcvt.s32.f32 %v403_v41 }
 0x208   :  { %407 = vmin.xlane.f32.xlu2 %v5184_v25 }
 0x20e   :  { %v1451_v26 = vpop.f32.mrf.mxu3 }
 0x20f   :  { %v1452_v4 = vadd.f32 %v1451_v26, %v1439_v23 }
 0x211   :  { %v1702_v27 = vpack.c.bf16 %v1452_v4, %v1452_v4 }
 0x213   :  { %1916 = vmatmul.bf16.vlgmr.msrb.gmra.mxu1 %v1702_v27  ;;  %1942 = vmatmul.bf16.vlgmr.msrb.gmra.mxu3 %v1702_v27 }
 0x216   :  { %v1453_v58 = vpop.f32.mrf.mxu3 }
 0x230   :  { %v1658_v3 = vpop.f32.mrf.mxu0 }
 0x236   :  { %v1684_v28 = vpop.f32.mrf.mxu2 }
 0x238   :  { %v1660_v29 = vpop.f32.mrf.mxu0 }
 0x23e   :  { %v1686_v30 = vpop.f32.mrf.mxu2 }
 0x250   :  { %v1671_v31 = vpop.f32.mrf.mxu1 }
 0x251   :  { %v1672_v38 = vadd.f32 %v1671_v31, %v1658_v3 }
 0x256   :  { %v1697_v33 = vpop.f32.mrf.mxu3 }
 0x257   :  { %v1698_v35 = vadd.f32 %v1697_v33, %v1684_v28  ;;  %v2058_v33 = vperm.slane %v1947_v21, 0 }
 0x258   :  { %v1673_v36 = vpop.f32.mrf.mxu1 }
 0x259   :  { %v1985_v42 = vrot.slane %v1698_v35, 7  ;;  %v5275_v36 = vperm.slane %v1947_v21, 1  ;;  %v2625_v21 = vld [vmem:[%s5742_s11 + $0x38] sm:$0xff] }
 0x25a   :  { %2641 = vmatpush.msra.mxu3 %v2625_v21 }
 0x25b   :  { %v5196_v43 = vsel %vm1986_vm10, %v1672_v38, %v1985_v42  ;;  %v1989_v10 = vsel %vm1988_vm11, %v1672_v38, %v1985_v42  ;;  %v5200_v44 = vsel %vm1991_vm12, %v1672_v38, %v1985_v42  ;;  %v5203_v47 = vsel %vm1994_vm13, %v1672_v38, %v1985_v42 }
 0x25c   :  { %v5209_v50 = vsel %vm1997_vm14, %v1672_v38, %v1985_v42  ;;  %v5212_v52 = vsel %vm2000_vm15, %v1672_v38, %v1985_v42  ;;  %v5215_v53 = vsel %vm2003_vm0, %v1672_v38, %v1985_v42  ;;  %v5223_v55 = vsel %vm2006_vm1, %v1985_v42, %v1672_v38 }
 0x25d   :  { %v1990_v17 = vrot.slane %v1989_v10, 1  ;;  %v1993_v2 = vrot.slane %v5200_v44, 2  ;;  %v1996_v39 = vrot.slane %v5203_v47, 3  ;;  %v1999_v60 = vrot.slane %v5209_v50, 4 }
 0x25e   :  { %v1699_v54 = vpop.f32.mrf.mxu3  ;;  %v2002_v61 = vrot.slane %v5212_v52, 5  ;;  %v2005_v20 = vrot.slane %v5215_v53, 6  ;;  %v2009_v22 = vperm.slane %v5196_v43, 0  ;;  %v2010_v19 = vperm.slane %v5196_v43, 1 }
 0x25f   :  { %v2011_v23 = vperm.slane %v1990_v17, 0  ;;  %v2012_v26 = vperm.slane %v1990_v17, 1  ;;  %v2013_v4 = vperm.slane %v1993_v2, 0  ;;  %v2015_v27 = vperm.slane %v1996_v39, 0 }
 0x260   :  { %v2014_v58 = vperm.slane %v1993_v2, 1  ;;  %v2016_v28 = vperm.slane %v1996_v39, 1  ;;  %v2017_v29 = vperm.slane %v1999_v60, 0  ;;  %v2019_v30 = vperm.slane %v2002_v61, 0 }
 0x261   :  { %v2018_v31 = vperm.slane %v1999_v60, 1  ;;  %v2020_v34 = vperm.slane %v2002_v61, 1  ;;  %v2021_v35 = vperm.slane %v2005_v20, 0  ;;  %v2022_v42 = vperm.slane %v2005_v20, 1 }
 0x270   :  { %v1904_v24 = vpop.f32.mrf.mxu0 }
 0x276   :  { %v1930_v51 = vpop.f32.mrf.mxu2 }
 0x278   :  { %v1906_v9 = vpop.f32.mrf.mxu0 }
 0x27b   :  { %v5256_v12 = vpop.xlane.xlu2 %407 }
 0x27c   :  { %vm409_vm2 = vcmp.eq.f32.partialorder %v5184_v25, %v5256_v12  ;;  %v2008_v25 = vrot.slane %v5223_v55, 7 }
 0x27d   :  { %v410_v15 = vsel %vm409_vm2, %v405_v14, inf }
 0x27e   :  { %v1932_v11 = vpop.f32.mrf.mxu2  ;;  %411 = vmin.xlane.f32.xlu0 %v410_v15  ;;  %v2023_v38 = vperm.slane %v2008_v25, 0  ;;  %v2024_v13 = vperm.slane %v2008_v25, 1 }
 0x286   :  { %v2546_v59 = vpop.f32.mrf.mxu2 }
 0x287   :  { %v5263_v16 = vsel %vm394_vm4, -1.0, %v2546_v59 }
 0x288   :  { %v2550_v18 = vsel %vm396_vm5, %v5263_v16, -inf }
 0x289   :  { %2551 = vmax.xlane.f32.xlu1 %v2550_v18 }
 0x290   :  { %v1917_v3 = vpop.f32.mrf.mxu1 }
 0x291   :  { %v1918_v32 = vadd.f32 %v1917_v3, %v1904_v24 }
 0x293   :  { %v2041_v43 = vadd.f32 %v2009_v22, %v1918_v32  ;;  %v2043_v10 = vadd.f32 %v2011_v23, %v1918_v32  ;;  %v2045_v44 = vadd.f32 %v2013_v4, %v1918_v32  ;;  %v2047_v47 = vadd.f32 %v2015_v27, %v1918_v32  ;;  %v2624_v22 = vld [vmem:[%s5742_s11 + $0x30] sm:$0xff] }
 0x294   :  { %v2049_v49 = vadd.f32 %v2017_v29, %v1918_v32  ;;  %v2051_v50 = vadd.f32 %v2019_v30, %v1918_v32  ;;  %v2053_v52 = vadd.f32 %v2021_v35, %v1918_v32  ;;  %v2055_v53 = vadd.f32 %v2023_v38, %v1918_v32  ;;  %2642 = vmatpush.msra.mxu3 %v2624_v22 }
 0x295   :  { %v2062_v54 = vadd.f32 %v2058_v33, %v2041_v43  ;;  %v2064_v56 = vadd.f32 %v2058_v33, %v2043_v10  ;;  %v2066_v57 = vadd.f32 %v2058_v33, %v2045_v44  ;;  %v2068_v55 = vadd.f32 %v2058_v33, %v2047_v47  ;;  %v2623_v44 = vld [vmem:[%s5742_s11 + $0x28] sm:$0xff]  ;;  %v2622_v47 = vld [vmem:[%s5742_s11 + $0x20] sm:$0xff] }
 0x296   :  { %v1943_v5 = vpop.f32.mrf.mxu3  ;;  %v2070_v62 = vadd.f32 %v2058_v33, %v2049_v49  ;;  %v2072_v63 = vadd.f32 %v2058_v33, %v2051_v50  ;;  %v2074_v0 = vadd.f32 %v2058_v33, %v2053_v52  ;;  %v2076_v45 = vadd.f32 %v2058_v33, %v2055_v53  ;;  %2643 = vmatpush.msra.mxu3 %v2623_v44  ;;  %v2621_v52 = vld [vmem:[%s5742_s11 + $0x18] sm:$0xff]  ;;  %v2658_v53 = vld [vmem:[%s5744_s13 + $0x28] sm:$0xff] }
 0x297   :  { %v1944_v1 = vadd.f32 %v1943_v5, %v1930_v51  ;;  %v2078_v24 = vmax.f32 %v2062_v54, 0.0  ;;  %v2080_v6 = vmax.f32 %v2064_v56, 0.0  ;;  %v2082_v7 = vmax.f32 %v2066_v57, 0.0  ;;  %v2620_v56 = vld [vmem:[%s5742_s11 + $0x10] sm:$0xff]  ;;  %v2619_v57 = vld [vmem:[%s5742_s11 + $0x8] sm:$0xff]  ;;  %v2657_v5 = vld [vmem:[%s5744_s13 + $0x20] sm:$0xff] }
 0x298   :  { %v2084_v8 = vmax.f32 %v2068_v55, 0.0  ;;  %v2086_v9 = vmax.f32 %v2070_v62, 0.0  ;;  %v2088_v46 = vmax.f32 %v2072_v63, 0.0  ;;  %v2090_v41 = vmax.f32 %v2074_v0, 0.0  ;;  %v1919_v11 = vpop.f32.mrf.mxu1  ;;  %2644 = vmatpush.msra.mxu3 %v2622_v47  ;;  %v2618_v55 = vld [vmem:[%s5742_s11] sm:$0xff]  ;;  %v2656_v62 = vld [vmem:[%s5744_s13 + $0x18] sm:$0xff] }
 0x299   :  { %v2094_v14 = vpack.c.bf16 %v2080_v6, %v2078_v24  ;;  %v2042_v15 = vadd.f32 %v2010_v19, %v1944_v1  ;;  %v2044_v59 = vadd.f32 %v2012_v26, %v1944_v1  ;;  %v2046_v17 = vadd.f32 %v2014_v58, %v1944_v1  ;;  %v4461_v63 = vld [vmem:[%s5741_s10] sm:$0xff]  ;;  %v2655_v0 = vld [vmem:[%s5744_s13 + $0x10] sm:$0xff]  ;;  %v4378_v44 = vld [vmem:[#allocation18] ss:$0 sm:$0xff] }
 0x29a   :  { %v2096_v18 = vpack.c.bf16 %v2084_v8, %v2082_v7  ;;  %v2048_v2 = vadd.f32 %v2016_v28, %v1944_v1  ;;  %v5277_v39 = vpack.c.bf16 %v2088_v46, %v2086_v9  ;;  %v2050_v60 = vadd.f32 %v2018_v31, %v1944_v1  ;;  %2645 = vmatpush.msra.mxu3 %v2621_v52 }
 0x29b   :  { %2209 = vmatmul.bf16.vlgmr.msra.gmra.mxu0 %v2094_v14  ;;  %v2063_v51 = vadd.f32 %v5275_v36, %v2042_v15  ;;  %v2065_v61 = vadd.f32 %v5275_v36, %v2044_v59  ;;  %v2067_v20 = vadd.f32 %v5275_v36, %v2046_v17  ;;  %v2052_v23 = vadd.f32 %v2020_v34, %v1944_v1  ;;  %v5363_v17 = vld [vmem:[#allocation13] ss:$0 sm:$0xff] }
 0x29c   :  { %v2069_v19 = vadd.f32 %v5275_v36, %v2048_v2  ;;  %v2071_v25 = vadd.f32 %v5275_v36, %v2050_v60  ;;  %v2092_v26 = vmax.f32 %v2076_v45, 0.0  ;;  %v2054_v4 = vadd.f32 %v2022_v42, %v1944_v1  ;;  %2646 = vmatpush.msra.mxu3 %v2620_v56  ;;  %v2654_v45 = vld [vmem:[%s5744_s13 + $0x8] sm:$0xff] }
 0x29d   :  { %v2079_v27 = vmax.f32 %v2063_v51, 0.0  ;;  %v2081_v58 = vmax.f32 %v2065_v61, 0.0  ;;  %v2083_v3 = vmax.f32 %v2067_v20, 0.0  ;;  %v2073_v28 = vadd.f32 %v5275_v36, %v2052_v23  ;;  %v5366_v51 = vld [vmem:[#allocation15] ss:$0 sm:$0xff] }
 0x29e   :  { %v2085_v29 = vmax.f32 %v2069_v19, 0.0  ;;  %v2087_v30 = vmax.f32 %v2071_v25, 0.0  ;;  %v2100_v31 = vpack.c.bf16 %v2092_v26, %v2090_v41  ;;  %v2056_v32 = vadd.f32 %v2024_v13, %v1944_v1  ;;  %v1945_v33 = vpop.f32.mrf.mxu3  ;;  %v2660_v13 = vld [vmem:[%s5744_s13 + $0x38] sm:$0xff]  ;;  %2647 = vmatpush.msra.mxu3 %v2619_v57  ;;  %v2653_v1 = vld [vmem:[%s5744_s13] sm:$0xff]  ;;  %v2688_v19 = vld [vmem:[#allocation19 + $0x18] sm:$0xff] }
 0x29f   :  { %v2095_v35 = vpack.c.bf16 %v2081_v58, %v2079_v27  ;;  %v2089_v34 = vmax.f32 %v2073_v28, 0.0  ;;  %v2075_v38 = vadd.f32 %v5275_v36, %v2054_v4  ;;  %2673 = vmatpush.msrb.mxu2 %v2660_v13  ;;  %v414_v6 = vcvt.f32.s32 %v5256_v12  ;;  %v2687_v58 = vld [vmem:[#allocation19 + $0x10] sm:$0xff] }
 0x2a0   :  { %v2097_v43 = vpack.c.bf16 %v2085_v29, %v2083_v3  ;;  %v2077_v10 = vadd.f32 %v5275_v36, %v2056_v32  ;;  %v2659_v36 = vld [vmem:[%s5744_s13 + $0x30] sm:$0xff]  ;;  %2648 = vmatpush.msra.mxu3 %v2618_v55  ;;  %v4377_v3 = vld [vmem:[#allocation16] ss:$0 sm:$0xff]  ;;  %v2686_v29 = vld [vmem:[#allocation19 + $0x8] sm:$0xff] }
 0x2a1   :  { %2238 = vmatmul.bf16.vlgmr.msra.gmra.mxu1 %v2095_v35  ;;  %v2099_v42 = vpack.c.bf16 %v2089_v34, %v2087_v30  ;;  %v2091_v49 = vmax.f32 %v2075_v38, 0.0  ;;  %2674 = vmatpush.msrb.mxu2 %v2659_v36  ;;  %v415_v46 = vshll.u32 %v414_v6, 16  ;;  %v2716_v35 = vld [vmem:[#allocation21 + $0x18] sm:$0xff]  ;;  %v2713_v36 = vld [vmem:[#allocation21] sm:$0xff] }
 0x2a2   :  { %v2093_v50 = vmax.f32 %v2077_v10, 0.0  ;;  %4084 = vmatmul.msk.f32.vlgmr.msra.gmra.mxu3 %vm2510_vm3, %v4461_v63 }
 0x2a3   :  { %2675 = vmatpush.msrb.mxu2 %v2658_v53  ;;  %2705 = vmatpush.msrb.mxu3 %v2688_v19 }
 0x2a4   :  { %v2101_v54 = vpack.c.bf16 %v2093_v50, %v2091_v49  ;;  %v2714_v49 = vld [vmem:[#allocation21 + $0x8] sm:$0xff] }
 0x2a5   :  { %2676 = vmatpush.msrb.mxu2 %v2657_v5  ;;  %2706 = vmatpush.msrb.mxu3 %v2687_v58  ;;  %v2742_v58 = vld [vmem:[%s5749_s18 + $0x8] sm:$0xff] }
 0x2a7   :  { %2677 = vmatpush.msrb.mxu2 %v2656_v62  ;;  %2707 = vmatpush.msrb.mxu3 %v2686_v29 }
 0x2a9   :  { %2678 = vmatpush.msrb.mxu2 %v2655_v0 }
 0x2ab   :  { %2214 = vmatmul.bf16.gmra.mxu0 %v2096_v18  ;;  %2679 = vmatpush.msrb.mxu2 %v2654_v45 }
 0x2ad   :  { %2680 = vmatpush.msrb.mxu2 %v2653_v1 }
 0x2ae   :  { %4085 = vmatmul.msk.f32.vlgmr.msrb.gmra.mxu2 %vm2510_vm3, %v4461_v63 }
 0x2b1   :  { %2243 = vmatmul.bf16.gmra.mxu1 %v2097_v43 }
 0x2bb   :  { %2219 = vmatmul.bf16.gmra.mxu0 %v5277_v39 }
 0x2c1   :  { %2248 = vmatmul.bf16.gmra.mxu1 %v2099_v42  ;;  %v2715_v42 = vld [vmem:[#allocation21 + $0x10] sm:$0xff] }
 0x2cb   :  { %2224 = vmatmul.bf16.gmra.mxu0 %v2100_v31  ;;  %v2685_v31 = vld [vmem:[#allocation19] sm:$0xff] }
 0x2cc   :  { %2708 = vmatpush.msrb.mxu3 %v2685_v31  ;;  %v4379_v31 = vld [vmem:[#allocation22] ss:$0 sm:$0xff] }
 0x2ce   :  { %2732 = vmatpush.msra.mxu3 %v2716_v35 }
 0x2d0   :  { %2733 = vmatpush.msra.mxu3 %v2715_v42 }
 0x2d1   :  { %2253 = vmatmul.bf16.gmra.mxu1 %v2101_v54 }
 0x2d2   :  { %2734 = vmatpush.msra.mxu3 %v2714_v49 }
 0x2d4   :  { %2735 = vmatpush.msra.mxu3 %v2713_v36 }
 0x2f1   :  { %v412_v24 = vpop.xlane.xlu0 %411 }
 0x2f2   :  { %v413_v8 = vcvt.f32.s32 %v412_v24 }
 0x2f4   :  { %v5348_v14 = vadd.s32 %v415_v46, %v413_v8 }
 0x2f6   :  { %vm417_vm3 = vcmp.eq.s32.totalorder %v5127_v37, %v5348_v14 }
 0x2f7   :  { %v5359_v12 = vsel %vm417_vm3, -inf, %v5136_v48 }
 0x2f8   :  { %v420_v59 = vsel %vm396_vm5, %v5359_v12, -inf }
 0x2fc   :  { %v2552_v7 = vpop.xlane.xlu1 %2551 }
 0x2fd   :  { %vm2553_vm4 = vcmp.eq.f32.partialorder %v5263_v16, %v2552_v7 }
 0x2fe   :  { %v2554_v9 = vsel %vm2553_vm4, %v5127_v37, 8  ;;  %vm2886_vm4 = vcmask 130048  }
 0x2ff   :  { %v5345_v41 = vsel %vm396_vm5, %v2554_v9, 2147483647 }
 0x300   :  { %v2557_v11 = vshra.s32 %v5345_v41, 16 }
 0x302   :  { %v5350_v15 = vcvt.s32.f32 %v2557_v11 }
 0x304   :  { %2560 = vmin.xlane.f32.xlu2 %v5350_v15 }
 0x30c   :  { %421 = vmax.xlane.f32.xlu2 %v420_v59 }
 0x318   :  { %v2210_v18 = vpop.f32.mrf.mxu0 }
 0x319   :  { %v2211_v2 = vadd.f32 %v5363_v17, %v2210_v18 }
 0x31e   :  { %v2239_v39 = vpop.f32.mrf.mxu1 }
 0x31f   :  { %v2240_v60 = vadd.f32 %v2239_v39, %v2211_v2 }
 0x320   :  { %v5368_v61 = vpop.f32.mrf.mxu0 }
 0x321   :  { %v2259_v20 = vmax.f32 %v2240_v60, 0.0  ;;  %v2556_v60 = vand.u32 65535, %v5345_v41  ;;  %v2744_v41 = vld [vmem:[%s5749_s18 + $0x18] sm:$0xff] }
 0x322   :  { %2838 = vmatpush.msra.mxu2 %v2744_v41 }
 0x323   :  { %v5371_v21 = vmul.f32 %v5366_v51, %v2259_v20 }
 0x325   :  { %v2650_v28 = vpop.f32.mrf.mxu3 }
 0x326   :  { %v5373_v48 = vpop.f32.mrf.mxu1  ;;  %v2651_v30 = vadd.f32 %v4377_v3, %v2650_v28  ;;  %v2741_v3 = vld [vmem:[%s5749_s18] sm:$0xff] }
 0x328   :  { %v2215_v22 = vpop.f32.mrf.mxu0  ;;  %4086 = vmatmul.msk.f32.vlgmr.msrb.gmra.mxu3 %vm2689_vm6, %v2651_v30 }
 0x329   :  { %v2216_v23 = vadd.f32 %v5363_v17, %v2215_v22  ;;  %v2558_v22 = vcvt.s32.f32 %v2556_v60 }
 0x32e   :  { %v2244_v25 = vpop.f32.mrf.mxu1 }
 0x32f   :  { %v2245_v26 = vadd.f32 %v2244_v25, %v2216_v23 }
 0x330   :  { %v2217_v4 = vpop.f32.mrf.mxu0 }
 0x331   :  { %v2261_v27 = vmax.f32 %v2245_v26, 0.0  ;;  %v2218_v33 = vadd.f32 %v5363_v17, %v2217_v4  ;;  %v2682_v47 = vpop.f32.mrf.mxu2 }
 0x332   :  { %v2683_v13 = vadd.f32 %v4378_v44, %v2682_v47 }
 0x333   :  { %v5377_v32 = vmul.f32 %v5366_v51, %v2261_v27 }
 0x334   :  { %4087 = vmatmul.msk.f32.vlgmr.msra.gmra.mxu3 %vm2689_vm6, %v2683_v13 }
 0x336   :  { %v2246_v34 = vpop.f32.mrf.mxu1 }
 0x337   :  { %v2247_v38 = vadd.f32 %v2246_v34, %v2218_v33 }
 0x338   :  { %v2220_v43 = vpop.f32.mrf.mxu0 }
 0x339   :  { %v2262_v10 = vmax.f32 %v2247_v38, 0.0  ;;  %v2221_v52 = vadd.f32 %v5363_v17, %v2220_v43 }
 0x33b   :  { %v5382_v50 = vmul.f32 %v5366_v51, %v2262_v10 }
 0x33e   :  { %v2249_v53 = vpop.f32.mrf.mxu1 }
 0x33f   :  { %v2250_v54 = vadd.f32 %v2249_v53, %v2221_v52 }
 0x340   :  { %v2222_v56 = vpop.f32.mrf.mxu0 }
 0x341   :  { %v2263_v57 = vmax.f32 %v2250_v54, 0.0  ;;  %v2223_v5 = vadd.f32 %v5363_v17, %v2222_v56 }
 0x343   :  { %v5387_v55 = vmul.f32 %v5366_v51, %v2263_v57 }
 0x346   :  { %v2251_v62 = vpop.f32.mrf.mxu1 }
 0x347   :  { %v2252_v63 = vadd.f32 %v2251_v62, %v2223_v5 }
 0x348   :  { %v2225_v0 = vpop.f32.mrf.mxu0 }
 0x349   :  { %v2264_v45 = vmax.f32 %v2252_v63, 0.0  ;;  %v2226_v24 = vadd.f32 %v5363_v17, %v2225_v0 }
 0x34b   :  { %v5391_v1 = vmul.f32 %v5366_v51, %v2264_v45 }
 0x34e   :  { %v2254_v6 = vpop.f32.mrf.mxu1 }
 0x34f   :  { %v2255_v7 = vadd.f32 %v2254_v6, %v2226_v24 }
 0x350   :  { %v2227_v9 = vpop.f32.mrf.mxu0 }
 0x351   :  { %v2265_v8 = vmax.f32 %v2255_v7, 0.0  ;;  %v2228_v11 = vadd.f32 %v5363_v17, %v2227_v9 }
 0x353   :  { %v5395_v46 = vmul.f32 %v5366_v51, %v2265_v8 }
 0x356   :  { %v2256_v59 = vpop.f32.mrf.mxu1 }
 0x357   :  { %v2257_v18 = vadd.f32 %v2256_v59, %v2228_v11 }
 0x359   :  { %v2266_v2 = vmax.f32 %v2257_v18, 0.0 }
 0x35b   :  { %v5399_v39 = vmul.f32 %v5366_v51, %v2266_v2 }
 0x377   :  { %v5402_v20 = vpop.xlane.xlu2 %2560 }
 0x378   :  { %vm2562_vm7 = vcmp.eq.f32.partialorder %v5350_v15, %v5402_v20  ;;  %v2743_v15 = vld [vmem:[%s5749_s18 + $0x10] sm:$0xff]  ;;  %v2567_v59 = vcvt.f32.s32 %v5402_v20 }
 0x379   :  { %v2563_v23 = vsel %vm2562_vm7, %v2558_v22, inf  ;;  %2839 = vmatpush.msra.mxu2 %v2743_v15 }
 0x37a   :  { %2564 = vmin.xlane.f32.xlu1 %v2563_v23 }
 0x37b   :  { %2840 = vmatpush.msra.mxu2 %v2742_v58 }
 0x37d   :  { %2841 = vmatpush.msra.mxu2 %v2741_v3 }
 0x37f   :  { %v422_v19 = vpop.xlane.xlu2 %421 }
 0x380   :  { %vm423_vm8 = vcmp.eq.f32.partialorder %v5359_v12, %v422_v19  ;;  %v2568_v19 = vshll.u32 %v2567_v59, 16 }
 0x381   :  { %v424_v25 = vsel %vm423_vm8, %v5127_v37, 8 }
 0x382   :  { %v5409_v26 = vsel %vm396_vm5, %v424_v25, 2147483647 }
 0x383   :  { %v427_v4 = vshra.s32 %v5409_v26, 16 }
 0x385   :  { %v5412_v27 = vcvt.s32.f32 %v427_v4 }
 0x387   :  { %430 = vmin.xlane.f32.xlu1 %v5412_v27 }
 0x3ab   :  { %v2710_v28 = vpop.f32.mrf.mxu3 }
 0x3ac   :  { %v2749_v29 = vrot.slane %v2710_v28, 1  ;;  %v2756_v30 = vperm.slane %v2710_v28, 0  ;;  %v2750_v47 = vrot.slane %v2710_v28, 2  ;;  %v2751_v52 = vrot.slane %v2710_v28, 3 }
 0x3ad   :  { %v2752_v62 = vrot.slane %v2710_v28, 4  ;;  %v2753_v6 = vrot.slane %v2710_v28, 5  ;;  %v2754_v7 = vrot.slane %v2710_v28, 6  ;;  %v2755_v60 = vrot.slane %v2710_v28, 7 }
 0x3ae   :  { %v2757_v33 = vperm.slane %v2749_v29, 0  ;;  %v2758_v49 = vperm.slane %v2750_v47, 0  ;;  %v2759_v54 = vperm.slane %v2751_v52, 0  ;;  %v426_v29 = vand.u32 65535, %v5409_v26 }
 0x3af   :  { %v2760_v63 = vperm.slane %v2752_v62, 0  ;;  %v2761_v8 = vperm.slane %v2753_v6, 0  ;;  %v2762_v9 = vperm.slane %v2754_v7, 0  ;;  %v2763_v15 = vperm.slane %v2755_v60, 0 }
 0x3b7   :  { %v2737_v35 = vpop.f32.mrf.mxu3 }
 0x3b8   :  { %v2772_v34 = vadd.f32 %v2756_v30, %v2737_v35  ;;  %v2773_v43 = vadd.f32 %v2757_v33, %v2737_v35  ;;  %v2774_v13 = vadd.f32 %v2758_v49, %v2737_v35  ;;  %v2775_v56 = vadd.f32 %v2759_v54, %v2737_v35 }
 0x3b9   :  { %v2776_v0 = vadd.f32 %v2760_v63, %v2737_v35  ;;  %v2777_v11 = vadd.f32 %v2761_v8, %v2737_v35  ;;  %v2778_v2 = vadd.f32 %v2762_v9, %v2737_v35  ;;  %v2779_v28 = vadd.f32 %v2763_v15, %v2737_v35 }
 0x3ba   :  { %v2783_v38 = vadd.f32 %v4379_v31, %v2772_v34  ;;  %v2784_v42 = vadd.f32 %v4379_v31, %v2773_v43  ;;  %v2785_v36 = vadd.f32 %v4379_v31, %v2774_v13  ;;  %v2786_v57 = vadd.f32 %v4379_v31, %v2775_v56 }
 0x3bb   :  { %v2787_v45 = vadd.f32 %v4379_v31, %v2776_v0  ;;  %v2788_v18 = vadd.f32 %v4379_v31, %v2777_v11  ;;  %v2789_v41 = vadd.f32 %v4379_v31, %v2778_v2  ;;  %v2790_v30 = vadd.f32 %v4379_v31, %v2779_v28  ;;  %v4382_v0 = vld [vmem:[#allocation25] ss:$0 sm:$0xff] }
 0x3bc   :  { %v2791_v10 = vmax.f32 %v2783_v38, 0.0  ;;  %v2792_v44 = vmax.f32 %v2784_v42, 0.0  ;;  %v2793_v53 = vmax.f32 %v2785_v36, 0.0  ;;  %v2794_v5 = vmax.f32 %v2786_v57, 0.0 }
 0x3bd   :  { %v2795_v24 = vmax.f32 %v2787_v45, 0.0  ;;  %v2796_v23 = vmax.f32 %v2788_v18, 0.0  ;;  %v2797_v3 = vmax.f32 %v2789_v41, 0.0  ;;  %v2213_v33 = vadd.f32 %v5363_v17, %v5368_v61  ;;  %v4381_v61 = vld [vmem:[#allocation24] ss:$0 sm:$0xff] }
 0x3be   :  { %4088 = vmatmul.msk.f32.vlgmr.msra.gmra.mxu2 %vm2689_vm6, %v2791_v10  ;;  %v428_v38 = vcvt.s32.f32 %v426_v29  ;;  %v2798_v10 = vmax.f32 %v2790_v30, 0.0  ;;  %v4858_v45 = vmov 0.0  }
 0x3bf   :  { %v2242_v43 = vadd.f32 %v5373_v48, %v2213_v33 }
 0x3c1   :  { %v2260_v42 = vmax.f32 %v2242_v43, 0.0 }
 0x3c3   :  { %v2271_v26 = vmul.f32 %v5366_v51, %v2260_v42 }
 0x3c6   :  { %4089 = vmatmul.msk.f32.gmra.mxu2 %vm2689_vm6, %v2792_v44 }
 0x3ce   :  { %4090 = vmatmul.msk.f32.gmra.mxu2 %vm2689_vm6, %v2793_v53 }
 0x3d6   :  { %4091 = vmatmul.msk.f32.gmra.mxu2 %vm2689_vm6, %v2794_v5 }
 0x3de   :  { %4092 = vmatmul.msk.f32.gmra.mxu2 %vm2689_vm6, %v2795_v24  ;;  %v418_v24 = vsel %vm417_vm3, 1.0, %v4858_v45 }
 0x3e6   :  { %4093 = vmatmul.msk.f32.gmra.mxu2 %vm2689_vm6, %v2796_v23 }
 0x3ed   :  { %v2565_v22 = vpop.xlane.xlu1 %2564 }
 0x3ee   :  { %v2566_v25 = vcvt.f32.s32 %v2565_v22  ;;  %4094 = vmatmul.msk.f32.gmra.mxu2 %vm2689_vm6, %v2797_v3 }
 0x3f0   :  { %v5433_v4 = vadd.s32 %v2568_v19, %v2566_v25 }
 0x3f2   :  { %vm2570_vm9 = vcmp.eq.s32.totalorder %v5127_v37, %v5433_v4 }
 0x3f3   :  { %v5442_v20 = vsel %vm2570_vm9, -inf, %v5263_v16 }
 0x3f4   :  { %v2573_v58 = vsel %vm396_vm5, %v5442_v20, -inf }
 0x3f5   :  { %2574 = vmax.xlane.f32.xlu0 %v2573_v58 }
 0x3f6   :  { %4095 = vmatmul.msk.f32.gmra.mxu2 %vm2689_vm6, %v2798_v10 }
 0x3fa   :  { %v431_v34 = vpop.xlane.xlu1 %430 }
 0x3fb   :  { %vm432_vm10 = vcmp.eq.f32.partialorder %v5412_v27, %v431_v34  ;;  %v437_v52 = vcvt.f32.s32 %v431_v34 }
 0x3fc   :  { %v433_v16 = vsel %vm432_vm10, %v428_v38, inf }
 0x3fd   :  { %434 = vmin.xlane.f32.xlu0 %v433_v16  ;;  %v438_v54 = vshll.u32 %v437_v52, 16 }
 0x405   :  { %2280 = vadd.xlane.f32.xlu0 %v2271_v26 }
 0x441   :  { %v2843_v35 = vpop.f32.mrf.mxu2 }
 0x442   :  { %v2844_v7 = vadd.f32 %v4381_v61, %v2843_v35 }
 0x444   :  { %v2867_v11 = vmax.f32 %v2844_v7, 0.0 }
 0x446   :  { %v2878_v2 = vmul.f32 %v4382_v0, %v2867_v11 }
 0x448   :  { %v2887_v60 = vsel %vm2886_vm4, %v2878_v2, 0.0 }
 0x449   :  { %v2846_v31 = vpop.f32.mrf.mxu2  ;;  %2888 = vadd.xlane.f32.xlu1 %v2887_v60 }
 0x44a   :  { %v2847_v56 = vadd.f32 %v4381_v61, %v2846_v31 }
 0x44c   :  { %v2868_v63 = vmax.f32 %v2847_v56, 0.0 }
 0x44e   :  { %v2879_v8 = vmul.f32 %v4382_v0, %v2868_v63  ;;  %v2571_v63 = vsel %vm2570_vm9, 1.0, %v4858_v45 }
 0x450   :  { %v2890_v59 = vsel %vm2886_vm4, %v2879_v8, 0.0  ;;  %v4384_v8 = vld [vmem:[#allocation3] ss:$0 sm:$0xff] }
 0x451   :  { %v2849_v44 = vpop.f32.mrf.mxu2 }
 0x452   :  { %v2850_v14 = vadd.f32 %v4381_v61, %v2849_v44 }
 0x454   :  { %v2869_v41 = vmax.f32 %v2850_v14, 0.0 }
 0x456   :  { %v2880_v30 = vmul.f32 %v4382_v0, %v2869_v41 }
 0x459   :  { %v2852_v47 = vpop.f32.mrf.mxu2 }
 0x45a   :  { %v2853_v43 = vadd.f32 %v4381_v61, %v2852_v47 }
 0x45c   :  { %v2870_v16 = vmax.f32 %v2853_v43, 0.0 }
 0x45e   :  { %v2881_v10 = vmul.f32 %v4382_v0, %v2870_v16 }
 0x460   :  { %v2896_v42 = vsel %vm2886_vm4, %v2881_v10, 0.0 }
 0x461   :  { %v2855_v49 = vpop.f32.mrf.mxu2 }
 0x462   :  { %v2856_v36 = vadd.f32 %v4381_v61, %v2855_v49 }
 0x464   :  { %v2871_v23 = vmax.f32 %v2856_v36, 0.0 }
 0x466   :  { %v2882_v3 = vmul.f32 %v4382_v0, %v2871_v23 }
 0x468   :  { %v2575_v17 = vpop.xlane.xlu0 %2574  ;;  %v2899_v33 = vsel %vm2886_vm4, %v2882_v3, 0.0 }
 0x469   :  { %vm2576_vm1 = vcmp.eq.f32.partialorder %v5442_v20, %v2575_v17  ;;  %v2858_v62 = vpop.f32.mrf.mxu2 }
 0x46a   :  { %v2577_v48 = vsel %vm2576_vm1, %v5127_v37, 8  ;;  %v2859_v26 = vadd.f32 %v4381_v61, %v2858_v62 }
 0x46b   :  { %v5457_v27 = vsel %vm396_vm5, %v2577_v48, 2147483647 }
 0x46c   :  { %v2580_v13 = vshra.s32 %v5457_v27, 16  ;;  %v2872_v35 = vmax.f32 %v2859_v26, 0.0  ;;  %v2579_v17 = vand.u32 65535, %v5457_v27 }
 0x46e   :  { %v5460_v51 = vcvt.s32.f32 %v2580_v13  ;;  %v2883_v31 = vmul.f32 %v4382_v0, %v2872_v35  ;;  %v2581_v48 = vcvt.s32.f32 %v2579_v17 }
 0x470   :  { %2583 = vmin.xlane.f32.xlu2 %v5460_v51  ;;  %v435_v53 = vpop.xlane.xlu0 %434  ;;  %v2902_v44 = vsel %vm2886_vm4, %v2883_v31, 0.0 }
 0x471   :  { %v436_v57 = vcvt.f32.s32 %v435_v53  ;;  %v2861_v9 = vpop.f32.mrf.mxu2 }
 0x472   :  { %v2862_v18 = vadd.f32 %v4381_v61, %v2861_v9 }
 0x473   :  { %v439_v5 = vadd.s32 %v438_v54, %v436_v57 }
 0x475   :  { %vm440_vm2 = vcmp.eq.s32.totalorder %v5127_v37, %v439_v5 }
 0x476   :  { %v5470_v6 = vsel %vm440_vm2, 1.0, %v418_v24  ;;  %v442_v19 = vsel %vm440_vm2, -inf, %v5359_v12  ;;  %v2893_v12 = vsel %vm2886_vm4, %v2880_v30, 0.0 }
 0x477   :  { %v443_v58 = vsel %vm396_vm5, %v442_v19, -inf }
 0x478   :  { %2278 = vadd.xlane.f32.xlu2 %v5371_v21  ;;  %v2873_v21 = vmax.f32 %v2862_v18, 0.0 }
 0x479   :  { %v2864_v22 = vpop.f32.mrf.mxu2 }
 0x47a   :  { %v2865_v25 = vadd.f32 %v4381_v61, %v2864_v22  ;;  %v2884_v28 = vmul.f32 %v4382_v0, %v2873_v21 }
 0x47c   :  { %v2874_v15 = vmax.f32 %v2865_v25, 0.0  ;;  %v5481_v34 = vsel %vm2886_vm4, %v2884_v28, 0.0 }
 0x47e   :  { %v2885_v29 = vmul.f32 %v4382_v0, %v2874_v15 }
 0x480   :  { %2891 = vadd.xlane.f32.xlu2 %v2890_v59  ;;  %v5484_v38 = vsel %vm2886_vm4, %v2885_v29, 0.0  ;;  %vm2475_vm4 = vcmask 1047559  }
 0x488   :  { %444 = vmax.xlane.f32.xlu2 %v443_v58 }
 0x490   :  { %2894 = vadd.xlane.f32.xlu2 %v2893_v12 }
 0x498   :  { %2284 = vadd.xlane.f32.xlu2 %v5382_v50 }
 0x4a0   :  { %2897 = vadd.xlane.f32.xlu2 %v2896_v42 }
 0x4a8   :  { %2286 = vadd.xlane.f32.xlu2 %v5387_v55  ;;  %v4859_v55 = vmov 0  }
 0x4a9   :  { %4326 = vset.pattern.permute.xlu1 %v4859_v55  ;;  %4327 = vset.pattern.permute.xlu0 %v4859_v55 }
 0x4b0   :  { %2288 = vadd.xlane.f32.xlu2 %v5391_v1 }
 0x4b8   :  { %2903 = vadd.xlane.f32.xlu2 %v2902_v44 }
 0x4bc   :  { %v5503_v53 = vpop.xlane.xlu1 %2888 }
 0x4e3   :  { %v2584_v47 = vpop.xlane.xlu2 %2583 }
 0x4e4   :  { %vm2585_vm3 = vcmp.eq.f32.partialorder %v5460_v51, %v2584_v47  ;;  %v4383_v51 = vld [vmem:[#allocation2] ss:$0 sm:$0xff]  ;;  %v2590_v54 = vcvt.f32.s32 %v2584_v47 }
 0x4e5   :  { %v2586_v50 = vsel %vm2585_vm3, %v2581_v48, inf }
 0x4e6   :  { %2587 = vmin.xlane.f32.xlu1 %v2586_v50  ;;  %v2591_v57 = vshll.u32 %v2590_v54, 16 }
 0x4eb   :  { %v5494_v49 = vpop.xlane.xlu2 %2278 }
 0x4f3   :  { %v5496_v13 = vpop.xlane.xlu2 %2891 }
 0x4fb   :  { %v445_v1 = vpop.xlane.xlu2 %444 }
 0x4fc   :  { %vm446_vm6 = vcmp.eq.f32.partialorder %v442_v19, %v445_v1 }
 0x4fd   :  { %v447_v61 = vsel %vm446_vm6, %v5127_v37, 8 }
 0x4fe   :  { %v448_v27 = vsel %vm396_vm5, %v447_v61, 2147483647 }
 0x4ff   :  { %v450_v36 = vshra.s32 %v448_v27, 16  ;;  %v449_v11 = vand.u32 65535, %v448_v27 }
 0x501   :  { %v452_v52 = vcvt.s32.f32 %v450_v36  ;;  %v451_v4 = vcvt.s32.f32 %v449_v11 }
 0x503   :  { %453 = vmin.xlane.f32.xlu1 %v452_v52 }
 0x51c   :  { %2297 = vperm.xlu1 %4326, %v4383_v51  }
 0x524   :  { %4328 = vset.pattern.permute.xlu1 %v5122_v40 }
 0x546   :  { %2900 = vadd.xlane.f32.xlu1 %v2899_v33 }
 0x559   :  { %v2588_v56 = vpop.xlane.xlu1 %2587 }
 0x55a   :  { %v2589_v5 = vcvt.f32.s32 %v2588_v56 }
 0x55c   :  { %v2592_v62 = vadd.s32 %v2591_v57, %v2589_v5 }
 0x55e   :  { %vm2593_vm7 = vcmp.eq.s32.totalorder %v5127_v37, %v2592_v62 }
 0x55f   :  { %v2595_v0 = vsel %vm2593_vm7, -inf, %v5442_v20  ;;  %v5511_v24 = vsel %vm2593_vm7, 1.0, %v2571_v63  ;;  %v2281_v20 = vpop.xlane.xlu0 %2280 }
 0x560   :  { %v2596_v7 = vsel %vm396_vm5, %v2595_v0, -inf }
 0x561   :  { %2597 = vmax.xlane.f32.xlu0 %v2596_v7 }
 0x569   :  { %2282 = vadd.xlane.f32.xlu0 %v5377_v32 }
 0x576   :  { %v454_v9 = vpop.xlane.xlu1 %453 }
 0x577   :  { %vm455_vm8 = vcmp.eq.f32.partialorder %v452_v52, %v454_v9  ;;  %v460_v23 = vcvt.f32.s32 %v454_v9 }
 0x578   :  { %v456_v45 = vsel %vm455_vm8, %v451_v4, inf }
 0x579   :  { %v461_v21 = vshll.u32 %v460_v23, 16 }
 0x57d   :  { %2914 = vperm.xlu0 %4327, %v4384_v8  }
 0x585   :  { %4340 = vset.pattern.permute.xlu0 %v5122_v40 }
 0x58e   :  { %v5540_v10 = vpop.permute.xlu1 %2297 }
 0x58f   :  { %v2301_v17 = vadd.f32 %v5540_v10, %v2281_v20 }
 0x591   :  { %v2309_v27 = vsub.f32 0.0, %v2301_v17 }
 0x5a7   :  { %457 = vmin.xlane.f32.xlu0 %v456_v45  ;;  %v2318_v45 = vmul.f32 1.442695, %v2309_v27 }
 0x5af   :  { %2290 = vadd.xlane.f32.xlu0 %v5395_v46  ;;  %v5526_v46 = vpop.xlane.xlu2 %2894 }
 0x5b7   :  { %v5528_v15 = vpop.xlane.xlu2 %2284 }
 0x5b9   :  { %v5544_v42 = vpop.xlane.xlu1 %2900 }
 0x5bf   :  { %v5532_v29 = vpop.xlane.xlu2 %2897 }
 0x5c7   :  { %v5534_v30 = vpop.xlane.xlu2 %2286 }
 0x5cf   :  { %v5536_v33 = vpop.xlane.xlu2 %2288 }
 0x5d4   :  { %v2598_v59 = vpop.xlane.xlu0 %2597 }
 0x5d5   :  { %vm2599_vm9 = vcmp.eq.f32.partialorder %v2595_v0, %v2598_v59 }
 0x5d6   :  { %v2600_v18 = vsel %vm2599_vm9, %v5127_v37, 8 }
 0x5d7   :  { %v2601_v2 = vsel %vm396_vm5, %v2600_v18, 2147483647 }
 0x5d8   :  { %v2603_v32 = vshra.s32 %v2601_v2, 16 }
 0x5da   :  { %v2605_v14 = vcvt.s32.f32 %v2603_v32 }
 0x5dc   :  { %2606 = vmin.xlane.f32.xlu2 %v2605_v14  ;;  %v5522_v60 = vpop.xlane.xlu0 %2282 }
 0x5e4   :  { %2906 = vadd.xlane.f32.xlu2 %v5481_v34  ;;  %v5538_v34 = vpop.xlane.xlu2 %2903 }
 0x5ec   :  { %2292 = vadd.xlane.f32.xlu2 %v5399_v39 }
 0x5ef   :  { %v5524_v22 = vpop.permute.xlu0 %2914 }
 0x5f4   :  { %2909 = vadd.xlane.f32.xlu2 %v5484_v38  ;;  %v2602_v38 = vand.u32 65535, %v2601_v2 }
 0x5f6   :  { %v2604_v43 = vcvt.s32.f32 %v2602_v38 }
 0x61a   :  { %v458_v19 = vpop.xlane.xlu0 %457 }
 0x61b   :  { %v459_v25 = vcvt.f32.s32 %v458_v19 }
 0x61d   :  { %v462_v41 = vadd.s32 %v461_v21, %v459_v25 }
 0x61f   :  { %vm463_vm10 = vcmp.eq.s32.totalorder %v5127_v37, %v462_v41 }
 0x620   :  { %v464_v58 = vsel %vm463_vm10, 1.0, %v5470_v6  ;;  %v2300_v6 = vadd.f32 %v5540_v10, %v5494_v49 }
 0x621   :  { %v2349_v39 = vperm.slane %v464_v58, 0  ;;  %v2356_v3 = vperm.slane %v464_v58, 1  ;;  %v2370_v52 = vperm.slane %v464_v58, 3  ;;  %v2363_v49 = vperm.slane %v464_v58, 2 }
 0x622   :  { %v2308_v26 = vsub.f32 0.0, %v2300_v6  ;;  %v2384_v51 = vperm.slane %v464_v58, 5  ;;  %v2398_v56 = vperm.slane %v464_v58, 7  ;;  %v2377_v57 = vperm.slane %v464_v58, 4 }
 0x623   :  { %v4329_v28 = vpack.i.bf16 %v2356_v3, %v2349_v39  ;;  %v2391_v5 = vperm.slane %v464_v58, 6 }
 0x624   :  { %v2316_v35 = vmul.f32 1.442695, %v2308_v26  ;;  %v2304_v26 = vadd.f32 %v5540_v10, %v5534_v30  ;;  %v2919_v30 = vadd.f32 %v5524_v22, %v5526_v46 }
 0x625   :  { %4330 = vperm.xlu1 %4328, %v4329_v28  }
 0x626   :  { %4389 = vpow2.f32 %v2316_v35  ;;  %v2291_v35 = vpop.xlane.xlu0 %2290 }
 0x627   :  { %v2306_v17 = vadd.f32 %v5540_v10, %v2291_v35 }
 0x62c   :  { %v4390_v48 = vpop.eup %4389 }
 0x62d   :  { %v2332_v36 = vadd.f32 1.0, %v4390_v48  ;;  %v2314_v48 = vsub.f32 0.0, %v2306_v17 }
 0x62f   :  { %4391 = vrcp.f32 %v2332_v36 }
 0x630   :  { %4393 = vpow2.f32 %v2318_v45 }
 0x635   :  { %v4392_v19 = vpop.eup %4391 }
 0x636   :  { %v4394_v25 = vpop.eup %4393 }
 0x637   :  { %v2333_v41 = vadd.f32 1.0, %v4394_v25 }
 0x639   :  { %4395 = vrcp.f32 %v2333_v41 }
 0x63f   :  { %v4396_v39 = vpop.eup %4395 }
 0x64f   :  { %v2607_v12 = vpop.xlane.xlu2 %2606 }
 0x650   :  { %vm2608_vm1 = vcmp.eq.f32.partialorder %v2605_v14, %v2607_v12  ;;  %v2613_v44 = vcvt.f32.s32 %v2607_v12  ;;  %v2303_v12 = vadd.f32 %v5540_v10, %v5528_v15 }
 0x651   :  { %v2609_v16 = vsel %vm2608_vm1, %v2604_v43, inf }
 0x652   :  { %2610 = vmin.xlane.f32.xlu1 %v2609_v16  ;;  %v2614_v50 = vshll.u32 %v2613_v44, 16  ;;  %v2311_v43 = vsub.f32 0.0, %v2303_v12 }
 0x657   :  { %v2907_v28 = vpop.xlane.xlu2 %2906 }
 0x65f   :  { %v5560_v38 = vpop.xlane.xlu2 %2292 }
 0x667   :  { %v5566_v6 = vpop.xlane.xlu2 %2909 }
 0x697   :  { %v4331_v31 = vpop.permute.xlu1 %4330 }
 0x698   :  { %v4333_v58 = vunpack.i.h.bf16 %v4331_v31 }
 0x69a   :  { %v5555_v3 = vmul.f32 %v4396_v39, %v4333_v58  ;;  %v2307_v58 = vadd.f32 %v5540_v10, %v5560_v38 }
 0x6c5   :  { %v2611_v47 = vpop.xlane.xlu1 %2610 }
 0x6c6   :  { %v2612_v1 = vcvt.f32.s32 %v2611_v47  ;;  %v2312_v47 = vsub.f32 0.0, %v2304_v26 }
 0x6c8   :  { %v2615_v61 = vadd.s32 %v2614_v50, %v2612_v1  ;;  %v2918_v50 = vadd.f32 %v5524_v22, %v5496_v13  ;;  %v2324_v1 = vmul.f32 1.442695, %v2312_v47 }
 0x6ca   :  { %vm2616_vm2 = vcmp.eq.s32.totalorder %v5127_v37, %v2615_v61 }
 0x6cb   :  { %v2617_v54 = vsel %vm2616_vm2, 1.0, %v5511_v24  ;;  %v4332_v24 = vunpack.i.l.bf16 %v4331_v31  ;;  %v2322_v31 = vmul.f32 1.442695, %v2311_v43  ;;  %v2921_v43 = vadd.f32 %v5524_v22, %v5544_v42 }
 0x6cc   :  { %v2987_v62 = vperm.slane %v2617_v54, 3  ;;  %v2980_v63 = vperm.slane %v2617_v54, 2  ;;  %v2966_v0 = vperm.slane %v2617_v54, 0  ;;  %v2973_v7 = vperm.slane %v2617_v54, 1 }
 0x6cd   :  { %v3001_v8 = vperm.slane %v2617_v54, 5  ;;  %v3015_v9 = vperm.slane %v2617_v54, 7  ;;  %v2994_v11 = vperm.slane %v2617_v54, 4  ;;  %v3008_v4 = vperm.slane %v2617_v54, 6 }
 0x6ce   :  { %v4347_v20 = vpack.i.bf16 %v2987_v62, %v2370_v52  ;;  %v4341_v59 = vpack.i.bf16 %v2980_v63, %v2363_v49  ;;  %v4335_v18 = vpack.i.bf16 %v2973_v7, %v2966_v0  ;;  %v5549_v21 = vmul.f32 %v4392_v19, %v4332_v24 }
 0x6cf   :  { %v4358_v2 = vpack.i.bf16 %v3001_v8, %v2384_v51  ;;  %v4368_v32 = vpack.i.bf16 %v3015_v9, %v2398_v56  ;;  %v4353_v14 = vpack.i.bf16 %v2994_v11, %v2377_v57  ;;  %v4363_v23 = vpack.i.bf16 %v3008_v4, %v2391_v5 }
 0x6d0   :  { %4348 = vperm.xlu1 %4328, %v4347_v20   ;;  %4342 = vperm.xlu0 %4340, %v4341_v59   ;;  %4397 = vpow2.f32 %v2322_v31  ;;  %v2917_v52 = vadd.f32 %v5524_v22, %v5503_v53  ;;  %v2926_v49 = vsub.f32 0.0, %v2918_v50  ;;  %v2927_v54 = vsub.f32 0.0, %v2919_v30 }
 0x6d1   :  { %4336 = vperm.xlu2 %4334, %v4335_v18   ;;  %v2922_v5 = vadd.f32 %v5524_v22, %v5538_v34  ;;  %v2923_v63 = vadd.f32 %v5524_v22, %v2907_v28  ;;  %v2920_v53 = vadd.f32 %v5524_v22, %v5532_v29 }
 0x6d2   :  { %v2925_v57 = vsub.f32 0.0, %v2917_v52  ;;  %v2935_v13 = vmul.f32 1.442695, %v2926_v49  ;;  %v2937_v0 = vmul.f32 1.442695, %v2927_v54 }
 0x6d3   :  { %v2930_v9 = vsub.f32 0.0, %v2922_v5  ;;  %v2931_v45 = vsub.f32 0.0, %v2923_v63  ;;  %v2928_v34 = vsub.f32 0.0, %v2920_v53 }
 0x6d4   :  { %v2933_v8 = vmul.f32 1.442695, %v2925_v57 }
 0x6d5   :  { %v2945_v41 = vmul.f32 1.442695, %v2931_v45 }
 0x6d6   :  { %v4398_v27 = vpop.eup %4397 }
 0x6d7   :  { %v2335_v51 = vadd.f32 1.0, %v4398_v27 }
 0x6d8   :  { %4359 = vperm.xlu1 %4328, %v4358_v2   ;;  %4375 = vset.pattern.permute.xlu0 %v4859_v55 }
 0x6d9   :  { %4346 = vset.pattern.permute.xlu2 %v4859_v55 }
 0x6da   :  { %2438 = vperm.xlu2 %4346, %v5549_v21  }
 0x6e0   :  { %4369 = vperm.xlu1 %4328, %v4368_v32  }
 0x6e2   :  { %4352 = vset.pattern.permute.xlu2 %v5122_v40  ;;  %v2302_v40 = vadd.f32 %v5540_v10, %v5522_v60 }
 0x6e4   :  { %v2310_v16 = vsub.f32 0.0, %v2302_v40  ;;  %v2939_v40 = vmul.f32 1.442695, %v2928_v34 }
 0x6e6   :  { %v2320_v44 = vmul.f32 1.442695, %v2310_v16 }
 0x6e8   :  { %4373 = vset.pattern.permute.xlu1 %v4859_v55  ;;  %4399 = vpow2.f32 %v2320_v44 }
 0x6e9   :  { %2441 = vperm.xlu1 %4373, %v5555_v3   ;;  %4401 = vpow2.f32 %v2324_v1 }
 0x6ea   :  { %4354 = vperm.xlu2 %4352, %v4353_v14   ;;  %v2943_v14 = vmul.f32 1.442695, %v2930_v9 }
 0x6ee   :  { %v4400_v36 = vpop.eup %4399 }
 0x6ef   :  { %v2334_v56 = vadd.f32 1.0, %v4400_v36  ;;  %v4402_v62 = vpop.eup %4401 }
 0x6f0   :  { %v2336_v11 = vadd.f32 1.0, %v4402_v62 }
 0x6f2   :  { %4364 = vperm.xlu2 %4352, %v4363_v23  }
 0x6fa   :  { %4374 = vset.pattern.permute.xlu2 %v4859_v55  ;;  %v2305_v55 = vadd.f32 %v5540_v10, %v5536_v33  ;;  %v2328_v33 = vmul.f32 1.442695, %v2314_v48  ;;  %v2315_v10 = vsub.f32 0.0, %v2307_v58 }
 0x6fc   :  { %v2313_v15 = vsub.f32 0.0, %v2305_v55  ;;  %v2929_v55 = vsub.f32 0.0, %v2921_v43  ;;  %v2330_v50 = vmul.f32 1.442695, %v2315_v10 }
 0x6fe   :  { %v2326_v61 = vmul.f32 1.442695, %v2313_v15  ;;  %v2941_v52 = vmul.f32 1.442695, %v2929_v55 }
 0x700   :  { %4403 = vpow2.f32 %v2326_v61 }
 0x701   :  { %4405 = vpow2.f32 %v2328_v33  ;;  %v2924_v33 = vadd.f32 %v5524_v22, %v5566_v6 }
 0x702   :  { %4407 = vrcp.f32 %v2335_v51 }
 0x703   :  { %4409 = vrcp.f32 %v2334_v56  ;;  %v2932_v22 = vsub.f32 0.0, %v2924_v33 }
 0x704   :  { %4411 = vpow2.f32 %v2935_v13 }
 0x705   :  { %4413 = vpow2.f32 %v2937_v0  ;;  %v2947_v9 = vmul.f32 1.442695, %v2932_v22 }
 0x706   :  { %v4404_v7 = vpop.eup %4403  ;;  %4415 = vpow2.f32 %v2933_v8 }
 0x707   :  { %v4406_v4 = vpop.eup %4405  ;;  %v2337_v18 = vadd.f32 1.0, %v4404_v7  ;;  %4417 = vrcp.f32 %v2336_v11 }
 0x708   :  { %v4408_v2 = vpop.eup %4407  ;;  %v2338_v24 = vadd.f32 1.0, %v4406_v4 }
 0x709   :  { %v4410_v23 = vpop.eup %4409  ;;  %4419 = vrcp.f32 %v2337_v18 }
 0x70a   :  { %v4412_v25 = vpop.eup %4411  ;;  %4421 = vpow2.f32 %v2943_v14 }
 0x70b   :  { %v4414_v12 = vpop.eup %4413  ;;  %4423 = vrcp.f32 %v2338_v24  ;;  %v2950_v16 = vadd.f32 1.0, %v4412_v25 }
 0x70c   :  { %v4416_v26 = vpop.eup %4415  ;;  %4425 = vpow2.f32 %v2945_v41  ;;  %v2951_v31 = vadd.f32 1.0, %v4414_v12 }
 0x70d   :  { %v4418_v35 = vpop.eup %4417  ;;  %4427 = vpow2.f32 %v2939_v40  ;;  %v2949_v42 = vadd.f32 1.0, %v4416_v26 }
 0x70e   :  { %4429 = vrcp.f32 %v2950_v16 }
 0x70f   :  { %v4420_v47 = vpop.eup %4419  ;;  %4431 = vrcp.f32 %v2951_v31 }
 0x710   :  { %v4422_v48 = vpop.eup %4421  ;;  %4433 = vrcp.f32 %v2949_v42 }
 0x711   :  { %v4424_v27 = vpop.eup %4423  ;;  %4435 = vpow2.f32 %v2330_v50  ;;  %v2954_v57 = vadd.f32 1.0, %v4422_v48 }
 0x712   :  { %v4426_v36 = vpop.eup %4425  ;;  %4437 = vpow2.f32 %v2941_v52 }
 0x713   :  { %v4428_v51 = vpop.eup %4427  ;;  %v2955_v5 = vadd.f32 1.0, %v4426_v36  ;;  %4439 = vrcp.f32 %v2954_v57 }
 0x714   :  { %v4430_v13 = vpop.eup %4429  ;;  %v2952_v63 = vadd.f32 1.0, %v4428_v51 }
 0x715   :  { %v4432_v62 = vpop.eup %4431  ;;  %4441 = vrcp.f32 %v2955_v5 }
 0x716   :  { %v4434_v7 = vpop.eup %4433  ;;  %4443 = vrcp.f32 %v2952_v63 }
 0x717   :  { %v4436_v8 = vpop.eup %4435  ;;  %4445 = vpow2.f32 %v2947_v9 }
 0x718   :  { %v2339_v34 = vadd.f32 1.0, %v4436_v8 }
 0x71a   :  { %4447 = vrcp.f32 %v2339_v34 }
 0x72b   :  { %v5573_v60 = vpop.permute.xlu2 %4336 }
 0x72c   :  { %v4339_v54 = vunpack.i.h.bf16 %v5573_v60  ;;  %v4338_v6 = vunpack.i.l.bf16 %v5573_v60  ;;  %v4438_v60 = vpop.eup %4437 }
 0x72e   :  { %v5621_v0 = vmul.f32 %v4430_v13, %v4339_v54  ;;  %v5625_v11 = vmul.f32 %v4434_v7, %v4338_v6 }
 0x734   :  { %v5583_v46 = vpop.permute.xlu2 %2438 }
 0x735   :  { %v2461_v22 = vperm.slane %v5583_v46, %v5127_v37 }
 0x742   :  { %v5588_v20 = vpop.permute.xlu1 %4348  ;;  %v5590_v59 = vpop.permute.xlu0 %4342 }
 0x743   :  { %v4350_v32 = vunpack.i.l.bf16 %v5588_v20  ;;  %v4344_v29 = vunpack.i.l.bf16 %v5590_v59  ;;  %v4345_v56 = vunpack.i.h.bf16 %v5590_v59  ;;  %v4440_v59 = vpop.eup %4439  ;;  %v4351_v18 = vunpack.i.h.bf16 %v5588_v20 }
 0x744   :  { %v5594_v19 = vpop.permute.xlu2 %4354 }
 0x745   :  { %v5598_v39 = vmul.f32 %v4408_v2, %v4350_v32  ;;  %v5600_v28 = vmul.f32 %v4410_v23, %v4344_v29  ;;  %v4356_v38 = vunpack.i.l.bf16 %v5594_v19  ;;  %v5623_v53 = vmul.f32 %v4432_v62, %v4345_v56  ;;  %v4442_v2 = vpop.eup %4441 }
 0x746   :  { %v2953_v32 = vadd.f32 1.0, %v4438_v60  ;;  %v4444_v23 = vpop.eup %4443  ;;  %v4357_v20 = vunpack.i.h.bf16 %v5594_v19  ;;  %v3124_v19 = vld [vmem:[%s5752_s22] sm:$0xff] }
 0x747   :  { %2447 = vperm.xlu1 %4373, %v5598_v39   ;;  %2444 = vperm.xlu2 %4374, %v5600_v28   ;;  %v5607_v1 = vmul.f32 %v4418_v35, %v4356_v38  ;;  %v5635_v25 = vmul.f32 %v4444_v23, %v4351_v18  ;;  %v4446_v41 = vpop.eup %4445  ;;  %v3125_v31 = vsel %vm396_vm5, %v3124_v19, -inf }
 0x748   :  { %4449 = vrcp.f32 %v2953_v32  ;;  %v4448_v12 = vpop.eup %4447  ;;  %v2956_v40 = vadd.f32 1.0, %v4446_v41 }
 0x74a   :  { %v4360_v44 = vpop.permute.xlu1 %4359  ;;  %4451 = vrcp.f32 %v2956_v40 }
 0x74b   :  { %v4361_v17 = vunpack.i.l.bf16 %v4360_v44  ;;  %v4362_v4 = vunpack.i.h.bf16 %v4360_v44 }
 0x74c   :  { %v4365_v15 = vpop.permute.xlu2 %4364 }
 0x74d   :  { %v5609_v30 = vmul.f32 %v4420_v47, %v4361_v17  ;;  %v4366_v61 = vunpack.i.l.bf16 %v4365_v15  ;;  %v4367_v45 = vunpack.i.h.bf16 %v4365_v15  ;;  %v5631_v29 = vmul.f32 %v4440_v59, %v4362_v4 }
 0x74e   :  { %v4450_v16 = vpop.eup %4449 }
 0x74f   :  { %v5613_v49 = vmul.f32 %v4424_v27, %v4366_v61  ;;  %2453 = vperm.xlu0 %4375, %v5609_v30   ;;  %2450 = vperm.xlu1 %4373, %v5607_v1   ;;  %v5633_v14 = vmul.f32 %v4442_v2, %v4367_v45  ;;  %v5643_v26 = vmul.f32 %v4450_v16, %v4357_v20 }
 0x750   :  { %v4452_v38 = vpop.eup %4451 }
 0x751   :  { %2456 = vperm.xlu2 %4374, %v5613_v49  }
 0x752   :  { %v4370_v24 = vpop.permute.xlu1 %4369 }
 0x753   :  { %v4371_v58 = vunpack.i.l.bf16 %v4370_v24  ;;  %v4372_v10 = vunpack.i.h.bf16 %v4370_v24 }
 0x755   :  { %v5641_v43 = vmul.f32 %v4448_v12, %v4371_v58  ;;  %v5647_v35 = vmul.f32 %v4452_v38, %v4372_v10 }
 0x757   :  { %3058 = vperm.xlu1 %4373, %v5621_v0   ;;  %3061 = vperm.xlu0 %4375, %v5623_v53  }
 0x759   :  { %3055 = vperm.xlu2 %4374, %v5625_v11  }
 0x75b   :  { %v2442_v17 = vpop.permute.xlu1 %2441 }
 0x75c   :  { %v2462_v57 = vperm.slane %v2442_v17, %v5127_v37 }
 0x75e   :  { %v2469_v4 = vsel %vm1988_vm11, %v2462_v57, %v2461_v22 }
 0x75f   :  { %3070 = vperm.xlu1 %4373, %v5631_v29   ;;  %3073 = vperm.xlu0 %4375, %v5633_v14  }
 0x761   :  { %3064 = vperm.xlu2 %4374, %v5635_v25  }
 0x767   :  { %2459 = vperm.xlu1 %4373, %v5641_v43  }
 0x769   :  { %3067 = vperm.xlu2 %4374, %v5643_v26  }
 0x771   :  { %3076 = vperm.xlu2 %4374, %v5647_v35  }
 0x79a   :  { %3126 = vmax.xlane.f32.xlu2 %v3125_v31 }
 0x7a1   :  { %v2445_v44 = vpop.permute.xlu2 %2444 }
 0x7a2   :  { %v2463_v5 = vperm.slane %v2445_v44, %v5127_v37 }
 0x7a4   :  { %v2470_v59 = vsel %vm1991_vm12, %v2463_v5, %v2469_v4  ;;  %v3042_v5 = vadd.f32 1.25e-09, %v5643_v26  ;;  %v3045_v26 = vadd.f32 1.25e-09, %v5647_v35 }
 0x7ab   :  { %v2457_v55 = vpop.permute.xlu2 %2456 }
 0x7ac   :  { %v2467_v40 = vperm.slane %v2457_v55, %v5127_v37 }
 0x7b3   :  { %v3056_v47 = vpop.permute.xlu2 %3055 }
 0x7b4   :  { %v3078_v33 = vperm.slane %v3056_v47, %v5127_v37 }
 0x7b9   :  { %v2448_v42 = vpop.permute.xlu1 %2447 }
 0x7ba   :  { %v2464_v6 = vperm.slane %v2448_v42, %v5127_v37 }
 0x7bb   :  { %v3065_v15 = vpop.permute.xlu2 %3064 }
 0x7bc   :  { %v3081_v13 = vperm.slane %v3065_v15, %v5127_v37  ;;  %v2471_v18 = vsel %vm1994_vm13, %v2464_v6, %v2470_v59 }
 0x7c1   :  { %v2451_v48 = vpop.permute.xlu1 %2450  ;;  %v2454_v50 = vpop.permute.xlu0 %2453 }
 0x7c2   :  { %v2465_v7 = vperm.slane %v2451_v48, %v5127_v37  ;;  %v2466_v2 = vperm.slane %v2454_v50, %v5127_v37 }
 0x7c3   :  { %v3068_v61 = vpop.permute.xlu2 %3067 }
 0x7c4   :  { %v3082_v8 = vperm.slane %v3068_v61, %v5127_v37  ;;  %v2472_v24 = vsel %vm1997_vm14, %v2465_v7, %v2471_v18  ;;  %v2422_v61 = vadd.f32 1.25e-09, %v5555_v3  ;;  %v2425_v3 = vadd.f32 1.25e-09, %v5607_v1 }
 0x7c5   :  { %v2473_v12 = vsel %vm2000_vm15, %v2466_v2, %v2472_v24  ;;  %v3044_v7 = vadd.f32 1.25e-09, %v5633_v14  ;;  %v2428_v1 = vadd.f32 1.25e-09, %v5641_v43 }
 0x7c6   :  { %v2474_v38 = vsel %vm2003_vm0, %v2467_v40, %v2473_v12 }
 0x7c9   :  { %v3059_v27 = vpop.permute.xlu1 %3058  ;;  %v3062_v36 = vpop.permute.xlu0 %3061 }
 0x7ca   :  { %v3079_v52 = vperm.slane %v3059_v27, %v5127_v37  ;;  %v3080_v51 = vperm.slane %v3062_v36, %v5127_v37  ;;  %v2421_v27 = vadd.f32 1.25e-09, %v5549_v21 }
 0x7cb   :  { %v3077_v63 = vpop.permute.xlu2 %3076 }
 0x7cc   :  { %v3086_v54 = vsel %vm1988_vm11, %v3079_v52, %v3078_v33  ;;  %v3085_v32 = vperm.slane %v3077_v63, %v5127_v37  ;;  %v3039_v33 = vadd.f32 1.25e-09, %v5621_v0 }
 0x7cd   :  { %v3087_v56 = vsel %vm1991_vm12, %v3080_v51, %v3086_v54  ;;  %v3041_v51 = vadd.f32 1.25e-09, %v5635_v25  ;;  %v2424_v54 = vadd.f32 1.25e-09, %v5598_v39  ;;  %v3043_v39 = vadd.f32 1.25e-09, %v5631_v29 }
 0x7ce   :  { %v3088_v62 = vsel %vm1994_vm13, %v3081_v13, %v3087_v56  ;;  %v3040_v56 = vadd.f32 1.25e-09, %v5623_v53  ;;  %v2423_v13 = vadd.f32 1.25e-09, %v5600_v28  ;;  %v2426_v53 = vadd.f32 1.25e-09, %v5609_v30 }
 0x7cf   :  { %v3089_v46 = vsel %vm1997_vm14, %v3082_v8, %v3088_v62  ;;  %v2427_v28 = vadd.f32 1.25e-09, %v5613_v49 }
 0x7d1   :  { %v3071_v9 = vpop.permute.xlu1 %3070  ;;  %v3074_v60 = vpop.permute.xlu0 %3073 }
 0x7d2   :  { %v3083_v45 = vperm.slane %v3071_v9, %v5127_v37  ;;  %v3084_v34 = vperm.slane %v3074_v60, %v5127_v37 }
 0x7d4   :  { %v3090_v23 = vsel %vm2000_vm15, %v3083_v45, %v3089_v46 }
 0x7d5   :  { %v3091_v41 = vsel %vm2003_vm0, %v3084_v34, %v3090_v23 }
 0x7d6   :  { %v3092_v58 = vsel %vm2475_vm4, %v3085_v32, %v3091_v41 }
 0x7d7   :  { %v3094_v20 = vsel %vm396_vm5, %v3092_v58, 0.0 }
 0x7d8   :  { %3095 = vadd.xlane.f32.xlu1 %v3094_v20 }
 0x7d9   :  { %v2460_v16 = vpop.permute.xlu1 %2459 }
 0x7da   :  { %v2468_v10 = vperm.slane %v2460_v16, %v5127_v37 }
 0x7dc   :  { %v2476_v31 = vsel %vm2475_vm4, %v2468_v10, %v2474_v38 }
 0x7dd   :  { %v2478_v44 = vsel %vm396_vm5, %v2476_v31, 0.0 }
 0x7de   :  { %2479 = vadd.xlane.f32.xlu0 %v2478_v44 }
 0x80d   :  { %v3127_v17 = vpop.xlane.xlu2 %3126 }
 0x80e   :  { %v3128_v47 = vsub.f32 %v3124_v19, %v3127_v17  ;;  %v3038_v19 = vadd.f32 1.25e-09, %v5625_v11 }
 0x810   :  { %v3129_v42 = vmul.f32 1.442695, %v3128_v47 }
 0x812   :  { %4453 = vpow2.f32 %v3129_v42 }
 0x818   :  { %v5687_v15 = vpop.eup %4453 }
 0x819   :  { %v3131_v48 = vsel %vm396_vm5, %v5687_v15, 0.0 }
 0x81a   :  { %3132 = vadd.xlane.f32.xlu0 %v3131_v48 }
 0x84b   :  { %v3096_v55 = vpop.xlane.xlu1 %3095 }
 0x84c   :  { %v3097_v50 = vadd.f32 1e-08, %v3096_v55 }
 0x84e   :  { %4455 = vrcp.f32 %v3097_v50 }
 0x851   :  { %v2480_v36 = vpop.xlane.xlu0 %2479 }
 0x852   :  { %v2481_v52 = vadd.f32 1e-08, %v2480_v36 }
 0x854   :  { %v4456_v57 = vpop.eup %4455  ;;  %4457 = vrcp.f32 %v2481_v52 }
 0x855   :  { %v3101_v21 = vperm.slane %v4456_v57, 1  ;;  %v3100_v22 = vperm.slane %v4456_v57, 0  ;;  %v3102_v0 = vperm.slane %v4456_v57, 2  ;;  %v3105_v6 = vperm.slane %v4456_v57, 5 }
 0x856   :  { %v3103_v11 = vperm.slane %v4456_v57, 3  ;;  %v3104_v62 = vperm.slane %v4456_v57, 4  ;;  %v3106_v63 = vperm.slane %v4456_v57, 6  ;;  %v3107_v25 = vperm.slane %v4456_v57, 7 }
 0x857   :  { %v3117_v8 = vmul.f32 %v3101_v21, %v3039_v33  ;;  %v3116_v9 = vmul.f32 %v3100_v22, %v3038_v19  ;;  %v3118_v60 = vmul.f32 %v3102_v0, %v3040_v56  ;;  %v3121_v4 = vmul.f32 %v3105_v6, %v3043_v39 }
 0x858   :  { %v3119_v34 = vmul.f32 %v3103_v11, %v3041_v51  ;;  %v3120_v59 = vmul.f32 %v3104_v62, %v3042_v5  ;;  %v3122_v46 = vmul.f32 %v3106_v63, %v3044_v7  ;;  %v3123_v18 = vmul.f32 %v3107_v25, %v3045_v26 }
 0x85a   :  { %v4458_v45 = vpop.eup %4457 }
 0x85b   :  { %v2485_v29 = vperm.slane %v4458_v45, 1  ;;  %v2484_v2 = vperm.slane %v4458_v45, 0  ;;  %v2486_v30 = vperm.slane %v4458_v45, 2  ;;  %v2489_v32 = vperm.slane %v4458_v45, 5 }
 0x85c   :  { %v2487_v14 = vperm.slane %v4458_v45, 3  ;;  %v2488_v23 = vperm.slane %v4458_v45, 4  ;;  %v2490_v49 = vperm.slane %v4458_v45, 6  ;;  %v2491_v24 = vperm.slane %v4458_v45, 7  ;;  %v3221_v45 = vld [vmem:[%s5753_s23] sm:$0xff] }
 0x85d   :  { %v2501_v35 = vmul.f32 %v2485_v29, %v2422_v61  ;;  %v2500_v41 = vmul.f32 %v2484_v2, %v2421_v27  ;;  %v2502_v43 = vmul.f32 %v2486_v30, %v2423_v13  ;;  %v2505_v58 = vmul.f32 %v2489_v32, %v2426_v53 }
 0x85e   :  { %v2503_v20 = vmul.f32 %v2487_v14, %v2424_v54  ;;  %v2504_v12 = vmul.f32 %v2488_v23, %v2425_v3  ;;  %v2506_v40 = vmul.f32 %v2490_v49, %v2427_v28  ;;  %v2507_v16 = vmul.f32 %v2491_v24, %v2428_v1 }
 0x85f   :  { %v3137_v10 = vadd.f32 %v3117_v8, %v2501_v35  ;;  %v3136_v38 = vadd.f32 %v3116_v9, %v2500_v41  ;;  %v3138_v31 = vadd.f32 %v3118_v60, %v2502_v43  ;;  %v3141_v44 = vadd.f32 %v3121_v4, %v2505_v58 }
 0x860   :  { %v3139_v17 = vadd.f32 %v3119_v34, %v2503_v20  ;;  %v3140_v47 = vadd.f32 %v3120_v59, %v2504_v12  ;;  %v3142_v42 = vadd.f32 %v3122_v46, %v2506_v40  ;;  %v3143_v48 = vadd.f32 %v3123_v18, %v2507_v16 }
 0x861   :  { %v3145_v55 = vmul.f32 0.5, %v3137_v10  ;;  %v3144_v50 = vmul.f32 0.5, %v3136_v38  ;;  %v3146_v36 = vmul.f32 0.5, %v3138_v31  ;;  %v3149_v61 = vmul.f32 0.5, %v3141_v44 }
 0x862   :  { %v3147_v27 = vmul.f32 0.5, %v3139_v17  ;;  %v3148_v33 = vmul.f32 0.5, %v3140_v47  ;;  %v3150_v19 = vmul.f32 0.5, %v3142_v42  ;;  %v3151_v52 = vmul.f32 0.5, %v3143_v48 }
 0x863   :  { %3164 = vperm.xlu2 %4374, %v3145_v55   ;;  %3161 = vperm.xlu1 %4373, %v3144_v50   ;;  %v3222_v34 = vmul.f32 0.9, %v3221_v45 }
 0x864   :  { %3167 = vperm.xlu0 %4375, %v3146_v36  }
 0x86b   :  { %3176 = vperm.xlu2 %4374, %v3149_v61   ;;  %3170 = vperm.xlu1 %4373, %v3147_v27  }
 0x86c   :  { %3173 = vperm.xlu0 %4375, %v3148_v33  }
 0x873   :  { %3179 = vperm.xlu1 %4373, %v3150_v19  }
 0x874   :  { %3182 = vperm.xlu0 %4375, %v3151_v52  }
 0x88d   :  { %v3133_v51 = vpop.xlane.xlu0 %3132 }
 0x88e   :  { %4459 = vrcp.f32 %v3133_v51 }
 0x894   :  { %v4460_v54 = vpop.eup %4459 }
 0x895   :  { %v3135_v56 = vmul.f32 %v4460_v54, %v5687_v15 }
 0x897   :  { %3216 = vmatpush.msrb.mxu3 %v3135_v56 }
 0x8bd   :  { %v3165_v5 = vpop.permute.xlu2 %3164 }
 0x8be   :  { %v3185_v21 = vperm.slane %v3165_v5, %v5127_v37 }
 0x8c5   :  { %v3177_v39 = vpop.permute.xlu2 %3176 }
 0x8c6   :  { %v3189_v7 = vperm.slane %v3177_v39, %v5127_v37 }
 0x8d5   :  { %v3162_v57 = vpop.permute.xlu1 %3161 }
 0x8d6   :  { %v3168_v13 = vpop.permute.xlu0 %3167  ;;  %v3184_v3 = vperm.slane %v3162_v57, %v5127_v37 }
 0x8d7   :  { %v3186_v22 = vperm.slane %v3168_v13, %v5127_v37 }
 0x8d8   :  { %v3192_v0 = vsel %vm1988_vm11, %v3185_v21, %v3184_v3 }
 0x8d9   :  { %v3193_v63 = vsel %vm1991_vm12, %v3186_v22, %v3192_v0 }
 0x8dd   :  { %v3171_v6 = vpop.permute.xlu1 %3170 }
 0x8de   :  { %v3187_v11 = vperm.slane %v3171_v6, %v5127_v37  ;;  %v3174_v62 = vpop.permute.xlu0 %3173 }
 0x8df   :  { %v3188_v15 = vperm.slane %v3174_v62, %v5127_v37 }
 0x8e0   :  { %v3194_v25 = vsel %vm1994_vm13, %v3187_v11, %v3193_v63 }
 0x8e1   :  { %v3195_v53 = vsel %vm1997_vm14, %v3188_v15, %v3194_v25 }
 0x8e2   :  { %v3196_v8 = vsel %vm2000_vm15, %v3189_v7, %v3195_v53 }
 0x8e5   :  { %v3180_v28 = vpop.permute.xlu1 %3179 }
 0x8e6   :  { %v3190_v26 = vperm.slane %v3180_v28, %v5127_v37  ;;  %v3183_v1 = vpop.permute.xlu0 %3182 }
 0x8e7   :  { %v3191_v9 = vperm.slane %v3183_v1, %v5127_v37 }
 0x8e8   :  { %v3197_v60 = vsel %vm2003_vm0, %v3190_v26, %v3196_v8 }
 0x8e9   :  { %v3198_v4 = vsel %vm2475_vm4, %v3191_v9, %v3197_v60 }
 0x8ea   :  { %4096 = vmatmul.msk.f32.vlgmr.msrb.gmra.mxu3 %vm396_vm5, %v3198_v4 }
 0x96d   :  { %v3218_v59 = vpop.f32.mrf.mxu3 }
 0x96e   :  { %v3223_v46 = vmul.f32 0.1, %v3218_v59 }
 0x970   :  { %v3224_v37 = vadd.f32 %v3223_v46, %v3222_v34 }
 0x972   :  { %3225 = vst.msk [vmem:[#allocation27] sm:$0xff] %vm396_vm5, %v3224_v37 }
 0x973   :  { %3236 = dma.vmem_to_hbm [thread:$0]  %s3232_s2, 128, %s3234_s0, [#allocation6]  }
 0x974   :  { %4838 = dma.done.wait [#allocation6], 128  }
 0x975   :  { %4839 = vsyncadd [#allocation6], 4294967168 }
 0x976   :  { %3241 = vsyncpa [#allocation5], 1 }
 0x977   :  { %3242 = vsyncpa [#allocation8], 1 }
 0x978   :  { %3243 = vsyncpa [#allocation11], 1 }
 0x979   :  { %3244 = vsyncpa [#allocation14], 1 }
 0x97a   :  { %3245 = vsyncpa [#allocation17], 1 }
 0x97b   :  { %3246 = vsyncpa [#allocation20], 1 }
 0x97c   :  { %3247 = vsyncpa [#allocation23], 1 }
 0x97d   :  { %3248 = vsyncpa [#allocation26], 1 }
 0x97e   :  { %3249 = vsyncpa [#allocation6], 1 }

</bundles_post_ra>
